<compile_context>
chip_gen: v6e
topology: v6e:2x2x1
jax: 0.10.0
libtpu: 0.0.40
codegen_flags: <defaults>
</compile_context>

<pallas_src>
import functools
import math

import jax
import jax.numpy as jnp
import numpy as np
from jax.experimental import pallas as pl
from jax.experimental.pallas import tpu as pltpu

_PRECISION = jax.lax.Precision.HIGHEST
_VMEM_BUDGET = 48 * 1024 * 1024      # conservative: fits v7x's 64 MiB VMEM


def _round_up(v, m):
    return ((v + m - 1) // m) * m


def _vmem_bytes_estimate(nb, tb, dp, hp):
    """Rough per-grid-step VMEM footprint in bytes (f32 everywhere)."""
    f32 = 4
    x_blk = 2 * nb * tb * dp * f32        # double-buffered input block
    out_blk = 2 * nb * tb * hp * f32      # double-buffered output block
    h0_blk = 2 * nb * hp * f32            # double-buffered h0 block
    wx = dp * hp * f32                    # single-buffered (Buffered(1))
    wh = hp * hp * f32                    # single-buffered (Buffered(1))
    bias = 8 * 128 * f32                  # padded bias tile
    scratch = nb * hp * f32 + nb * tb * hp * f32   # h carry + xproj scratch
    headroom = nb * tb * hp * f32         # matmul-result temporary
    return x_blk + out_blk + h0_blk + wx + wh + bias + scratch + headroom


def _rnn_fused_kernel(x_ref, h0_ref, wx_ref, wh_ref, b_ref, out_ref,
                      h_scratch, xp_scratch):
    # Grid: (batch blocks [parallel], time blocks [arbitrary / sequential]).
    t_blk = pl.program_id(1)

    # (Re)initialize the carried hidden state at the first time block of each
    # batch block.
    @pl.when(t_blk == 0)
    def _():
        h_scratch[...] = h0_ref[...]

    nb, tb, dp = x_ref.shape
    hp = wh_ref.shape[1]

    wx = wx_ref[...]                       # (Dp, Hp), resident across the grid
    wh = wh_ref[...]                       # (Hp, Hp), resident across the grid
    b = b_ref[...]                         # (1, Hp)

    # Fused input projection for the whole time block: one large, MXU-friendly
    # matmul (the layout-preserving reshape needs Tb to be a multiple of 8).
    fused_xproj = (tb % 8 == 0)
    if fused_xproj:
        x2d = x_ref[...].reshape(nb * tb, dp)
        xp = jnp.dot(x2d, wx, preferred_element_type=jnp.float32,
                     precision=_PRECISION)
        xp_scratch[...] = xp.reshape(nb, tb, hp) + b.reshape(1, 1, hp)

    h = h_scratch[...]                     # (Nb, Hp) carried state
    for i in range(tb):                    # fully unrolled (Tb <= 16)
        if fused_xproj:
            xp_i = xp_scratch[:, i, :]
        else:                              # tiny-T / decode path (Tb == T < 8)
            xp_i = jnp.dot(x_ref[:, i, :], wx,
                           preferred_element_type=jnp.float32,
                           precision=_PRECISION) + b
        h = jnp.tanh(xp_i + jnp.dot(h, wh,
                                    preferred_element_type=jnp.float32,
                                    precision=_PRECISION))
        out_ref[:, i, :] = h.astype(out_ref.dtype)

    h_scratch[...] = h                     # carry into the next time block


@functools.partial(jax.jit, static_argnames=("time_block", "batch_block"))
def rnn_forward_pallas(x, h0, Wx, Wh, b, *, time_block=16, batch_block=128):
    """
    x:  (N, T, D) float32
    h0: (N, H)    float32
    Wx: (D, H), Wh: (H, H), b: (H,)
    returns h: (N, T, H) float32 (hidden states for every timestep)
    """
    N, T, D = x.shape
    H = h0.shape[1]

    # ---- TPU-friendly padding targets: lanes (128) / sublanes (8).
    Dp = _round_up(D, 128)
    Hp = _round_up(H, 128)

    # Batch tile: cap at batch_block; guarantee >=2 tiles for N > 8 so the
    # "parallel" batch axis can be split across both v7x TensorCores.
    # (batch_block=256 can help MXU occupancy on v6e/v7x when N is large.)
    Nb = min(batch_block, _round_up(N, 8))
    Np = _round_up(N, Nb)
    if N > 8 and Np // Nb < 2:
        Nb = max(8, _round_up(Nb // 2, 8))
        Np = _round_up(N, Nb)

    # Time tile: amortizes the ~0.35us per-grid-step overhead; shrink to fit
    # the VMEM budget (multiples of 8 required when tiling the time axis).
    Tb = min(time_block, T)
    if Tb < T:
        Tb = _round_up(Tb, 8)
    while Tb > 8 and _vmem_bytes_estimate(Nb, Tb, Dp, Hp) > _VMEM_BUDGET:
        Tb = max(8, _round_up(Tb // 2, 8))
    if Tb > T:
        Tb = T
    Tp = _round_up(T, Tb)

    f32 = jnp.float32
    x_p = x.astype(f32)
    h0_p = h0.astype(f32)
    Wx_p = Wx.astype(f32)
    Wh_p = Wh.astype(f32)
    b_p = b.astype(f32).reshape(1, H)
    # Pad the (small) raw inputs, never a materialized xproj tensor.
    if (Np, Tp, Dp) != (N, T, D):
        x_p = jnp.pad(x_p, ((0, Np - N), (0, Tp - T), (0, Dp - D)))
    if (Np, Hp) != (N, H):
        h0_p = jnp.pad(h0_p, ((0, Np - N), (0, Hp - H)))
    if (Dp, Hp) != (D, H):
        Wx_p = jnp.pad(Wx_p, ((0, Dp - D), (0, Hp - H)))
    if Hp != H:
        Wh_p = jnp.pad(Wh_p, ((0, Hp - H), (0, Hp - H)))
        b_p = jnp.pad(b_p, ((0, 0), (0, Hp - H)))

    grid = (Np // Nb, Tp // Tb)

    grid_spec = pltpu.PrefetchScalarGridSpec(
        num_scalar_prefetch=0,
        grid=grid,
        in_specs=[
            pl.BlockSpec((Nb, Tb, Dp), lambda n, t: (n, t, 0)),        # x
            pl.BlockSpec((Nb, Hp), lambda n, t: (n, 0)),               # h0
            pl.BlockSpec((Dp, Hp), lambda n, t: (0, 0),
                         pipeline_mode=pl.Buffered(1)),                # Wx
            pl.BlockSpec((Hp, Hp), lambda n, t: (0, 0),
                         pipeline_mode=pl.Buffered(1)),                # Wh
            pl.BlockSpec((1, Hp), lambda n, t: (0, 0),
                         pipeline_mode=pl.Buffered(1)),                # b
        ],
        out_specs=pl.BlockSpec((Nb, Tb, Hp), lambda n, t: (n, t, 0)),
        scratch_shapes=[
            pltpu.VMEM((Nb, Hp), jnp.float32),       # carried hidden state
            pltpu.VMEM((Nb, Tb, Hp), jnp.float32),   # per-block x projection
        ],
    )

    vmem_est = _vmem_bytes_estimate(Nb, Tb, Dp, Hp)
    vmem_limit = int(min(max(vmem_est * 5 // 4 + (1 << 20), 16 << 20),
                         112 << 20))

    out = pl.pallas_call(
        _rnn_fused_kernel,
        grid_spec=grid_spec,
        out_shape=jax.ShapeDtypeStruct((Np, Tp, Hp), jnp.float32),
        compiler_params=pltpu.CompilerParams(
            # Batch tiles are independent (megacore-shardable); the time
            # recurrence is inherently sequential.
            dimension_semantics=("parallel", "arbitrary"),
            vmem_limit_bytes=vmem_limit,
        ),
    )(x_p, h0_p, Wx_p, Wh_p, b_p)

    if (Np, Tp, Hp) != (N, T, H):
        out = out[:N, :T, :H]
    return out


class RNNPallas:
    """Mirror of the torch RNN module; parameters built deterministically."""

    def __init__(self, input_size, hidden_size, key):
        D, H = input_size, hidden_size
        k1, k2 = jax.random.split(key)
        self.Wx = jax.random.normal(k1, (D, H), jnp.float32) / math.sqrt(D)
        self.Wh = jax.random.normal(k2, (H, H), jnp.float32) / math.sqrt(H)
        self.b = jnp.zeros((H,), jnp.float32)

    def forward(self, x, h0):
        return rnn_forward_pallas(x, h0, self.Wx, self.Wh, self.b)

    def step_forward(self, x, prev_h):
        # Single decode step reuses the same kernel with T=1 (tiny-T path,
        # no time padding or fused-projection reshape).
        h = rnn_forward_pallas(x[:, None, :], prev_h, self.Wx, self.Wh, self.b)
        return h[:, 0, :]


def _rnn_reference(x, h0, Wx, Wh, b):
    def step(prev_h, x_t):
        nh = jnp.tanh(jnp.dot(x_t, Wx, precision=_PRECISION)
                      + jnp.dot(prev_h, Wh, precision=_PRECISION) + b)
        return nh, nh

    _, hs = jax.lax.scan(step, h0, jnp.transpose(x, (1, 0, 2)))
    return jnp.transpose(hs, (1, 0, 2))


if __name__ == "__main__":
    key = jax.random.PRNGKey(0)
    kx, kh, kp = jax.random.split(key, 3)

    N, T, D, H = 2, 8, 4, 32
    x = jax.random.normal(kx, (N, T, D), jnp.float32)
    h0 = jax.random.normal(kh, (N, H), jnp.float32)

    model = RNNPallas(D, H, kp)

    hn = jax.block_until_ready(model.forward(x, h0))
    ref = jax.block_until_ready(
        _rnn_reference(x, h0, model.Wx, model.Wh, model.b))
    np.testing.assert_allclose(np.asarray(hn), np.asarray(ref),
                               rtol=1e-5, atol=1e-5)

    # Also exercise the single-step (decode) path.
    h1 = jax.block_until_ready(model.step_forward(x[:, 0, :], h0))
    np.testing.assert_allclose(np.asarray(h1), np.asarray(ref[:, 0, :]),
                               rtol=1e-5, atol=1e-5)

    print("KERNEL_OK")
</pallas_src>

<mosaic_0001>
module attributes {stable_mosaic.version = 11 : i64} {
  func.func @_rnn_fused_kernel(%arg0: i32, %arg1: i32, %arg2: memref<8x8x128xf32, #tpu.memory_space<vmem>>, %arg3: memref<8x128xf32, #tpu.memory_space<vmem>>, %arg4: memref<128x128xf32, #tpu.memory_space<vmem>>, %arg5: memref<128x128xf32, #tpu.memory_space<vmem>>, %arg6: memref<1x128xf32, #tpu.memory_space<vmem>>, %arg7: memref<8x8x128xf32, #tpu.memory_space<vmem>>, %arg8: memref<8x128xf32, #tpu.memory_space<vmem>>, %arg9: memref<8x8x128xf32, #tpu.memory_space<vmem>>) attributes {dimension_semantics = [#tpu.dimension_semantics<parallel>, #tpu.dimension_semantics<arbitrary>], iteration_bounds = array<i64: 1, 1>, scalar_prefetch = 0 : i64, scratch_operands = 2 : i64, tpu.core_type = #tpu.core_type<tc>, window_params = [{transform_indices = @transform_0, window_bounds = array<i64: 8, 8, 128>}, {transform_indices = @transform_1, window_bounds = array<i64: 8, 128>}, {pipeline_mode = #tpu.pipeline_mode<synchronous>, transform_indices = @transform_2, window_bounds = array<i64: 128, 128>}, {pipeline_mode = #tpu.pipeline_mode<synchronous>, transform_indices = @transform_3, window_bounds = array<i64: 128, 128>}, {pipeline_mode = #tpu.pipeline_mode<synchronous>, transform_indices = @transform_4, window_bounds = array<i64: 1, 128>}, {transform_indices = @transform_5, window_bounds = array<i64: 8, 8, 128>}]} {
    %c0_i32 = arith.constant 0 : i32
    %0 = arith.cmpi eq, %arg1, %c0_i32 : i32
    %1 = arith.extui %0 : i1 to i32
    %c0_i32_0 = arith.constant 0 : i32
    %2 = arith.cmpi ne, %1, %c0_i32_0 : i32
    scf.if %2 {
      %c0_65 = arith.constant 0 : index
      %c0_66 = arith.constant 0 : index
      %80 = vector.load %arg3[%c0_65, %c0_66] : memref<8x128xf32, #tpu.memory_space<vmem>>, vector<8x128xf32>
      %c0_67 = arith.constant 0 : index
      %c0_68 = arith.constant 0 : index
      %81 = vector.load %arg8[%c0_67, %c0_68] : memref<8x128xf32, #tpu.memory_space<vmem>>, vector<8x128xf32>
      tpu.vector_store %arg8[%c0_67, %c0_68], %80 {strides = array<i32>} : memref<8x128xf32, #tpu.memory_space<vmem>>, vector<8x128xf32>,
    } else {
    }
    %c0 = arith.constant 0 : index
    %c0_1 = arith.constant 0 : index
    %3 = vector.load %arg4[%c0, %c0_1] : memref<128x128xf32, #tpu.memory_space<vmem>>, vector<128x128xf32>
    %c0_2 = arith.constant 0 : index
    %c0_3 = arith.constant 0 : index
    %4 = vector.load %arg5[%c0_2, %c0_3] : memref<128x128xf32, #tpu.memory_space<vmem>>, vector<128x128xf32>
    %c0_4 = arith.constant 0 : index
    %c0_5 = arith.constant 0 : index
    %5 = vector.load %arg6[%c0_4, %c0_5] : memref<1x128xf32, #tpu.memory_space<vmem>>, vector<1x128xf32>
    %c0_6 = arith.constant 0 : index
    %c0_7 = arith.constant 0 : index
    %c0_8 = arith.constant 0 : index
    %6 = vector.load %arg2[%c0_6, %c0_7, %c0_8] : memref<8x8x128xf32, #tpu.memory_space<vmem>>, vector<8x8x128xf32>
    %7 = vector.shape_cast %6 : vector<8x8x128xf32> to vector<64x128xf32>
    %cst = arith.constant dense<0.000000e+00> : vector<64x128xf32>
    %8 = tpu.matmul %7, %3, %cst {dimension_numbers = #tpu.dot_dimension_numbers<[1], [0], [0], [1], [0, 0, 1, 1], [], []>, precision = #tpu.contract_precision<fp32>} : vector<64x128xf32>, vector<128x128xf32>, vector<64x128xf32> -> vector<64x128xf32>
    %9 = vector.shape_cast %8 : vector<64x128xf32> to vector<8x8x128xf32>
    %10 = vector.shape_cast %5 : vector<1x128xf32> to vector<1x1x128xf32>
    %11 = vector.broadcast %10 : vector<1x1x128xf32> to vector<8x8x128xf32>
    %12 = arith.addf %9, %11 : vector<8x8x128xf32>
    %c0_9 = arith.constant 0 : index
    %c0_10 = arith.constant 0 : index
    %c0_11 = arith.constant 0 : index
    %13 = vector.load %arg9[%c0_9, %c0_10, %c0_11] : memref<8x8x128xf32, #tpu.memory_space<vmem>>, vector<8x8x128xf32>
    tpu.vector_store %arg9[%c0_9, %c0_10, %c0_11], %12 {strides = array<i32>} : memref<8x8x128xf32, #tpu.memory_space<vmem>>, vector<8x8x128xf32>,
    %c0_12 = arith.constant 0 : index
    %c0_13 = arith.constant 0 : index
    %14 = vector.load %arg8[%c0_12, %c0_13] : memref<8x128xf32, #tpu.memory_space<vmem>>, vector<8x128xf32>
    %c0_14 = arith.constant 0 : index
    %c0_15 = arith.constant 0 : index
    %c0_16 = arith.constant 0 : index
    %15 = vector.load %arg9[%c0_14, %c0_15, %c0_16] : memref<8x8x128xf32, #tpu.memory_space<vmem>>, vector<8x1x128xf32>
    %16 = vector.shape_cast %15 : vector<8x1x128xf32> to vector<8x128xf32>
    %cst_17 = arith.constant dense<0.000000e+00> : vector<8x128xf32>
    %17 = tpu.matmul %14, %4, %cst_17 {dimension_numbers = #tpu.dot_dimension_numbers<[1], [0], [0], [1], [0, 0, 1, 1], [], []>, precision = #tpu.contract_precision<fp32>} : vector<8x128xf32>, vector<128x128xf32>, vector<8x128xf32> -> vector<8x128xf32>
    %18 = arith.addf %16, %17 : vector<8x128xf32>
    %19 = math.tanh %18 : vector<8x128xf32>
    %c0_18 = arith.constant 0 : index
    %c0_19 = arith.constant 0 : index
    %c0_20 = arith.constant 0 : index
    %20 = vector.load %arg7[%c0_18, %c0_19, %c0_20] : memref<8x8x128xf32, #tpu.memory_space<vmem>>, vector<8x1x128xf32>
    %21 = vector.shape_cast %20 : vector<8x1x128xf32> to vector<8x128xf32>
    %22 = vector.shape_cast %19 : vector<8x128xf32> to vector<8x1x128xf32>
    tpu.vector_store %arg7[%c0_18, %c0_19, %c0_20], %22 {strides = array<i32>} : memref<8x8x128xf32, #tpu.memory_space<vmem>>, vector<8x1x128xf32>,
    %c0_21 = arith.constant 0 : index
    %c1 = arith.constant 1 : index
    %c0_22 = arith.constant 0 : index
    %23 = vector.load %arg9[%c0_21, %c1, %c0_22] : memref<8x8x128xf32, #tpu.memory_space<vmem>>, vector<8x1x128xf32>
    %24 = vector.shape_cast %23 : vector<8x1x128xf32> to vector<8x128xf32>
    %cst_23 = arith.constant dense<0.000000e+00> : vector<8x128xf32>
    %25 = tpu.matmul %19, %4, %cst_23 {dimension_numbers = #tpu.dot_dimension_numbers<[1], [0], [0], [1], [0, 0, 1, 1], [], []>, precision = #tpu.contract_precision<fp32>} : vector<8x128xf32>, vector<128x128xf32>, vector<8x128xf32> -> vector<8x128xf32>
    %26 = arith.addf %24, %25 : vector<8x128xf32>
    %27 = math.tanh %26 : vector<8x128xf32>
    %c0_24 = arith.constant 0 : index
    %c1_25 = arith.constant 1 : index
    %c0_26 = arith.constant 0 : index
    %28 = vector.load %arg7[%c0_24, %c1_25, %c0_26] : memref<8x8x128xf32, #tpu.memory_space<vmem>>, vector<8x1x128xf32>
    %29 = vector.shape_cast %28 : vector<8x1x128xf32> to vector<8x128xf32>
    %30 = vector.shape_cast %27 : vector<8x128xf32> to vector<8x1x128xf32>
    tpu.vector_store %arg7[%c0_24, %c1_25, %c0_26], %30 {strides = array<i32>} : memref<8x8x128xf32, #tpu.memory_space<vmem>>, vector<8x1x128xf32>,
    %c0_27 = arith.constant 0 : index
    %c2 = arith.constant 2 : index
    %c0_28 = arith.constant 0 : index
    %31 = vector.load %arg9[%c0_27, %c2, %c0_28] : memref<8x8x128xf32, #tpu.memory_space<vmem>>, vector<8x1x128xf32>
    %32 = vector.shape_cast %31 : vector<8x1x128xf32> to vector<8x128xf32>
    %cst_29 = arith.constant dense<0.000000e+00> : vector<8x128xf32>
    %33 = tpu.matmul %27, %4, %cst_29 {dimension_numbers = #tpu.dot_dimension_numbers<[1], [0], [0], [1], [0, 0, 1, 1], [], []>, precision = #tpu.contract_precision<fp32>} : vector<8x128xf32>, vector<128x128xf32>, vector<8x128xf32> -> vector<8x128xf32>
    %34 = arith.addf %32, %33 : vector<8x128xf32>
    %35 = math.tanh %34 : vector<8x128xf32>
    %c0_30 = arith.constant 0 : index
    %c2_31 = arith.constant 2 : index
    %c0_32 = arith.constant 0 : index
    %36 = vector.load %arg7[%c0_30, %c2_31, %c0_32] : memref<8x8x128xf32, #tpu.memory_space<vmem>>, vector<8x1x128xf32>
    %37 = vector.shape_cast %36 : vector<8x1x128xf32> to vector<8x128xf32>
    %38 = vector.shape_cast %35 : vector<8x128xf32> to vector<8x1x128xf32>
    tpu.vector_store %arg7[%c0_30, %c2_31, %c0_32], %38 {strides = array<i32>} : memref<8x8x128xf32, #tpu.memory_space<vmem>>, vector<8x1x128xf32>,
    %c0_33 = arith.constant 0 : index
    %c3 = arith.constant 3 : index
    %c0_34 = arith.constant 0 : index
    %39 = vector.load %arg9[%c0_33, %c3, %c0_34] : memref<8x8x128xf32, #tpu.memory_space<vmem>>, vector<8x1x128xf32>
    %40 = vector.shape_cast %39 : vector<8x1x128xf32> to vector<8x128xf32>
    %cst_35 = arith.constant dense<0.000000e+00> : vector<8x128xf32>
    %41 = tpu.matmul %35, %4, %cst_35 {dimension_numbers = #tpu.dot_dimension_numbers<[1], [0], [0], [1], [0, 0, 1, 1], [], []>, precision = #tpu.contract_precision<fp32>} : vector<8x128xf32>, vector<128x128xf32>, vector<8x128xf32> -> vector<8x128xf32>
    %42 = arith.addf %40, %41 : vector<8x128xf32>
    %43 = math.tanh %42 : vector<8x128xf32>
    %c0_36 = arith.constant 0 : index
    %c3_37 = arith.constant 3 : index
    %c0_38 = arith.constant 0 : index
    %44 = vector.load %arg7[%c0_36, %c3_37, %c0_38] : memref<8x8x128xf32, #tpu.memory_space<vmem>>, vector<8x1x128xf32>
    %45 = vector.shape_cast %44 : vector<8x1x128xf32> to vector<8x128xf32>
    %46 = vector.shape_cast %43 : vector<8x128xf32> to vector<8x1x128xf32>
    tpu.vector_store %arg7[%c0_36, %c3_37, %c0_38], %46 {strides = array<i32>} : memref<8x8x128xf32, #tpu.memory_space<vmem>>, vector<8x1x128xf32>,
    %c0_39 = arith.constant 0 : index
    %c4 = arith.constant 4 : index
    %c0_40 = arith.constant 0 : index
    %47 = vector.load %arg9[%c0_39, %c4, %c0_40] : memref<8x8x128xf32, #tpu.memory_space<vmem>>, vector<8x1x128xf32>
    %48 = vector.shape_cast %47 : vector<8x1x128xf32> to vector<8x128xf32>
    %cst_41 = arith.constant dense<0.000000e+00> : vector<8x128xf32>
    %49 = tpu.matmul %43, %4, %cst_41 {dimension_numbers = #tpu.dot_dimension_numbers<[1], [0], [0], [1], [0, 0, 1, 1], [], []>, precision = #tpu.contract_precision<fp32>} : vector<8x128xf32>, vector<128x128xf32>, vector<8x128xf32> -> vector<8x128xf32>
    %50 = arith.addf %48, %49 : vector<8x128xf32>
    %51 = math.tanh %50 : vector<8x128xf32>
    %c0_42 = arith.constant 0 : index
    %c4_43 = arith.constant 4 : index
    %c0_44 = arith.constant 0 : index
    %52 = vector.load %arg7[%c0_42, %c4_43, %c0_44] : memref<8x8x128xf32, #tpu.memory_space<vmem>>, vector<8x1x128xf32>
    %53 = vector.shape_cast %52 : vector<8x1x128xf32> to vector<8x128xf32>
    %54 = vector.shape_cast %51 : vector<8x128xf32> to vector<8x1x128xf32>
    tpu.vector_store %arg7[%c0_42, %c4_43, %c0_44], %54 {strides = array<i32>} : memref<8x8x128xf32, #tpu.memory_space<vmem>>, vector<8x1x128xf32>,
    %c0_45 = arith.constant 0 : index
    %c5 = arith.constant 5 : index
    %c0_46 = arith.constant 0 : index
    %55 = vector.load %arg9[%c0_45, %c5, %c0_46] : memref<8x8x128xf32, #tpu.memory_space<vmem>>, vector<8x1x128xf32>
    %56 = vector.shape_cast %55 : vector<8x1x128xf32> to vector<8x128xf32>
    %cst_47 = arith.constant dense<0.000000e+00> : vector<8x128xf32>
    %57 = tpu.matmul %51, %4, %cst_47 {dimension_numbers = #tpu.dot_dimension_numbers<[1], [0], [0], [1], [0, 0, 1, 1], [], []>, precision = #tpu.contract_precision<fp32>} : vector<8x128xf32>, vector<128x128xf32>, vector<8x128xf32> -> vector<8x128xf32>
    %58 = arith.addf %56, %57 : vector<8x128xf32>
    %59 = math.tanh %58 : vector<8x128xf32>
    %c0_48 = arith.constant 0 : index
    %c5_49 = arith.constant 5 : index
    %c0_50 = arith.constant 0 : index
    %60 = vector.load %arg7[%c0_48, %c5_49, %c0_50] : memref<8x8x128xf32, #tpu.memory_space<vmem>>, vector<8x1x128xf32>
    %61 = vector.shape_cast %60 : vector<8x1x128xf32> to vector<8x128xf32>
    %62 = vector.shape_cast %59 : vector<8x128xf32> to vector<8x1x128xf32>
    tpu.vector_store %arg7[%c0_48, %c5_49, %c0_50], %62 {strides = array<i32>} : memref<8x8x128xf32, #tpu.memory_space<vmem>>, vector<8x1x128xf32>,
    %c0_51 = arith.constant 0 : index
    %c6 = arith.constant 6 : index
    %c0_52 = arith.constant 0 : index
    %63 = vector.load %arg9[%c0_51, %c6, %c0_52] : memref<8x8x128xf32, #tpu.memory_space<vmem>>, vector<8x1x128xf32>
    %64 = vector.shape_cast %63 : vector<8x1x128xf32> to vector<8x128xf32>
    %cst_53 = arith.constant dense<0.000000e+00> : vector<8x128xf32>
    %65 = tpu.matmul %59, %4, %cst_53 {dimension_numbers = #tpu.dot_dimension_numbers<[1], [0], [0], [1], [0, 0, 1, 1], [], []>, precision = #tpu.contract_precision<fp32>} : vector<8x128xf32>, vector<128x128xf32>, vector<8x128xf32> -> vector<8x128xf32>
    %66 = arith.addf %64, %65 : vector<8x128xf32>
    %67 = math.tanh %66 : vector<8x128xf32>
    %c0_54 = arith.constant 0 : index
    %c6_55 = arith.constant 6 : index
    %c0_56 = arith.constant 0 : index
    %68 = vector.load %arg7[%c0_54, %c6_55, %c0_56] : memref<8x8x128xf32, #tpu.memory_space<vmem>>, vector<8x1x128xf32>
    %69 = vector.shape_cast %68 : vector<8x1x128xf32> to vector<8x128xf32>
    %70 = vector.shape_cast %67 : vector<8x128xf32> to vector<8x1x128xf32>
    tpu.vector_store %arg7[%c0_54, %c6_55, %c0_56], %70 {strides = array<i32>} : memref<8x8x128xf32, #tpu.memory_space<vmem>>, vector<8x1x128xf32>,
    %c0_57 = arith.constant 0 : index
    %c7 = arith.constant 7 : index
    %c0_58 = arith.constant 0 : index
    %71 = vector.load %arg9[%c0_57, %c7, %c0_58] : memref<8x8x128xf32, #tpu.memory_space<vmem>>, vector<8x1x128xf32>
    %72 = vector.shape_cast %71 : vector<8x1x128xf32> to vector<8x128xf32>
    %cst_59 = arith.constant dense<0.000000e+00> : vector<8x128xf32>
    %73 = tpu.matmul %67, %4, %cst_59 {dimension_numbers = #tpu.dot_dimension_numbers<[1], [0], [0], [1], [0, 0, 1, 1], [], []>, precision = #tpu.contract_precision<fp32>} : vector<8x128xf32>, vector<128x128xf32>, vector<8x128xf32> -> vector<8x128xf32>
    %74 = arith.addf %72, %73 : vector<8x128xf32>
    %75 = math.tanh %74 : vector<8x128xf32>
    %c0_60 = arith.constant 0 : index
    %c7_61 = arith.constant 7 : index
    %c0_62 = arith.constant 0 : index
    %76 = vector.load %arg7[%c0_60, %c7_61, %c0_62] : memref<8x8x128xf32, #tpu.memory_space<vmem>>, vector<8x1x128xf32>
    %77 = vector.shape_cast %76 : vector<8x1x128xf32> to vector<8x128xf32>
    %78 = vector.shape_cast %75 : vector<8x128xf32> to vector<8x1x128xf32>
    tpu.vector_store %arg7[%c0_60, %c7_61, %c0_62], %78 {strides = array<i32>} : memref<8x8x128xf32, #tpu.memory_space<vmem>>, vector<8x1x128xf32>,
    %c0_63 = arith.constant 0 : index
    %c0_64 = arith.constant 0 : index
    %79 = vector.load %arg8[%c0_63, %c0_64] : memref<8x128xf32, #tpu.memory_space<vmem>>, vector<8x128xf32>
    tpu.vector_store %arg8[%c0_63, %c0_64], %75 {strides = array<i32>} : memref<8x128xf32, #tpu.memory_space<vmem>>, vector<8x128xf32>,
    return
  }
  func.func @transform_0(%arg0: i32, %arg1: i32) -> (i32, i32, i32) {
    %c0_i32 = arith.constant 0 : i32
    %c0_i32_0 = arith.constant 0 : i32
    return %arg0, %arg1, %c0_i32 : i32, i32, i32
  }
  func.func @transform_1(%arg0: i32, %arg1: i32) -> (i32, i32) {
    %c0_i32 = arith.constant 0 : i32
    %c0_i32_0 = arith.constant 0 : i32
    return %arg0, %c0_i32 : i32, i32
  }
  func.func @transform_2(%arg0: i32, %arg1: i32) -> (i32, i32) {
    %c0_i32 = arith.constant 0 : i32
    %c0_i32_0 = arith.constant 0 : i32
    %c0_i32_1 = arith.constant 0 : i32
    return %c0_i32, %c0_i32_0 : i32, i32
  }
  func.func @transform_3(%arg0: i32, %arg1: i32) -> (i32, i32) {
    %c0_i32 = arith.constant 0 : i32
    %c0_i32_0 = arith.constant 0 : i32
    %c0_i32_1 = arith.constant 0 : i32
    return %c0_i32, %c0_i32_0 : i32, i32
  }
  func.func @transform_4(%arg0: i32, %arg1: i32) -> (i32, i32) {
    %c0_i32 = arith.constant 0 : i32
    %c0_i32_0 = arith.constant 0 : i32
    %c0_i32_1 = arith.constant 0 : i32
    return %c0_i32, %c0_i32_0 : i32, i32
  }
  func.func @transform_5(%arg0: i32, %arg1: i32) -> (i32, i32, i32) {
    %c0_i32 = arith.constant 0 : i32
    %c0_i32_0 = arith.constant 0 : i32
    return %arg0, %arg1, %c0_i32 : i32, i32, i32
  }
}

</mosaic_0001>

<bundles_post_ra>
// kernel: rnn_forward_pallas.1
= control target key start
LH: loop header
LB: loop body
LE: loop exit
PB: predicated region body
PF: predicated region fallthrough
CT: control target
= control target key end

     0   :  { %vm9776_vm0 = vmmov 0   ;;  %vm1738_vm1 = vcmask 1041409   ;;  %vm1741_vm2 = vcmask 1042434   ;;  %vm1744_vm3 = vcmask 1043459   ;;  %s12539_s2 = inlined_call_operand.vmem [shape: f32[128,128], index: 2, kind: input, shape index: {}]   ;;  %s12540_s0 = inlined_call_operand.vmem [shape: f32[8,8,128], index: 0, kind: input, shape index: {}]   ;;  %s12541_s3 = inlined_call_operand.vmem [shape: f32[128,128], index: 3, kind: input, shape index: {}]   ;;  %s12542_s1 = inlined_call_operand.vmem [shape: f32[8,128], index: 1, kind: input, shape index: {}]   ;;  %s12543_s4 = inlined_call_operand.vmem [shape: f32[1,128], index: 4, kind: input, shape index: {}]   ;;  %s12544_s5 = inlined_call_operand.vmem [shape: f32[8,8,128], index: 5, kind: output, shape index: {}]  }
   0x1   :  { %v41_v0 = vld [vmem:[%s12539_s2 + $0x78] sm:$0xff]  ;;  %v40_v1 = vld [vmem:[%s12539_s2 + $0x70] sm:$0xff]  ;;  %v39_v2 = vld [vmem:[%s12539_s2 + $0x68] sm:$0xff]  ;;  %vm1747_vm4 = vcmask 1044484   ;;  %vm1750_vm5 = vcmask 1045509   ;;  %vm1753_vm6 = vcmask 1046534  }
   0x2   :  { %v9816_v3 = vand.u32 4294901760, %v41_v0  ;;  %v9818_v4 = vand.u32 4294901760, %v40_v1  ;;  %v9820_v5 = vand.u32 4294901760, %v39_v2  ;;  %v38_v6 = vld [vmem:[%s12539_s2 + $0x60] sm:$0xff]  ;;  %v37_v7 = vld [vmem:[%s12539_s2 + $0x58] sm:$0xff]  ;;  %v36_v8 = vld [vmem:[%s12539_s2 + $0x50] sm:$0xff] }
   0x3   :  { %v9831_v9 = vand.u32 4294901760, %v38_v6  ;;  %v9833_v10 = vand.u32 4294901760, %v37_v7  ;;  %v9835_v11 = vand.u32 4294901760, %v36_v8  ;;  %v35_v12 = vld [vmem:[%s12539_s2 + $0x48] sm:$0xff]  ;;  %v34_v13 = vld [vmem:[%s12539_s2 + $0x40] sm:$0xff]  ;;  %v33_v18 = vld [vmem:[%s12539_s2 + $0x38] sm:$0xff] }
   0x4   :  { %7701 = vmatprep.subr.mxu0 %v9816_v3  ;;  %v9845_v14 = vsub.f32 %v41_v0, %v9816_v3  ;;  %v9848_v15 = vsub.f32 %v40_v1, %v9818_v4  ;;  %v9850_v16 = vand.u32 4294901760, %v35_v12  ;;  %v9853_v17 = vsub.f32 %v39_v2, %v9820_v5  ;;  %v32_v25 = vld [vmem:[%s12539_s2 + $0x30] sm:$0xff]  ;;  %v31_v35 = vld [vmem:[%s12539_s2 + $0x28] sm:$0xff]  ;;  %v30_v40 = vld [vmem:[%s12539_s2 + $0x20] sm:$0xff] }
   0x5   :  { %7702 = vmatpush3.msra.mxu0 %v9816_v3  ;;  %v9860_v19 = vsub.f32 %v38_v6, %v9831_v9  ;;  %v9863_v20 = vsub.f32 %v37_v7, %v9833_v10  ;;  %v9875_v24 = vand.u32 4294901760, %v34_v13  ;;  %v9884_v27 = vand.u32 4294901760, %v33_v18  ;;  %v29_v48 = vld [vmem:[%s12539_s2 + $0x18] sm:$0xff]  ;;  %v59_v49 = vld [vmem:[%s12540_s0] sm:$0xff]  ;;  %v60_v54 = vld [vmem:[%s12540_s0 + $0x8] sm:$0xff] }
   0x6   :  { %7703 = vmatprep.subr.mxu0 %v9818_v4  ;;  %v9867_v21 = vand.u32 4294901760, %v9845_v14  ;;  %v9870_v22 = vand.u32 4294901760, %v9848_v15  ;;  %v9873_v23 = vand.u32 4294901760, %v9853_v17  ;;  %v9890_v29 = vsub.f32 %v36_v8, %v9835_v11  ;;  %v28_v59 = vld [vmem:[%s12539_s2 + $0x10] sm:$0xff]  ;;  %v27_v2 = vld [vmem:[%s12539_s2 + $0x8] sm:$0xff] }
   0x7   :  { %7704 = vmatpush3.msra.mxu0 %v9818_v4  ;;  %v9882_v26 = vand.u32 4294901760, %v9860_v19  ;;  %v9887_v28 = vand.u32 4294901760, %v9863_v20  ;;  %v9900_v33 = vsub.f32 %v35_v12, %v9850_v16  ;;  %v9903_v34 = vand.u32 4294901760, %v32_v25 }
   0x8   :  { %7705 = vmatprep.subr.mxu0 %v9820_v5  ;;  %v232_v30 = vsub.f32 %v9845_v14, %v9867_v21  ;;  %v239_v31 = vsub.f32 %v9848_v15, %v9870_v22  ;;  %v246_v32 = vsub.f32 %v9853_v17, %v9873_v23  ;;  %v9912_v39 = vand.u32 4294901760, %v9890_v29 }
   0x9   :  { %7706 = vmatpush3.msra.mxu0 %v9820_v5  ;;  %v253_v38 = vsub.f32 %v9860_v19, %v9882_v26  ;;  %v260_v41 = vsub.f32 %v9863_v20, %v9887_v28  ;;  %v9921_v42 = vand.u32 4294901760, %v9900_v33  ;;  %v9924_v43 = vsub.f32 %v34_v13, %v9875_v24 }
   0xa   :  { %7707 = vmatprep.subr.mxu0 %v9831_v9  ;;  %v233_v36 = vand.u32 4294901760, %v232_v30  ;;  %v240_v37 = vand.u32 4294901760, %v239_v31  ;;  %v247_v44 = vand.u32 4294901760, %v246_v32  ;;  %v9927_v45 = vand.u32 4294901760, %v31_v35 }
   0xb   :  { %7708 = vmatpush3.msra.mxu0 %v9831_v9  ;;  %v9930_v46 = vsub.f32 %v33_v18, %v9884_v27  ;;  %v9933_v47 = vand.u32 4294901760, %v30_v40  ;;  %v254_v50 = vand.u32 4294901760, %v253_v38  ;;  %v267_v51 = vsub.f32 %v9890_v29, %v9912_v39  ;;  %v26_v18 = vld [vmem:[%s12539_s2] sm:$0xff] }
   0xc   :  { %7709 = vmatprep.subr.mxu0 %v9833_v10  ;;  %7745 = vmatprep.subr.mxu1 %v233_v36  ;;  %v9945_v52 = vand.u32 4294901760, %v9924_v43  ;;  %v9948_v53 = vsub.f32 %v32_v25, %v9903_v34  ;;  %v261_v55 = vand.u32 4294901760, %v260_v41  ;;  %v274_v56 = vsub.f32 %v9900_v33, %v9921_v42 }
   0xd   :  { %7710 = vmatpush3.msra.mxu0 %v9833_v10  ;;  %7746 = vmatpush3.msra.mxu1 %v233_v36  ;;  %v9957_v57 = vand.u32 4294901760, %v29_v48  ;;  %v9960_v58 = vand.u32 4294901760, %v9930_v46  ;;  %v9966_v60 = vsub.f32 %v31_v35, %v9927_v45  ;;  %v9968_v61 = vand.u32 4294901760, %v59_v49 }
   0xe   :  { %7711 = vmatprep.subr.mxu0 %v9835_v11  ;;  %7747 = vmatprep.subr.mxu1 %v240_v37  ;;  %v9971_v62 = vand.u32 4294901760, %v60_v54  ;;  %v268_v63 = vand.u32 4294901760, %v267_v51  ;;  %v281_v0 = vsub.f32 %v9924_v43, %v9945_v52  ;;  %v9977_v1 = vand.u32 4294901760, %v9948_v53 }
   0xf   :  { %7712 = vmatpush3.msra.mxu0 %v9835_v11  ;;  %7748 = vmatpush3.msra.mxu1 %v240_v37  ;;  %v9983_v6 = vsub.f32 %v30_v40, %v9933_v47  ;;  %v275_v7 = vand.u32 4294901760, %v274_v56  ;;  %v9986_v8 = vand.u32 4294901760, %v28_v59  ;;  %v288_v12 = vsub.f32 %v9930_v46, %v9960_v58 }
  0x10   :  { %7713 = vmatprep.subr.mxu0 %v9850_v16  ;;  %7749 = vmatprep.subr.mxu1 %v247_v44  ;;  %12651 = vst [vmem:[#allocation4_spill] sm:$0xff] %v9971_v62  ;;  %v9992_v13 = vand.u32 4294901760, %v9966_v60  ;;  %v9998_v25 = vsub.f32 %v59_v49, %v9968_v61  ;;  %v10001_v30 = vsub.f32 %v29_v48, %v9957_v57  ;;  %v10004_v31 = vand.u32 4294901760, %v27_v2 }
  0x11   :  { %7714 = vmatpush3.msra.mxu0 %v9850_v16  ;;  %7750 = vmatpush3.msra.mxu1 %v247_v44  ;;  %v10007_v32 = vsub.f32 %v60_v54, %v9971_v62  ;;  %v282_v35 = vand.u32 4294901760, %v281_v0  ;;  %v295_v36 = vsub.f32 %v9948_v53, %v9977_v1  ;;  %v10013_v37 = vand.u32 4294901760, %v9983_v6 }
  0x12   :  { %7715 = vmatprep.subr.mxu0 %v9875_v24  ;;  %7751 = vmatprep.subr.mxu1 %v254_v50  ;;  %v10016_v38 = vand.u32 4294901760, %v26_v18  ;;  %v10019_v40 = vsub.f32 %v28_v59, %v9986_v8  ;;  %v289_v41 = vand.u32 4294901760, %v288_v12  ;;  %v302_v44 = vsub.f32 %v9966_v60, %v9992_v13 }
  0x13   :  { %7716 = vmatpush3.msra.mxu0 %v9875_v24  ;;  %7752 = vmatpush3.msra.mxu1 %v254_v50  ;;  %v12546_v48 = vand.u32 4294901760, %v9998_v25  ;;  %v10026_v49 = vand.u32 4294901760, %v10001_v30  ;;  %v12545_v50 = vand.u32 4294901760, %v10007_v32  ;;  %v10031_v51 = vsub.f32 %v27_v2, %v10004_v31 }
  0x14   :  { %7717 = vmatprep.subr.mxu0 %v9884_v27  ;;  %7753 = vmatprep.subr.mxu1 %v261_v55  ;;  %v296_v54 = vand.u32 4294901760, %v295_v36  ;;  %v10038_v56 = vand.u32 4294901760, %v10019_v40  ;;  %v10041_v59 = vsub.f32 %v26_v18, %v10016_v38  ;;  %vm1756_vm7 = vcmask 1047559  }
  0x15   :  { %7718 = vmatpush3.msra.mxu0 %v9884_v27  ;;  %7754 = vmatpush3.msra.mxu1 %v261_v55  ;;  %v309_v55 = vsub.f32 %v9983_v6, %v10013_v37  ;;  %v151_v0 = vsub.f32 %v9998_v25, %v12546_v48  ;;  %v316_v2 = vsub.f32 %v10001_v30, %v10026_v49  ;;  %v10054_v12 = vand.u32 4294901760, %v10031_v51 }
  0x16   :  { %7719 = vmatprep.subr.mxu0 %v9903_v34  ;;  %7755 = vmatprep.subr.mxu1 %v268_v63  ;;  %v10061_v36 = vand.u32 4294901760, %v10041_v59 }
  0x17   :  { %7720 = vmatpush3.msra.mxu0 %v9903_v34  ;;  %7756 = vmatpush3.msra.mxu1 %v268_v63  ;;  %v303_v63 = vand.u32 4294901760, %v302_v44  ;;  %v310_v18 = vand.u32 4294901760, %v309_v55  ;;  %v317_v44 = vand.u32 4294901760, %v316_v2  ;;  %v330_v55 = vsub.f32 %v10031_v51, %v10054_v12 }
  0x18   :  { %7721 = vmatprep.subr.mxu0 %v9927_v45  ;;  %7757 = vmatprep.subr.mxu1 %v275_v7 }
  0x19   :  { %7722 = vmatpush3.msra.mxu0 %v9927_v45  ;;  %7758 = vmatpush3.msra.mxu1 %v275_v7  ;;  %v161_v7 = vsub.f32 %v10007_v32, %v12545_v50  ;;  %v331_v2 = vand.u32 4294901760, %v330_v55 }
  0x1a   :  { %7723 = vmatprep.subr.mxu0 %v9933_v47  ;;  %7759 = vmatprep.subr.mxu1 %v282_v35 }
  0x1b   :  { %7724 = vmatpush3.msra.mxu0 %v9933_v47  ;;  %7760 = vmatpush3.msra.mxu1 %v282_v35  ;;  %v323_v35 = vsub.f32 %v10019_v40, %v10038_v56  ;;  %v162_v50 = vand.u32 4294901760, %v161_v7 }
  0x1c   :  { %7725 = vmatprep.subr.mxu0 %v9957_v57  ;;  %7761 = vmatprep.subr.mxu1 %v289_v41 }
  0x1d   :  { %7726 = vmatpush3.msra.mxu0 %v9957_v57  ;;  %7762 = vmatpush3.msra.mxu1 %v289_v41  ;;  %v152_v41 = vand.u32 4294901760, %v151_v0  ;;  %v324_v48 = vand.u32 4294901760, %v323_v35  ;;  %v337_v0 = vsub.f32 %v10041_v59, %v10061_v36 }
  0x1e   :  { %7727 = vmatprep.subr.mxu0 %v9986_v8  ;;  %7763 = vmatprep.subr.mxu1 %v296_v54 }
  0x1f   :  { %7728 = vmatpush3.msra.mxu0 %v9986_v8  ;;  %7764 = vmatpush3.msra.mxu1 %v296_v54  ;;  %v61_v54 = vld [vmem:[%s12540_s0 + $0x10] sm:$0xff]  ;;  %v338_v35 = vand.u32 4294901760, %v337_v0 }
  0x20   :  { %7729 = vmatprep.subr.mxu0 %v10004_v31  ;;  %7765 = vmatprep.subr.mxu1 %v303_v63  ;;  %v10078_v7 = vand.u32 4294901760, %v61_v54 }
  0x21   :  { %7730 = vmatpush3.msra.mxu0 %v10004_v31  ;;  %7766 = vmatpush3.msra.mxu1 %v303_v63  ;;  %v62_v63 = vld [vmem:[%s12540_s0 + $0x18] sm:$0xff] }
  0x22   :  { %7731 = vmatprep.subr.mxu0 %v10016_v38  ;;  %7767 = vmatprep.subr.mxu1 %v310_v18 }
  0x23   :  { %7732 = vmatpush3.msra.mxu0 %v10016_v38  ;;  %7768 = vmatpush3.msra.mxu1 %v310_v18  ;;  %v10081_v18 = vand.u32 4294901760, %v62_v63 }
  0x24   :  { %7733 = vmatprep.mubr.f32.mxu0 %v152_v41  ;;  %7769 = vmatprep.subr.mxu1 %v317_v44  ;;  %v63_v41 = vld [vmem:[%s12540_s0 + $0x20] sm:$0xff] }
  0x25   :  { %7789 = vmatprep.subr.mxu0 %v9845_v14  ;;  %7734 = vmatmul.mubr.f32.vlgmr.msra.gmra.mxu0 %v162_v50  ;;  %v64_v50 = vld [vmem:[%s12540_s0 + $0x28] sm:$0xff]  ;;  %v10099_v55 = vand.u32 4294901760, %v63_v41 }
  0x26   :  { %7770 = vmatpush3.msra.mxu1 %v317_v44  ;;  %7790 = vmatpush3.msra.mxu0 %v9845_v14  ;;  %v10093_v14 = vsub.f32 %v61_v54, %v10078_v7  ;;  %v10097_v44 = vsub.f32 %v62_v63, %v10081_v18 }
  0x27   :  { %7771 = vmatprep.subr.mxu1 %v324_v48  ;;  %7791 = vmatprep.subr.mxu0 %v9848_v15  ;;  %v10115_v0 = vsub.f32 %v63_v41, %v10099_v55 }
  0x28   :  { %7772 = vmatpush3.msra.mxu1 %v324_v48  ;;  %7792 = vmatpush3.msra.mxu0 %v9848_v15  ;;  %v10102_v15 = vand.u32 4294901760, %v64_v50  ;;  %v12547_v48 = vand.u32 4294901760, %v10093_v14  ;;  %v12548_v54 = vand.u32 4294901760, %v10097_v44 }
  0x29   :  { %7773 = vmatprep.subr.mxu1 %v331_v2  ;;  %7793 = vmatprep.subr.mxu0 %v9853_v17 }
  0x2a   :  { %7774 = vmatpush3.msra.mxu1 %v331_v2  ;;  %7794 = vmatpush3.msra.mxu0 %v9853_v17  ;;  %v65_v17 = vld [vmem:[%s12540_s0 + $0x30] sm:$0xff]  ;;  %v10123_v63 = vsub.f32 %v64_v50, %v10102_v15  ;;  %v181_v41 = vsub.f32 %v10097_v44, %v12548_v54 }
  0x2b   :  { %7775 = vmatprep.subr.mxu1 %v338_v35  ;;  %7795 = vmatprep.subr.mxu0 %v9860_v19  ;;  %v10127_v2 = vand.u32 4294901760, %v65_v17 }
  0x2c   :  { %7776 = vmatpush3.msra.mxu1 %v338_v35  ;;  %7777 = vmatprep.mubr.f32.mxu1 %v9968_v61  ;;  %v171_v35 = vsub.f32 %v10093_v14, %v12547_v48 }
  0x2d   :  { %7796 = vmatpush3.msra.mxu0 %v9860_v19  ;;  %7778 = vmatmul.mubr.f32.vlgmr.msra.gmra.mxu1 %v9971_v62  ;;  %v66_v19 = vld [vmem:[%s12540_s0 + $0x38] sm:$0xff]  ;;  %v10148_v48 = vsub.f32 %v65_v17, %v10127_v2 }
  0x2e   :  { %7797 = vmatprep.subr.mxu0 %v9863_v20  ;;  %7833 = vmatprep.subr.mxu1 %v9816_v3  ;;  %v172_v54 = vand.u32 4294901760, %v171_v35 }
  0x2f   :  { %7798 = vmatpush3.msra.mxu0 %v9863_v20  ;;  %7834 = vmatpush3.msra.mxu1 %v9816_v3  ;;  %v10134_v20 = vand.u32 4294901760, %v66_v19 }
  0x30   :  { %7799 = vmatprep.subr.mxu0 %v9890_v29  ;;  %7835 = vmatprep.subr.mxu1 %v9818_v4 }
  0x31   :  { %7800 = vmatpush3.msra.mxu0 %v9890_v29  ;;  %7836 = vmatpush3.msra.mxu1 %v9818_v4  ;;  %v10153_v50 = vsub.f32 %v66_v19, %v10134_v20  ;;  %v12652_v29 = vand.u32 4294901760, %v10115_v0  ;;  %v210_v19 = vand.u32 4294901760, %v10148_v48 }
  0x32   :  { %7801 = vmatprep.subr.mxu0 %v9900_v33  ;;  %7837 = vmatprep.subr.mxu1 %v9820_v5 }
  0x33   :  { %7802 = vmatpush3.msra.mxu0 %v9900_v33  ;;  %7838 = vmatpush3.msra.mxu1 %v9820_v5  ;;  %v182_v33 = vand.u32 4294901760, %v181_v41  ;;  %v191_v62 = vsub.f32 %v10115_v0, %v12652_v29  ;;  %v220_v35 = vand.u32 4294901760, %v10153_v50 }
  0x34   :  { %7803 = vmatprep.subr.mxu0 %v9924_v43  ;;  %7839 = vmatprep.subr.mxu1 %v9831_v9 }
  0x35   :  { %7804 = vmatpush3.msra.mxu0 %v9924_v43  ;;  %7840 = vmatpush3.msra.mxu1 %v9831_v9  ;;  %v12653_v43 = vand.u32 4294901760, %v10123_v63 }
  0x36   :  { %7805 = vmatprep.subr.mxu0 %v9930_v46  ;;  %7841 = vmatprep.subr.mxu1 %v9833_v10 }
  0x37   :  { %7806 = vmatpush3.msra.mxu0 %v9930_v46  ;;  %7842 = vmatpush3.msra.mxu1 %v9833_v10  ;;  %v201_v17 = vsub.f32 %v10123_v63, %v12653_v43  ;;  %v192_v46 = vand.u32 4294901760, %v191_v62 }
  0x38   :  { %7807 = vmatprep.subr.mxu0 %v9948_v53  ;;  %7843 = vmatprep.subr.mxu1 %v9835_v11 }
  0x39   :  { %7736 = vmatprep.mubr.f32.mxu0 %v172_v54  ;;  %7808 = vmatpush3.msra.mxu0 %v9948_v53  ;;  %v202_v41 = vand.u32 4294901760, %v201_v17  ;;  %v211_v54 = vsub.f32 %v10148_v48, %v210_v19  ;;  %v221_v53 = vsub.f32 %v10153_v50, %v220_v35 }
  0x3a   :  { %7844 = vmatpush3.msra.mxu1 %v9835_v11  ;;  %7737 = vmatmul.mubr.f32.gmra.mxu0 %v182_v33 }
  0x3b   :  { %7809 = vmatprep.subr.mxu0 %v9966_v60  ;;  %7845 = vmatprep.subr.mxu1 %v9850_v16  ;;  %v222_v62 = vand.u32 4294901760, %v221_v53  ;;  %v24_v53 = vld [vmem:[%s12542_s1] sm:$0xff] }
  0x3c   :  { %7810 = vmatpush3.msra.mxu0 %v9966_v60  ;;  %7846 = vmatpush3.msra.mxu1 %v9850_v16  ;;  %v212_v60 = vand.u32 4294901760, %v211_v54 }
  0x3d   :  { %7811 = vmatprep.subr.mxu0 %v9983_v6  ;;  %7847 = vmatprep.subr.mxu1 %v9875_v24 }
  0x3e   :  { %7739 = vmatprep.mubr.f32.mxu0 %v192_v46  ;;  %7812 = vmatpush3.msra.mxu0 %v9983_v6 }
  0x3f   :  { %7848 = vmatpush3.msra.mxu1 %v9875_v24  ;;  %7740 = vmatmul.mubr.f32.gmra.mxu0 %v202_v41 }
  0x40   :  { %7780 = vmatprep.mubr.f32.mxu1 %v10078_v7  ;;  %7813 = vmatprep.subr.mxu0 %v10001_v30 }
  0x41   :  { %7849 = vmatprep.subr.mxu1 %v9884_v27  ;;  %7781 = vmatmul.mubr.f32.gmra.mxu1 %v10081_v18 }
  0x42   :  { %7814 = vmatpush3.msra.mxu0 %v10001_v30  ;;  %7850 = vmatpush3.msra.mxu1 %v9884_v27 }
  0x43   :  { %7815 = vmatprep.subr.mxu0 %v10019_v40  ;;  %7851 = vmatprep.subr.mxu1 %v9903_v34 }
  0x44   :  { %7742 = vmatprep.mubr.f32.mxu0 %v212_v60  ;;  %7816 = vmatpush3.msra.mxu0 %v10019_v40  ;;  %v50_v40 = vld [vmem:[%s12541_s3 + $0x40] sm:$0xff] }
  0x45   :  { %7852 = vmatpush3.msra.mxu1 %v9903_v34  ;;  %7743 = vmatmul.mubr.f32.gmra.mxu0 %v222_v62 }
  0x46   :  { %7783 = vmatprep.mubr.f32.mxu1 %v10099_v55  ;;  %7817 = vmatprep.subr.mxu0 %v10031_v51 }
  0x47   :  { %7853 = vmatprep.subr.mxu1 %v9927_v45  ;;  %7784 = vmatmul.mubr.f32.gmra.mxu1 %v10102_v15 }
  0x48   :  { %7818 = vmatpush3.msra.mxu0 %v10031_v51  ;;  %7854 = vmatpush3.msra.mxu1 %v9927_v45 }
  0x49   :  { %7819 = vmatprep.subr.mxu0 %v10041_v59  ;;  %7855 = vmatprep.subr.mxu1 %v9933_v47 }
  0x4a   :  { %7820 = vmatpush3.msra.mxu0 %v10041_v59  ;;  %7821 = vmatprep.mubr.f32.mxu0 %v9998_v25  ;;  %v49_v59 = vld [vmem:[%s12541_s3 + $0x38] sm:$0xff] }
  0x4b   :  { %7856 = vmatpush3.msra.mxu1 %v9933_v47  ;;  %7786 = vmatprep.mubr.f32.mxu1 %v10127_v2 }
  0x4c   :  { %7822 = vmatmul.mubr.f32.vlgmr.msra.gmra.mxu0 %v10007_v32  ;;  %7857 = vmatprep.subr.mxu1 %v9957_v57 }
  0x4d   :  { %7877 = vmatprep.subr.mxu0 %v9867_v21  ;;  %7787 = vmatmul.mubr.f32.gmra.mxu1 %v10134_v20 }
  0x4e   :  { %7858 = vmatpush3.msra.mxu1 %v9957_v57  ;;  %7878 = vmatpush3.msra.mxu0 %v9867_v21  ;;  %v12654_v21 = vand.u32 4294901760, %v9998_v25 }
  0x4f   :  { %7859 = vmatprep.subr.mxu1 %v9986_v8  ;;  %7879 = vmatprep.subr.mxu0 %v9870_v22 }
  0x50   :  { %7824 = vmatprep.mubr.f32.mxu0 %v10093_v14  ;;  %7860 = vmatpush3.msra.mxu1 %v9986_v8 }
  0x51   :  { %7880 = vmatpush3.msra.mxu0 %v9870_v22  ;;  %7861 = vmatprep.subr.mxu1 %v10004_v31  ;;  %v12655_v22 = vand.u32 4294901760, %v10007_v32 }
  0x52   :  { %7825 = vmatmul.mubr.f32.gmra.mxu0 %v10097_v44  ;;  %7881 = vmatprep.subr.mxu0 %v9873_v23 }
  0x53   :  { %7862 = vmatpush3.msra.mxu1 %v10004_v31  ;;  %7882 = vmatpush3.msra.mxu0 %v9873_v23  ;;  %v12656_v23 = vand.u32 4294901760, %v10093_v14 }
  0x54   :  { %7863 = vmatprep.subr.mxu1 %v10016_v38  ;;  %7883 = vmatprep.subr.mxu0 %v9882_v26 }
  0x55   :  { %7827 = vmatprep.mubr.f32.mxu0 %v10115_v0  ;;  %7864 = vmatpush3.msra.mxu1 %v10016_v38 }
  0x56   :  { %7865 = vmatprep.mubr.f32.mxu1 %v12654_v21  ;;  %7884 = vmatpush3.msra.mxu0 %v9882_v26  ;;  %v12657_v26 = vand.u32 4294901760, %v10097_v44  ;;  %v48_v44 = vld [vmem:[%s12541_s3 + $0x30] sm:$0xff]  ;;  %v45_v21 = vld [vmem:[%s12541_s3 + $0x18] sm:$0xff] }
  0x57   :  { %7828 = vmatmul.mubr.f32.gmra.mxu0 %v10123_v63  ;;  %7866 = vmatmul.mubr.f32.vlgmr.msra.gmra.mxu1 %v12655_v22  ;;  %v10428_v33 = vand.u32 4294901760, %v48_v44 }
  0x58   :  { %7885 = vmatprep.subr.mxu0 %v9887_v28  ;;  %7921 = vmatprep.subr.mxu1 %v9816_v3 }
  0x59   :  { %7886 = vmatpush3.msra.mxu0 %v9887_v28  ;;  %7922 = vmatpush3.msra.mxu1 %v9816_v3  ;;  %v12658_v3 = vmov %v12652_v29  ;;  %v54_v28 = vld [vmem:[%s12541_s3 + $0x60] sm:$0xff]  ;;  %12670 = vst [vmem:[#allocation13_spill] sm:$0xff] %v10428_v33  ;;  %v10473_v22 = vsub.f32 %v48_v44, %v10428_v33 }
  0x5a   :  { %7887 = vmatprep.subr.mxu0 %v9912_v39  ;;  %7923 = vmatprep.subr.mxu1 %v9818_v4 }
  0x5b   :  { %7830 = vmatprep.mubr.f32.mxu0 %v10148_v48  ;;  %7868 = vmatprep.mubr.f32.mxu1 %v12656_v23  ;;  %v10412_v48 = vand.u32 4294901760, %v49_v59  ;;  %12679 = vst [vmem:[#allocation22_spill] sm:$0xff] %v10473_v22 }
  0x5c   :  { %7888 = vmatpush3.msra.mxu0 %v9912_v39  ;;  %7924 = vmatpush3.msra.mxu1 %v9818_v4  ;;  %v12659_v4 = vmov %v12653_v43 }
  0x5d   :  { %7831 = vmatmul.mubr.f32.gmra.mxu0 %v10153_v50  ;;  %7869 = vmatmul.mubr.f32.gmra.mxu1 %v12657_v26  ;;  %v47_v50 = vld [vmem:[%s12541_s3 + $0x28] sm:$0xff]  ;;  %v10451_v41 = vsub.f32 %v49_v59, %v10412_v48 }
  0x5e   :  { %7889 = vmatprep.subr.mxu0 %v9921_v42  ;;  %7925 = vmatprep.subr.mxu1 %v9820_v5 }
  0x5f   :  { %7890 = vmatpush3.msra.mxu0 %v9921_v42  ;;  %7926 = vmatpush3.msra.mxu1 %v9820_v5  ;;  %v57_v5 = vld [vmem:[%s12541_s3 + $0x78] sm:$0xff]  ;;  %v12601_v42 = vmov 0.0   ;;  %12675 = vst [vmem:[#allocation18_spill] sm:$0xff] %v10451_v41 }
  0x60   :  { %7891 = vmatprep.subr.mxu0 %v9945_v52  ;;  %7927 = vmatprep.subr.mxu1 %v9831_v9 }
  0x61   :  { %7871 = vmatprep.mubr.f32.mxu1 %v12658_v3  ;;  %7892 = vmatpush3.msra.mxu0 %v9945_v52  ;;  %v10484_v3 = vand.u32 4294901760, %v10451_v41 }
  0x62   :  { %7928 = vmatpush3.msra.mxu1 %v9831_v9  ;;  %7893 = vmatprep.subr.mxu0 %v9960_v58  ;;  %v10286_v9 = vand.u32 4294901760, %v57_v5 }
  0x63   :  { %7872 = vmatmul.mubr.f32.gmra.mxu1 %v12659_v4  ;;  %7929 = vmatprep.subr.mxu1 %v9833_v10  ;;  %12681 = vst [vmem:[#allocation24_spill] sm:$0xff] %v10484_v3  ;;  %v44_v4 = vld [vmem:[%s12541_s3 + $0x10] sm:$0xff] }
  0x64   :  { %7894 = vmatpush3.msra.mxu0 %v9960_v58  ;;  %7930 = vmatpush3.msra.mxu1 %v9833_v10  ;;  %v56_v10 = vld [vmem:[%s12541_s3 + $0x70] sm:$0xff] }
  0x65   :  { %7895 = vmatprep.subr.mxu0 %v9977_v1  ;;  %7931 = vmatprep.subr.mxu1 %v9835_v11 }
  0x66   :  { %7874 = vmatprep.mubr.f32.mxu1 %v210_v19  ;;  %7896 = vmatpush3.msra.mxu0 %v9977_v1 }
  0x67   :  { %7932 = vmatpush3.msra.mxu1 %v9835_v11  ;;  %7897 = vmatprep.subr.mxu0 %v9992_v13  ;;  %v10297_v11 = vand.u32 4294901760, %v56_v10 }
  0x68   :  { %7875 = vmatmul.mubr.f32.gmra.mxu1 %v220_v35  ;;  %7933 = vmatprep.subr.mxu1 %v9850_v16  ;;  %v10445_v35 = vand.u32 4294901760, %v47_v50 }
  0x69   :  { %7898 = vmatpush3.msra.mxu0 %v9992_v13  ;;  %7934 = vmatpush3.msra.mxu1 %v9850_v16  ;;  %v55_v16 = vld [vmem:[%s12541_s3 + $0x68] sm:$0xff]  ;;  %v10319_v39 = vsub.f32 %v56_v10, %v10297_v11  ;;  %v10492_v10 = vand.u32 4294901760, %v24_v53 }
  0x6a   :  { %7899 = vmatprep.subr.mxu0 %v10013_v37  ;;  %7935 = vmatprep.subr.mxu1 %v9875_v24  ;;  %12673 = vst [vmem:[#allocation16_spill] sm:$0xff] %v10445_v35 }
  0x6b   :  { %7900 = vmatpush3.msra.mxu0 %v10013_v37  ;;  %7936 = vmatpush3.msra.mxu1 %v9875_v24  ;;  %v10305_v24 = vsub.f32 %v57_v5, %v10286_v9  ;;  %v10346_v6 = vand.u32 4294901760, %v10319_v39  ;;  %v10490_v5 = vsub.f32 %v47_v50, %v10445_v35  ;;  %v10530_v59 = vsub.f32 %v24_v53, %v10492_v10 }
  0x6c   :  { %7901 = vmatprep.subr.mxu0 %v10026_v49  ;;  %7937 = vmatprep.subr.mxu1 %v9884_v27 }
  0x6d   :  { %7902 = vmatpush3.msra.mxu0 %v10026_v49  ;;  %7938 = vmatpush3.msra.mxu1 %v9884_v27  ;;  %v10311_v27 = vand.u32 4294901760, %v55_v16  ;;  %v10327_v52 = vand.u32 4294901760, %v10305_v24  ;;  %12662 = vst [vmem:[#allocation5_spill] sm:$0xff] %v10346_v6  ;;  %v1142_v37 = vsub.f32 %v10319_v39, %v10346_v6  ;;  %12682 = vst [vmem:[#allocation25_spill] sm:$0xff] %v10490_v5 }
  0x6e   :  { %7903 = vmatprep.subr.mxu0 %v10038_v56  ;;  %7939 = vmatprep.subr.mxu1 %v9903_v34 }
  0x6f   :  { %7904 = vmatpush3.msra.mxu0 %v10038_v56  ;;  %7940 = vmatpush3.msra.mxu1 %v9903_v34  ;;  %v12660_v34 = vld [vmem:[#allocation4_spill] sm:$0xff]  ;;  %v10336_v58 = vsub.f32 %v55_v16, %v10311_v27  ;;  %v1135_v13 = vsub.f32 %v10305_v24, %v10327_v52 }
  0x70   :  { %7905 = vmatprep.subr.mxu0 %v10054_v12  ;;  %7941 = vmatprep.subr.mxu1 %v9927_v45  ;;  %12661 = vst [vmem:[#allocation4_spill] sm:$0xff] %v10327_v52 }
  0x71   :  { %7906 = vmatpush3.msra.mxu0 %v10054_v12  ;;  %7942 = vmatpush3.msra.mxu1 %v9927_v45  ;;  %v53_v45 = vld [vmem:[%s12541_s3 + $0x58] sm:$0xff]  ;;  %v10365_v32 = vand.u32 4294901760, %v10336_v58  ;;  %v10379_v49 = vand.u32 4294901760, %v1135_v13  ;;  %v10395_v12 = vand.u32 4294901760, %v50_v40 }
  0x72   :  { %7907 = vmatprep.subr.mxu0 %v10061_v36  ;;  %7943 = vmatprep.subr.mxu1 %v9933_v47  ;;  %v10340_v1 = vand.u32 4294901760, %v53_v45 }
  0x73   :  { %7908 = vmatpush3.msra.mxu0 %v10061_v36  ;;  %7909 = vmatprep.mubr.f32.mxu0 %v9968_v61  ;;  %12663 = vst [vmem:[#allocation6_spill] sm:$0xff] %v10365_v32  ;;  %12664 = vst [vmem:[#allocation7_spill] sm:$0xff] %v10379_v49  ;;  %v10402_v36 = vand.u32 4294901760, %v1142_v37  ;;  %v10434_v17 = vsub.f32 %v50_v40, %v10395_v12  ;;  %v10524_v37 = vand.u32 4294901760, %v10490_v5  ;;  %v42_v40 = vld [vmem:[%s12541_s3] sm:$0xff] }
  0x74   :  { %7944 = vmatpush3.msra.mxu1 %v9933_v47  ;;  %7910 = vmatmul.mubr.f32.vlgmr.msra.gmra.mxu0 %v12660_v34  ;;  %v10331_v47 = vand.u32 4294901760, %v54_v28 }
  0x75   :  { %7945 = vmatprep.subr.mxu1 %v9957_v57  ;;  %7965 = vmatprep.subr.mxu0 %v12601_v42  ;;  %12666 = vst [vmem:[#allocation9_spill] sm:$0xff] %v10402_v36  ;;  %12672 = vst [vmem:[#allocation15_spill] sm:$0xff] %v10434_v17  ;;  %v10467_v62 = vand.u32 4294901760, %v10434_v17 }
  0x76   :  { %7946 = vmatpush3.msra.mxu1 %v9957_v57  ;;  %7966 = vmatpush3.msra.mxu0 %v10286_v9  ;;  %v52_v57 = vld [vmem:[%s12541_s3 + $0x50] sm:$0xff]  ;;  %v10358_v25 = vsub.f32 %v54_v28, %v10331_v47  ;;  %12689 = vst [vmem:[#allocation32_spill] sm:$0xff] %v10524_v37 }
  0x77   :  { %7947 = vmatprep.subr.mxu1 %v9986_v8  ;;  %7967 = vmatprep.subr.mxu0 %v12601_v42  ;;  %v10362_v30 = vand.u32 4294901760, %v52_v57  ;;  %12678 = vst [vmem:[#allocation21_spill] sm:$0xff] %v10467_v62  ;;  %v1184_v28 = vsub.f32 %v10434_v17, %v10467_v62 }
  0x78   :  { %7912 = vmatprep.mubr.f32.mxu0 %v10078_v7  ;;  %7948 = vmatpush3.msra.mxu1 %v9986_v8  ;;  %v51_v8 = vld [vmem:[%s12541_s3 + $0x48] sm:$0xff]  ;;  %v10386_v56 = vand.u32 4294901760, %v10358_v25 }
  0x79   :  { %7968 = vmatpush3.msra.mxu0 %v10297_v11  ;;  %7949 = vmatprep.subr.mxu1 %v10004_v31  ;;  %v10381_v51 = vand.u32 4294901760, %v51_v8 }
  0x7a   :  { %7913 = vmatmul.mubr.f32.gmra.mxu0 %v10081_v18  ;;  %7969 = vmatprep.subr.mxu0 %v12601_v42  ;;  %12665 = vst [vmem:[#allocation8_spill] sm:$0xff] %v10386_v56  ;;  %v1156_v63 = vsub.f32 %v10358_v25, %v10386_v56 }
  0x7b   :  { %7950 = vmatpush3.msra.mxu1 %v10004_v31  ;;  %7970 = vmatpush3.msra.mxu0 %v10311_v27  ;;  %v10375_v31 = vsub.f32 %v53_v45, %v10340_v1  ;;  %v10415_v0 = vsub.f32 %v51_v8, %v10381_v51  ;;  %v43_v45 = vld [vmem:[%s12541_s3 + $0x8] sm:$0xff]  ;;  %v1191_v8 = vsub.f32 %v10451_v41, %v10484_v3 }
  0x7c   :  { %7951 = vmatprep.subr.mxu1 %v10016_v38  ;;  %7971 = vmatprep.subr.mxu0 %v12601_v42  ;;  %v10455_v54 = vand.u32 4294901760, %v1156_v63  ;;  %v10541_v63 = vand.u32 4294901760, %v1184_v28 }
  0x7d   :  { %7915 = vmatprep.mubr.f32.mxu0 %v10099_v55  ;;  %7952 = vmatpush3.msra.mxu1 %v10016_v38  ;;  %v1149_v38 = vsub.f32 %v10336_v58, %v10365_v32  ;;  %v10405_v14 = vand.u32 4294901760, %v10375_v31  ;;  %12668 = vst [vmem:[#allocation11_spill] sm:$0xff] %v10415_v0  ;;  %v10448_v46 = vand.u32 4294901760, %v10415_v0  ;;  %v10557_v53 = vand.u32 4294901760, %v1191_v8 }
  0x7e   :  { %7953 = vmatprep.mubr.f32.mxu1 %v9968_v61  ;;  %7972 = vmatpush3.msra.mxu0 %v10331_v47  ;;  %v10398_v61 = vsub.f32 %v52_v57, %v10362_v30  ;;  %12676 = vst [vmem:[#allocation19_spill] sm:$0xff] %v10455_v54  ;;  %12692 = vst [vmem:[#allocation35_spill] sm:$0xff] %v10541_v63 }
  0x7f   :  { %7916 = vmatmul.mubr.f32.gmra.mxu0 %v10102_v15  ;;  %7954 = vmatmul.mubr.f32.vlgmr.msra.gmra.mxu1 %v12660_v34  ;;  %12667 = vst [vmem:[#allocation10_spill] sm:$0xff] %v10405_v14  ;;  %v10426_v29 = vand.u32 4294901760, %v1149_v38  ;;  %v1163_v19 = vsub.f32 %v10375_v31, %v10405_v14  ;;  %12674 = vst [vmem:[#allocation17_spill] sm:$0xff] %v10448_v46  ;;  %v1177_v26 = vsub.f32 %v10415_v0, %v10448_v46 }
  0x80   :  { %7973 = vmatprep.subr.mxu0 %v12601_v42  ;;  %8000 = vmatprep.subr.mxu1 %v12601_v42  ;;  %v10431_v43 = vand.u32 4294901760, %v10398_v61  ;;  %v10505_v34 = vand.u32 4294901760, %v10473_v22  ;;  %v10534_v38 = vand.u32 4294901760, %v43_v45  ;;  %12696 = vst [vmem:[#allocation39_spill] sm:$0xff] %v10557_v53 }
  0x81   :  { %7974 = vmatpush3.msra.mxu0 %v10340_v1  ;;  %8001 = vmatpush3.msra.mxu1 %v10379_v49  ;;  %12669 = vst [vmem:[#allocation12_spill] sm:$0xff] %v10426_v29  ;;  %v10477_v23 = vand.u32 4294901760, %v1163_v19  ;;  %v10519_v13 = vand.u32 4294901760, %v1177_v26 }
  0x82   :  { %7975 = vmatprep.subr.mxu0 %v12601_v42  ;;  %8002 = vmatprep.subr.mxu1 %v12601_v42  ;;  %12671 = vst [vmem:[#allocation14_spill] sm:$0xff] %v10431_v43  ;;  %12685 = vst [vmem:[#allocation28_spill] sm:$0xff] %v10505_v34  ;;  %v1198_v50 = vsub.f32 %v10473_v22, %v10505_v34  ;;  %v10568_v26 = vsub.f32 %v43_v45, %v10534_v38 }
  0x83   :  { %7918 = vmatprep.mubr.f32.mxu0 %v10127_v2  ;;  %7956 = vmatprep.mubr.f32.mxu1 %v10078_v7  ;;  %v46_v7 = vld [vmem:[%s12541_s3 + $0x20] sm:$0xff]  ;;  %12680 = vst [vmem:[#allocation23_spill] sm:$0xff] %v10477_v23  ;;  %12688 = vst [vmem:[#allocation31_spill] sm:$0xff] %v10519_v13 }
  0x84   :  { %7976 = vmatpush3.msra.mxu0 %v10362_v30  ;;  %8003 = vmatpush3.msra.mxu1 %v10402_v36  ;;  %v10464_v60 = vand.u32 4294901760, %v46_v7  ;;  %12690 = vst [vmem:[#allocation33_spill] sm:$0xff] %v10534_v38  ;;  %12698 = vst [vmem:[#allocation41_spill] sm:$0xff] %v10568_v26 }
  0x85   :  { %7919 = vmatmul.mubr.f32.gmra.mxu0 %v10134_v20  ;;  %7957 = vmatmul.mubr.f32.gmra.mxu1 %v10081_v18  ;;  %v1170_v18 = vsub.f32 %v10398_v61, %v10431_v43 }
  0x86   :  { %7977 = vmatprep.subr.mxu0 %v12601_v42  ;;  %8004 = vmatprep.subr.mxu1 %v12601_v42  ;;  %12677 = vst [vmem:[#allocation20_spill] sm:$0xff] %v10464_v60  ;;  %v10511_v57 = vsub.f32 %v46_v7, %v10464_v60 }
  0x87   :  { %7978 = vmatpush3.msra.mxu0 %v10381_v51  ;;  %8005 = vmatpush3.msra.mxu1 %v10426_v29  ;;  %v10500_v16 = vand.u32 4294901760, %v1170_v18  ;;  %v1205_v18 = vsub.f32 %v10490_v5, %v10524_v37 }
  0x88   :  { %7979 = vmatprep.subr.mxu0 %v12601_v42  ;;  %8006 = vmatprep.subr.mxu1 %v12601_v42  ;;  %12686 = vst [vmem:[#allocation29_spill] sm:$0xff] %v10511_v57  ;;  %v10546_v19 = vand.u32 4294901760, %v10511_v57 }
  0x89   :  { %7959 = vmatprep.mubr.f32.mxu1 %v10099_v55  ;;  %7980 = vmatpush3.msra.mxu0 %v10395_v12  ;;  %v10496_v55 = vand.u32 4294901760, %v45_v21  ;;  %12684 = vst [vmem:[#allocation27_spill] sm:$0xff] %v10500_v16  ;;  %v10586_v45 = vand.u32 4294901760, %v1205_v18 }
  0x8a   :  { %8007 = vmatpush3.msra.mxu1 %v10455_v54  ;;  %7981 = vmatprep.subr.mxu0 %v12601_v42  ;;  %12693 = vst [vmem:[#allocation36_spill] sm:$0xff] %v10546_v19  ;;  %v1212_v28 = vsub.f32 %v10511_v57, %v10546_v19 }
  0x8b   :  { %12683 = vst [vmem:[#allocation26_spill] sm:$0xff] %v10496_v55  ;;  %7960 = vmatmul.mubr.f32.gmra.mxu1 %v10102_v15  ;;  %8008 = vmatprep.subr.mxu1 %v12601_v42  ;;  %v10515_v15 = vand.u32 4294901760, %v44_v4  ;;  %v10537_v44 = vsub.f32 %v45_v21, %v10496_v55  ;;  %12702 = vst [vmem:[#allocation45_spill] sm:$0xff] %v10586_v45 }
  0x8c   :  { %7982 = vmatpush3.msra.mxu0 %v10412_v48  ;;  %8009 = vmatpush3.msra.mxu1 %v10477_v23  ;;  %v10600_v18 = vand.u32 4294901760, %v1212_v28 }
  0x8d   :  { %12687 = vst [vmem:[#allocation30_spill] sm:$0xff] %v10515_v15  ;;  %7983 = vmatprep.subr.mxu0 %v12601_v42  ;;  %8010 = vmatprep.subr.mxu1 %v12601_v42  ;;  %12691 = vst [vmem:[#allocation34_spill] sm:$0xff] %v10537_v44  ;;  %v10553_v7 = vsub.f32 %v44_v4, %v10515_v15  ;;  %v10572_v4 = vand.u32 4294901760, %v1198_v50  ;;  %v12703_v50 = vand.u32 4294901760, %v10530_v59 }
  0x8e   :  { %7962 = vmatprep.mubr.f32.mxu1 %v10127_v2  ;;  %7984 = vmatpush3.msra.mxu0 %v10428_v33  ;;  %v10550_v2 = vand.u32 4294901760, %v42_v40  ;;  %12705 = vst [vmem:[#allocation47_spill] sm:$0xff] %v10600_v18 }
  0x8f   :  { %8011 = vmatpush3.msra.mxu1 %v10500_v16  ;;  %7985 = vmatprep.subr.mxu0 %v12601_v42  ;;  %12695 = vst [vmem:[#allocation38_spill] sm:$0xff] %v10553_v7  ;;  %12699 = vst [vmem:[#allocation42_spill] sm:$0xff] %v10572_v4  ;;  %v10579_v8 = vand.u32 4294901760, %v10553_v7 }
  0x90   :  { %7963 = vmatmul.mubr.f32.gmra.mxu1 %v10134_v20  ;;  %8012 = vmatprep.subr.mxu1 %v12601_v42  ;;  %12694 = vst [vmem:[#allocation37_spill] sm:$0xff] %v10550_v2  ;;  %v10565_v20 = vand.u32 4294901760, %v10537_v44  ;;  %v10582_v21 = vsub.f32 %v42_v40, %v10550_v2  ;;  %v10596_v40 = vand.u32 4294901760, %v10568_v26 }
  0x91   :  { %7986 = vmatpush3.msra.mxu0 %v10445_v35  ;;  %8013 = vmatpush3.msra.mxu1 %v10519_v13  ;;  %12700 = vst [vmem:[#allocation43_spill] sm:$0xff] %v10579_v8 }
  0x92   :  { %7987 = vmatprep.subr.mxu0 %v12601_v42  ;;  %8014 = vmatprep.subr.mxu1 %v12601_v42  ;;  %12697 = vst [vmem:[#allocation40_spill] sm:$0xff] %v10565_v20  ;;  %12701 = vst [vmem:[#allocation44_spill] sm:$0xff] %v10582_v21  ;;  %v1219_v13 = vsub.f32 %v10537_v44, %v10565_v20 }
  0x93   :  { %7988 = vmatpush3.msra.mxu0 %v10464_v60  ;;  %8015 = vmatpush3.msra.mxu1 %v10541_v63  ;;  %v1124_v63 = vsub.f32 %v10530_v59, %v12703_v50  ;;  %12704 = vst [vmem:[#allocation46_spill] sm:$0xff] %v10596_v40  ;;  %v1226_v50 = vsub.f32 %v10553_v7, %v10579_v8 }
  0x94   :  { %7989 = vmatprep.subr.mxu0 %v12601_v42  ;;  %8016 = vmatprep.subr.mxu1 %v12601_v42  ;;  %v10613_v28 = vand.u32 4294901760, %v1219_v13 }
  0x95   :  { %7990 = vmatpush3.msra.mxu0 %v10496_v55  ;;  %8017 = vmatpush3.msra.mxu1 %v10557_v53  ;;  %v10607_v53 = vand.u32 4294901760, %v10582_v21  ;;  %v1125_v16 = vand.u32 4294901760, %v1124_v63  ;;  %v10622_v63 = vand.u32 4294901760, %v1226_v50 }
  0x96   :  { %7991 = vmatprep.subr.mxu0 %v12601_v42  ;;  %8018 = vmatprep.subr.mxu1 %v12601_v42  ;;  %12707 = vst [vmem:[#allocation49_spill] sm:$0xff] %v10613_v28 }
  0x97   :  { %7992 = vmatpush3.msra.mxu0 %v10515_v15  ;;  %8019 = vmatpush3.msra.mxu1 %v10572_v4  ;;  %12706 = vst [vmem:[#allocation48_spill] sm:$0xff] %v10607_v53  ;;  %v1233_v4 = vsub.f32 %v10568_v26, %v10596_v40  ;;  %12708 = vst [vmem:[#allocation50_spill] sm:$0xff] %v10622_v63 }
  0x98   :  { %7993 = vmatprep.subr.mxu0 %v12601_v42  ;;  %8020 = vmatprep.subr.mxu1 %v12601_v42 }
  0x99   :  { %7994 = vmatpush3.msra.mxu0 %v10534_v38  ;;  %8021 = vmatpush3.msra.mxu1 %v10586_v45  ;;  %v1240_v45 = vsub.f32 %v10582_v21, %v10607_v53  ;;  %v10629_v13 = vand.u32 4294901760, %v1233_v4 }
  0x9a   :  { %7995 = vmatprep.subr.mxu0 %v12601_v42  ;;  %8022 = vmatprep.subr.mxu1 %v12601_v42 }
  0x9b   :  { %7996 = vmatpush3.msra.mxu0 %v10550_v2  ;;  %8023 = vmatpush3.msra.mxu1 %v10600_v18  ;;  %12709 = vst [vmem:[#allocation51_spill] sm:$0xff] %v10629_v13  ;;  %v10635_v50 = vand.u32 4294901760, %v1240_v45  ;;  %v12714_v45 = vld [vmem:[#allocation35_spill] sm:$0xff] }
  0x9c   :  { %7997 = vmatprep.mubr.msk.f32.mxu0 %vm9776_vm0, %v12601_v42  ;;  %8024 = vmatprep.subr.mxu1 %v12601_v42 }
  0x9d   :  { %8035 = vmatprep.subr.mxu0 %v12601_v42  ;;  %7998 = vmatmul.mubr.f32.vlgmr.msra.gmra.mxu0 %v1125_v16  ;;  %12710 = vst [vmem:[#allocation52_spill] sm:$0xff] %v10635_v50  ;;  %v12711_v16 = vand.u32 4294901760, %v10530_v59 }
  0x9e   :  { %8025 = vmatpush3.msra.mxu1 %v10613_v28  ;;  %8036 = vmatpush3.msra.mxu0 %v10305_v24 }
  0x9f   :  { %8026 = vmatprep.subr.mxu1 %v12601_v42  ;;  %8037 = vmatprep.subr.mxu0 %v12601_v42 }
  0xa0   :  { %8027 = vmatpush3.msra.mxu1 %v10622_v63  ;;  %8038 = vmatpush3.msra.mxu0 %v10319_v39 }
  0xa1   :  { %8028 = vmatprep.subr.mxu1 %v12601_v42  ;;  %8039 = vmatprep.subr.mxu0 %v12601_v42 }
  0xa2   :  { %8029 = vmatpush3.msra.mxu1 %v10629_v13  ;;  %8040 = vmatpush3.msra.mxu0 %v10336_v58 }
  0xa3   :  { %8030 = vmatprep.subr.mxu1 %v12601_v42  ;;  %8041 = vmatprep.subr.mxu0 %v12601_v42 }
  0xa4   :  { %8031 = vmatpush3.msra.mxu1 %v10635_v50  ;;  %8032 = vmatprep.mubr.msk.f32.mxu1 %vm9776_vm0, %v12601_v42 }
  0xa5   :  { %8042 = vmatpush3.msra.mxu0 %v10358_v25  ;;  %8033 = vmatmul.mubr.f32.vlgmr.msra.gmra.mxu1 %v10492_v10 }
  0xa6   :  { %8043 = vmatprep.subr.mxu0 %v12601_v42  ;;  %8070 = vmatprep.subr.mxu1 %v12601_v42 }
  0xa7   :  { %8044 = vmatpush3.msra.mxu0 %v10375_v31  ;;  %8071 = vmatpush3.msra.mxu1 %v10286_v9 }
  0xa8   :  { %8045 = vmatprep.subr.mxu0 %v12601_v42  ;;  %8072 = vmatprep.subr.mxu1 %v12601_v42 }
  0xa9   :  { %8046 = vmatpush3.msra.mxu0 %v10398_v61  ;;  %8073 = vmatpush3.msra.mxu1 %v10297_v11 }
  0xaa   :  { %8047 = vmatprep.subr.mxu0 %v12601_v42  ;;  %8074 = vmatprep.subr.mxu1 %v12601_v42 }
  0xab   :  { %8048 = vmatpush3.msra.mxu0 %v10415_v0  ;;  %8075 = vmatpush3.msra.mxu1 %v10311_v27 }
  0xac   :  { %8049 = vmatprep.subr.mxu0 %v12601_v42  ;;  %8076 = vmatprep.subr.mxu1 %v12601_v42 }
  0xad   :  { %8050 = vmatpush3.msra.mxu0 %v10434_v17  ;;  %8077 = vmatpush3.msra.mxu1 %v10331_v47 }
  0xae   :  { %8051 = vmatprep.subr.mxu0 %v12601_v42  ;;  %8078 = vmatprep.subr.mxu1 %v12601_v42 }
  0xaf   :  { %8052 = vmatpush3.msra.mxu0 %v10451_v41  ;;  %8079 = vmatpush3.msra.mxu1 %v10340_v1 }
  0xb0   :  { %8053 = vmatprep.subr.mxu0 %v12601_v42  ;;  %8080 = vmatprep.subr.mxu1 %v12601_v42 }
  0xb1   :  { %8054 = vmatpush3.msra.mxu0 %v10473_v22  ;;  %8081 = vmatpush3.msra.mxu1 %v10362_v30 }
  0xb2   :  { %8055 = vmatprep.subr.mxu0 %v12601_v42  ;;  %8082 = vmatprep.subr.mxu1 %v12601_v42 }
  0xb3   :  { %8056 = vmatpush3.msra.mxu0 %v10490_v5  ;;  %8083 = vmatpush3.msra.mxu1 %v10381_v51 }
  0xb4   :  { %8057 = vmatprep.subr.mxu0 %v12601_v42  ;;  %8084 = vmatprep.subr.mxu1 %v12601_v42 }
  0xb5   :  { %8058 = vmatpush3.msra.mxu0 %v10511_v57  ;;  %8085 = vmatpush3.msra.mxu1 %v10395_v12 }
  0xb6   :  { %8059 = vmatprep.subr.mxu0 %v12601_v42  ;;  %8086 = vmatprep.subr.mxu1 %v12601_v42 }
  0xb7   :  { %8060 = vmatpush3.msra.mxu0 %v10537_v44  ;;  %8087 = vmatpush3.msra.mxu1 %v10412_v48 }
  0xb8   :  { %8061 = vmatprep.subr.mxu0 %v12601_v42  ;;  %8088 = vmatprep.subr.mxu1 %v12601_v42 }
  0xb9   :  { %8062 = vmatpush3.msra.mxu0 %v10553_v7  ;;  %8089 = vmatpush3.msra.mxu1 %v10428_v33 }
  0xba   :  { %8063 = vmatprep.subr.mxu0 %v12601_v42  ;;  %8090 = vmatprep.subr.mxu1 %v12601_v42 }
  0xbb   :  { %8064 = vmatpush3.msra.mxu0 %v10568_v26  ;;  %8091 = vmatpush3.msra.mxu1 %v10445_v35 }
  0xbc   :  { %8065 = vmatprep.subr.mxu0 %v12601_v42  ;;  %8092 = vmatprep.subr.mxu1 %v12601_v42 }
  0xbd   :  { %8066 = vmatpush3.msra.mxu0 %v10582_v21  ;;  %8067 = vmatprep.mubr.msk.f32.mxu0 %vm9776_vm0, %v12601_v42 }
  0xbe   :  { %8093 = vmatpush3.msra.mxu1 %v10464_v60  ;;  %8068 = vmatmul.mubr.f32.vlgmr.msra.gmra.mxu0 %v10530_v59  ;;  %v12713_v59 = vld [vmem:[#allocation31_spill] sm:$0xff] }
  0xbf   :  { %8094 = vmatprep.subr.mxu1 %v12601_v42  ;;  %8105 = vmatprep.subr.mxu0 %v12601_v42 }
  0xc0   :  { %8095 = vmatpush3.msra.mxu1 %v10496_v55  ;;  %8106 = vmatpush3.msra.mxu0 %v10327_v52 }
  0xc1   :  { %8096 = vmatprep.subr.mxu1 %v12601_v42  ;;  %8107 = vmatprep.subr.mxu0 %v12601_v42 }
  0xc2   :  { %8097 = vmatpush3.msra.mxu1 %v10515_v15  ;;  %8108 = vmatpush3.msra.mxu0 %v10346_v6 }
  0xc3   :  { %8098 = vmatprep.subr.mxu1 %v12601_v42  ;;  %8109 = vmatprep.subr.mxu0 %v12601_v42 }
  0xc4   :  { %8099 = vmatpush3.msra.mxu1 %v10534_v38  ;;  %8110 = vmatpush3.msra.mxu0 %v10365_v32 }
  0xc5   :  { %8100 = vmatprep.subr.mxu1 %v12601_v42  ;;  %8111 = vmatprep.subr.mxu0 %v12601_v42 }
  0xc6   :  { %8101 = vmatpush3.msra.mxu1 %v10550_v2  ;;  %8102 = vmatprep.mubr.msk.f32.mxu1 %vm9776_vm0, %v12601_v42 }
  0xc7   :  { %8112 = vmatpush3.msra.mxu0 %v10386_v56  ;;  %8103 = vmatmul.mubr.f32.vlgmr.msra.gmra.mxu1 %v12711_v16  ;;  %v12715_v16 = vld [vmem:[#allocation39_spill] sm:$0xff] }
  0xc8   :  { %8113 = vmatprep.subr.mxu0 %v12601_v42  ;;  %8140 = vmatprep.subr.mxu1 %v12601_v42 }
  0xc9   :  { %8114 = vmatpush3.msra.mxu0 %v10405_v14  ;;  %8141 = vmatpush3.msra.mxu1 %v10286_v9 }
  0xca   :  { %8115 = vmatprep.subr.mxu0 %v12601_v42  ;;  %8142 = vmatprep.subr.mxu1 %v12601_v42 }
  0xcb   :  { %8116 = vmatpush3.msra.mxu0 %v10431_v43  ;;  %8143 = vmatpush3.msra.mxu1 %v10297_v11 }
  0xcc   :  { %8117 = vmatprep.subr.mxu0 %v12601_v42  ;;  %8144 = vmatprep.subr.mxu1 %v12601_v42 }
  0xcd   :  { %8118 = vmatpush3.msra.mxu0 %v10448_v46  ;;  %8145 = vmatpush3.msra.mxu1 %v10311_v27 }
  0xce   :  { %8119 = vmatprep.subr.mxu0 %v12601_v42  ;;  %8146 = vmatprep.subr.mxu1 %v12601_v42 }
  0xcf   :  { %8120 = vmatpush3.msra.mxu0 %v10467_v62  ;;  %8147 = vmatpush3.msra.mxu1 %v10331_v47 }
  0xd0   :  { %8121 = vmatprep.subr.mxu0 %v12601_v42  ;;  %8148 = vmatprep.subr.mxu1 %v12601_v42 }
  0xd1   :  { %8122 = vmatpush3.msra.mxu0 %v10484_v3  ;;  %8149 = vmatpush3.msra.mxu1 %v10340_v1 }
  0xd2   :  { %8123 = vmatprep.subr.mxu0 %v12601_v42  ;;  %8150 = vmatprep.subr.mxu1 %v12601_v42 }
  0xd3   :  { %8124 = vmatpush3.msra.mxu0 %v10505_v34  ;;  %8151 = vmatpush3.msra.mxu1 %v10362_v30 }
  0xd4   :  { %8125 = vmatprep.subr.mxu0 %v12601_v42  ;;  %8152 = vmatprep.subr.mxu1 %v12601_v42 }
  0xd5   :  { %8126 = vmatpush3.msra.mxu0 %v10524_v37  ;;  %8153 = vmatpush3.msra.mxu1 %v10381_v51 }
  0xd6   :  { %8127 = vmatprep.subr.mxu0 %v12601_v42  ;;  %8154 = vmatprep.subr.mxu1 %v12601_v42 }
  0xd7   :  { %8128 = vmatpush3.msra.mxu0 %v10546_v19  ;;  %8155 = vmatpush3.msra.mxu1 %v10395_v12 }
  0xd8   :  { %8129 = vmatprep.subr.mxu0 %v12601_v42  ;;  %8156 = vmatprep.subr.mxu1 %v12601_v42 }
  0xd9   :  { %8130 = vmatpush3.msra.mxu0 %v10565_v20  ;;  %8157 = vmatpush3.msra.mxu1 %v10412_v48 }
  0xda   :  { %8131 = vmatprep.subr.mxu0 %v12601_v42  ;;  %8158 = vmatprep.subr.mxu1 %v12601_v42 }
  0xdb   :  { %8132 = vmatpush3.msra.mxu0 %v10579_v8  ;;  %8159 = vmatpush3.msra.mxu1 %v10428_v33 }
  0xdc   :  { %8133 = vmatprep.subr.mxu0 %v12601_v42  ;;  %8160 = vmatprep.subr.mxu1 %v12601_v42 }
  0xdd   :  { %8134 = vmatpush3.msra.mxu0 %v10596_v40  ;;  %8161 = vmatpush3.msra.mxu1 %v10445_v35 }
  0xde   :  { %8135 = vmatprep.subr.mxu0 %v12601_v42  ;;  %8162 = vmatprep.subr.mxu1 %v12601_v42 }
  0xdf   :  { %8136 = vmatpush3.msra.mxu0 %v10607_v53  ;;  %8137 = vmatprep.mubr.msk.f32.mxu0 %vm9776_vm0, %v12601_v42 }
  0xe0   :  { %8163 = vmatpush3.msra.mxu1 %v10464_v60  ;;  %8138 = vmatmul.mubr.f32.vlgmr.msra.gmra.mxu0 %v10492_v10 }
  0xe1   :  { %8164 = vmatprep.subr.mxu1 %v12601_v42  ;;  %8172 = vmatprep.mubr.msk.f32.mxu1 %vm9776_vm0, %v12601_v42 }
  0xe2   :  { %8165 = vmatpush3.msra.mxu1 %v10496_v55  ;;  %8175 = vmatprep.subr.mxu0 %v12601_v42 }
  0xe3   :  { %8166 = vmatprep.subr.mxu1 %v12601_v42  ;;  %8176 = vmatpush3.msra.mxu0 %v10286_v9 }
  0xe4   :  { %8167 = vmatpush3.msra.mxu1 %v10515_v15  ;;  %8177 = vmatprep.subr.mxu0 %v12601_v42 }
  0xe5   :  { %8168 = vmatprep.subr.mxu1 %v12601_v42  ;;  %8178 = vmatpush3.msra.mxu0 %v10297_v11  ;;  %v10817_v4 = vpop.f32.mrf.mxu0 }
  0xe6   :  { %8169 = vmatpush3.msra.mxu1 %v10534_v38  ;;  %8179 = vmatprep.subr.mxu0 %v12601_v42 }
  0xe7   :  { %8170 = vmatprep.subr.mxu1 %v12601_v42  ;;  %8180 = vmatpush3.msra.mxu0 %v10311_v27 }
  0xe8   :  { %8171 = vmatpush3.msra.mxu1 %v10550_v2  ;;  %8181 = vmatprep.subr.mxu0 %v12601_v42 }
  0xe9   :  { %8173 = vmatmul.mubr.f32.vlgmr.msra.gmra.mxu1 %v10492_v10  ;;  %8210 = vmatprep.subr.mxu1 %v12601_v42  ;;  %v12712_v10 = vld [vmem:[#allocation27_spill] sm:$0xff] }
  0xea   :  { %8211 = vmatpush3.msra.mxu1 %v10379_v49  ;;  %8182 = vmatpush3.msra.mxu0 %v10331_v47 }
  0xeb   :  { %8212 = vmatprep.subr.mxu1 %v12601_v42  ;;  %8183 = vmatprep.subr.mxu0 %v12601_v42 }
  0xec   :  { %8213 = vmatpush3.msra.mxu1 %v10402_v36  ;;  %8184 = vmatpush3.msra.mxu0 %v10340_v1 }
  0xed   :  { %8214 = vmatprep.subr.mxu1 %v12601_v42  ;;  %8185 = vmatprep.subr.mxu0 %v12601_v42 }
  0xee   :  { %8215 = vmatpush3.msra.mxu1 %v10426_v29  ;;  %8186 = vmatpush3.msra.mxu0 %v10362_v30 }
  0xef   :  { %8216 = vmatprep.subr.mxu1 %v12601_v42  ;;  %8187 = vmatprep.subr.mxu0 %v12601_v42 }
  0xf0   :  { %8217 = vmatpush3.msra.mxu1 %v10455_v54  ;;  %8188 = vmatpush3.msra.mxu0 %v10381_v51 }
  0xf1   :  { %8218 = vmatprep.subr.mxu1 %v12601_v42  ;;  %8189 = vmatprep.subr.mxu0 %v12601_v42 }
  0xf2   :  { %8219 = vmatpush3.msra.mxu1 %v10477_v23  ;;  %8190 = vmatpush3.msra.mxu0 %v10395_v12  ;;  %v12717_v23 = vld [vmem:[#allocation45_spill] sm:$0xff] }
  0xf3   :  { %8220 = vmatprep.subr.mxu1 %v12601_v42  ;;  %8191 = vmatprep.subr.mxu0 %v12601_v42 }
  0xf4   :  { %8221 = vmatpush3.msra.mxu1 %v12712_v10  ;;  %8192 = vmatpush3.msra.mxu0 %v10412_v48  ;;  %v12716_v10 = vld [vmem:[#allocation42_spill] sm:$0xff] }
  0xf5   :  { %8222 = vmatprep.subr.mxu1 %v12601_v42  ;;  %8193 = vmatprep.subr.mxu0 %v12601_v42 }
  0xf6   :  { %8223 = vmatpush3.msra.mxu1 %v12713_v59  ;;  %8194 = vmatpush3.msra.mxu0 %v10428_v33  ;;  %v154_v59 = vpop.f32.mrf.mxu0 }
  0xf7   :  { %8224 = vmatprep.subr.mxu1 %v12601_v42  ;;  %8195 = vmatprep.subr.mxu0 %v12601_v42 }
  0xf8   :  { %8225 = vmatpush3.msra.mxu1 %v12714_v45  ;;  %8196 = vmatpush3.msra.mxu0 %v10445_v35 }
  0xf9   :  { %8226 = vmatprep.subr.mxu1 %v12601_v42  ;;  %8197 = vmatprep.subr.mxu0 %v12601_v42 }
  0xfa   :  { %8227 = vmatpush3.msra.mxu1 %v12715_v16  ;;  %8198 = vmatpush3.msra.mxu0 %v10464_v60  ;;  %v7738_v45 = vpop.f32.mrf.mxu0  ;;  %v6740_v60 = vld [vmem:[%s12543_s4] ss:$0 sm:$0xff] }
  0xfb   :  { %8228 = vmatprep.subr.mxu1 %v12601_v42  ;;  %8199 = vmatprep.subr.mxu0 %v12601_v42 }
  0xfc   :  { %8229 = vmatpush3.msra.mxu1 %v12716_v10  ;;  %8242 = vmatprep.mubr.msk.f32.mxu1 %vm9776_vm0, %v12601_v42  ;;  %v174_v10 = vpop.f32.mrf.mxu0 }
  0xfd   :  { %8230 = vmatprep.subr.mxu1 %v12601_v42  ;;  %8200 = vmatpush3.msra.mxu0 %v10496_v55 }
  0xfe   :  { %8231 = vmatpush3.msra.mxu1 %v12717_v23  ;;  %8201 = vmatprep.subr.mxu0 %v12601_v42 }
  0xff   :  { %8232 = vmatprep.subr.mxu1 %v12601_v42  ;;  %8202 = vmatpush3.msra.mxu0 %v10515_v15  ;;  %v7741_v23 = vpop.f32.mrf.mxu0 }
 0x100   :  { %8233 = vmatpush3.msra.mxu1 %v10600_v18  ;;  %8203 = vmatprep.subr.mxu0 %v12601_v42  ;;  %v7779_v18 = vpop.f32.mrf.mxu1 }
 0x101   :  { %8234 = vmatprep.subr.mxu1 %v12601_v42  ;;  %8204 = vmatpush3.msra.mxu0 %v10534_v38  ;;  %v194_v16 = vpop.f32.mrf.mxu0  ;;  %v382_v21 = vadd.f32 %v7779_v18, %v10817_v4 }
 0x102   :  { %8235 = vmatpush3.msra.mxu1 %v10613_v28  ;;  %8205 = vmatprep.subr.mxu0 %v12601_v42  ;;  %v375_v28 = vpop.f32.mrf.mxu1 }
 0x103   :  { %8236 = vmatprep.subr.mxu1 %v12601_v42  ;;  %8206 = vmatpush3.msra.mxu0 %v10550_v2  ;;  %v376_v7 = vadd.f32 %v375_v28, %v154_v59 }
 0x104   :  { %8237 = vmatpush3.msra.mxu1 %v10622_v63  ;;  %8207 = vmatprep.mubr.msk.f32.mxu0 %vm9776_vm0, %v12601_v42  ;;  %v7782_v63 = vpop.f32.mrf.mxu1 }
 0x105   :  { %8238 = vmatprep.subr.mxu1 %v12601_v42  ;;  %8245 = vmatprep.subr.mxu0 %v12601_v42  ;;  %v10853_v54 = vpop.f32.mrf.mxu0  ;;  %v394_v15 = vadd.f32 %v7782_v63, %v7738_v45 }
 0x106   :  { %8239 = vmatpush3.msra.mxu1 %v10629_v13  ;;  %v387_v29 = vpop.f32.mrf.mxu1 }
 0x107   :  { %8240 = vmatprep.subr.mxu1 %v12601_v42  ;;  %v10855_v53 = vpop.f32.mrf.mxu0  ;;  %v388_v35 = vadd.f32 %v387_v29, %v174_v10 }
 0x108   :  { %8241 = vmatpush3.msra.mxu1 %v10635_v50  ;;  %v7785_v36 = vpop.f32.mrf.mxu1 }
 0x109   :  { %8280 = vmatprep.subr.mxu1 %v12601_v42 }
 0x10a   :  { %v399_v49 = vpop.f32.mrf.mxu1 }
 0x10b   :  { %v400_v63 = vadd.f32 %v399_v49, %v194_v16 }
 0x10c   :  { %v7823_v40 = vpop.f32.mrf.mxu0 }
 0x10d   :  { %v7788_v20 = vpop.f32.mrf.mxu1  ;;  %v529_v44 = vadd.f32 %v7823_v40, %v382_v21 }
 0x10e   :  { %v521_v8 = vpop.f32.mrf.mxu0 }
 0x10f   :  { %v411_v19 = vpop.f32.mrf.mxu1  ;;  %v522_v57 = vadd.f32 %v521_v8, %v376_v7 }
 0x112   :  { %v7826_v13 = vpop.f32.mrf.mxu0 }
 0x113   :  { %v543_v0 = vadd.f32 %v7826_v13, %v394_v15 }
 0x114   :  { %v535_v34 = vpop.f32.mrf.mxu0 }
 0x115   :  { %v536_v28 = vadd.f32 %v535_v34, %v388_v35 }
 0x117   :  { %v7867_v37 = vpop.f32.mrf.mxu1  ;;  %v7829_v3 = vpop.f32.mrf.mxu0 }
 0x118   :  { %v668_v38 = vadd.f32 %v7867_v37, %v529_v44  ;;  %v406_v44 = vadd.f32 %v7785_v36, %v7741_v23 }
 0x119   :  { %v659_v50 = vpop.f32.mrf.mxu1  ;;  %v549_v42 = vpop.f32.mrf.mxu0 }
 0x11a   :  { %v660_v22 = vadd.f32 %v659_v50, %v522_v57  ;;  %v557_v50 = vadd.f32 %v7829_v3, %v406_v44 }
 0x11d   :  { %v7870_v62 = vpop.f32.mrf.mxu1  ;;  %v7832_v43 = vpop.f32.mrf.mxu0 }
 0x11e   :  { %v684_v21 = vadd.f32 %v7870_v62, %v543_v0  ;;  %v418_v62 = vadd.f32 %v7788_v20, %v10853_v54 }
 0x11f   :  { %v675_v46 = vpop.f32.mrf.mxu1  ;;  %v563_v56 = vpop.f32.mrf.mxu0 }
 0x120   :  { %v676_v8 = vadd.f32 %v675_v46, %v536_v28  ;;  %v571_v49 = vadd.f32 %v7832_v43, %v418_v62 }
 0x123   :  { %v7873_v14 = vpop.f32.mrf.mxu1 }
 0x125   :  { %v691_v6 = vpop.f32.mrf.mxu1 }
 0x128   :  { %v7876_v26 = vpop.f32.mrf.mxu1 }
 0x12a   :  { %v707_v5 = vpop.f32.mrf.mxu1 }
 0x134   :  { %v7911_v32 = vpop.f32.mrf.mxu0 }
 0x135   :  { %v841_v55 = vadd.f32 %v7911_v32, %v668_v38 }
 0x136   :  { %v834_v52 = vpop.f32.mrf.mxu0 }
 0x137   :  { %v835_v33 = vadd.f32 %v834_v52, %v660_v22  ;;  %v700_v22 = vadd.f32 %v7873_v14, %v557_v50 }
 0x13a   :  { %v7914_v2 = vpop.f32.mrf.mxu0 }
 0x13b   :  { %v853_v57 = vadd.f32 %v7914_v2, %v684_v21  ;;  %v716_v2 = vadd.f32 %v7876_v26, %v571_v49 }
 0x13c   :  { %v846_v41 = vpop.f32.mrf.mxu0 }
 0x13d   :  { %v847_v59 = vadd.f32 %v846_v41, %v676_v8 }
 0x13f   :  { %v7955_v17 = vpop.f32.mrf.mxu1  ;;  %v7917_v40 = vpop.f32.mrf.mxu0 }
 0x140   :  { %v970_v18 = vadd.f32 %v7955_v17, %v841_v55  ;;  %v550_v17 = vadd.f32 %v549_v42, %v400_v63  ;;  %v865_v36 = vadd.f32 %v7917_v40, %v700_v22  ;;  %v412_v55 = vadd.f32 %v411_v19, %v10855_v53 }
 0x141   :  { %v963_v4 = vpop.f32.mrf.mxu1  ;;  %v858_v45 = vpop.f32.mrf.mxu0 }
 0x142   :  { %v1016_v7 = vadd.f32 %v6740_v60, %v970_v18  ;;  %v964_v37 = vadd.f32 %v963_v4, %v835_v33  ;;  %v692_v33 = vadd.f32 %v691_v6, %v550_v17  ;;  %v564_v15 = vadd.f32 %v563_v56, %v412_v55 }
 0x144   :  { %1024 = vst [vmem:[#allocation3 + $0x8] sm:$0xff] %v1016_v7  ;;  %v1015_v32 = vadd.f32 %v6740_v60, %v964_v37  ;;  %v859_v41 = vadd.f32 %v858_v45, %v692_v33  ;;  %v708_v16 = vadd.f32 %v707_v5, %v564_v15 }
 0x145   :  { %v7958_v38 = vpop.f32.mrf.mxu1  ;;  %v7920_v46 = vpop.f32.mrf.mxu0 }
 0x146   :  { %1023 = vst [vmem:[#allocation3] sm:$0xff] %v1015_v32  ;;  %v982_v29 = vadd.f32 %v7958_v38, %v853_v57  ;;  %v877_v54 = vadd.f32 %v7920_v46, %v716_v2 }
 0x147   :  { %v975_v52 = vpop.f32.mrf.mxu1  ;;  %v870_v14 = vpop.f32.mrf.mxu0 }
 0x148   :  { %v1018_v35 = vadd.f32 %v6740_v60, %v982_v29  ;;  %v976_v0 = vadd.f32 %v975_v52, %v847_v59  ;;  %v871_v18 = vadd.f32 %v870_v14, %v708_v16 }
 0x14a   :  { %1026 = vst [vmem:[#allocation3 + $0x18] sm:$0xff] %v1018_v35  ;;  %v1017_v23 = vadd.f32 %v6740_v60, %v976_v0 }
 0x14b   :  { %v7961_v3 = vpop.f32.mrf.mxu1  ;;  %v1033_v29 = vld [vmem:[#allocation3 + $0x8] sm:$0x1] }
 0x14c   :  { %1025 = vst [vmem:[#allocation3 + $0x10] sm:$0xff] %v1017_v23  ;;  %v994_v34 = vadd.f32 %v7961_v3, %v865_v36 }
 0x14d   :  { %v987_v42 = vpop.f32.mrf.mxu1 }
 0x14e   :  { %v1020_v13 = vadd.f32 %v6740_v60, %v994_v34  ;;  %v988_v10 = vadd.f32 %v987_v42, %v859_v41 }
 0x150   :  { %1028 = vst [vmem:[#allocation3 + $0x28] sm:$0xff] %v1020_v13  ;;  %v1019_v6 = vadd.f32 %v6740_v60, %v988_v10  ;;  %v7964_v20 = vpop.f32.mrf.mxu1 }
 0x151   :  { %v1006_v4 = vadd.f32 %v7964_v20, %v877_v54  ;;  %v1035_v62 = vld [vmem:[#allocation3 + $0x18] sm:$0x1] }
 0x152   :  { %1027 = vst [vmem:[#allocation3 + $0x20] sm:$0xff] %v1019_v6  ;;  %v999_v19 = vpop.f32.mrf.mxu1 }
 0x153   :  { %v1022_v43 = vadd.f32 %v6740_v60, %v1006_v4  ;;  %v1000_v53 = vadd.f32 %v999_v19, %v871_v18  ;;  %v1034_v33 = vld [vmem:[#allocation3 + $0x10] sm:$0x1] }
 0x155   :  { %1030 = vst [vmem:[#allocation3 + $0x38] sm:$0xff] %v1022_v43  ;;  %v1021_v28 = vadd.f32 %v6740_v60, %v1000_v53  ;;  %v1032_v60 = vld [vmem:[#allocation3] sm:$0x1] }
 0x157   :  { %1029 = vst [vmem:[#allocation3 + $0x30] sm:$0xff] %v1021_v28  ;;  %v1037_v15 = vld [vmem:[#allocation3 + $0x28] sm:$0x1] }
 0x159   :  { %v1036_v55 = vld [vmem:[#allocation3 + $0x20] sm:$0x1] }
 0x15c   :  { %v1039_v13 = vld [vmem:[#allocation3 + $0x38] sm:$0x1] }
 0x15d   :  { %v1127_v56 = vpop.f32.mrf.mxu0 }
 0x15e   :  { %v1038_v42 = vld [vmem:[#allocation3 + $0x30] sm:$0x1] }
 0x15f   :  { %v7999_v26 = vpop.f32.mrf.mxu0 }
 0x165   :  { %v1278_v21 = vpop.f32.mrf.mxu1 }
 0x166   :  { %v1279_v57 = vadd.f32 %v1278_v21, %v1127_v56 }
 0x167   :  { %v8034_v40 = vpop.f32.mrf.mxu1 }
 0x17e   :  { %v1382_v7 = vpop.f32.mrf.mxu0 }
 0x17f   :  { %v1383_v38 = vadd.f32 %v1382_v7, %v1279_v57 }
 0x180   :  { %v8069_v37 = vpop.f32.mrf.mxu0 }
 0x187   :  { %v1471_v5 = vpop.f32.mrf.mxu1 }
 0x188   :  { %v1472_v63 = vadd.f32 %v1471_v5, %v1383_v38 }
 0x189   :  { %v8104_v44 = vpop.f32.mrf.mxu1 }
 0x1a0   :  { %v1590_v8 = vpop.f32.mrf.mxu0 }
 0x1a1   :  { %v1591_v50 = vadd.f32 %v1590_v8, %v1472_v63 }
 0x1a2   :  { %v8139_v32 = vpop.f32.mrf.mxu0 }
 0x1a9   :  { %v1677_v59 = vpop.f32.mrf.mxu1 }
 0x1aa   :  { %v1678_v45 = vadd.f32 %v1677_v59, %v1591_v50 }
 0x1ab   :  { %v8174_v52 = vpop.f32.mrf.mxu1 }
 0x1ac   :  { %v1682_v17 = vrot.slane %v1678_v45, 1  ;;  %v1683_v22 = vrot.slane %v1678_v45, 2  ;;  %v1684_v35 = vrot.slane %v1678_v45, 3  ;;  %v1685_v0 = vrot.slane %v1678_v45, 4 }
 0x1ad   :  { %v1686_v36 = vrot.slane %v1678_v45, 5  ;;  %v1697_v46 = vadd.f32 %v1678_v45, %v1032_v60  ;;  %v1687_v23 = vrot.slane %v1678_v45, 6  ;;  %v1688_v34 = vrot.slane %v1678_v45, 7 }
 0x1ae   :  { %v1698_v49 = vadd.f32 %v1682_v17, %v1033_v29  ;;  %v1699_v3 = vadd.f32 %v1683_v22, %v1034_v33  ;;  %v1700_v41 = vadd.f32 %v1684_v35, %v1035_v62  ;;  %v1701_v2 = vadd.f32 %v1685_v0, %v1036_v55  ;;  %v12719_v17 = vld [vmem:[#allocation13_spill] sm:$0xff]  ;;  %v12720_v22 = vld [vmem:[#allocation11_spill] sm:$0xff]  ;;  %v12721_v35 = vld [vmem:[#allocation16_spill] sm:$0xff] }
 0x1af   :  { %9647 = vtanh.f32 %v1697_v46  ;;  %v1702_v14 = vadd.f32 %v1686_v36, %v1037_v15  ;;  %v1703_v10 = vadd.f32 %v1687_v23, %v1038_v42  ;;  %v1704_v16 = vadd.f32 %v1688_v34, %v1039_v13  ;;  %v12722_v0 = vld [vmem:[#allocation15_spill] sm:$0xff]  ;;  %v12723_v62 = vld [vmem:[#allocation20_spill] sm:$0xff]  ;;  %v12724_v33 = vld [vmem:[#allocation18_spill] sm:$0xff] }
 0x1b0   :  { %9649 = vtanh.f32 %v1698_v49  ;;  %v12718_v45 = vmov 0.0   ;;  %v12725_v36 = vld [vmem:[#allocation26_spill] sm:$0xff]  ;;  %v12728_v55 = vld [vmem:[#allocation25_spill] sm:$0xff]  ;;  %v12735_v42 = vld [vmem:[#allocation44_spill] sm:$0xff] }
 0x1b1   :  { %9651 = vtanh.f32 %v1699_v3  ;;  %v12726_v46 = vld [vmem:[#allocation22_spill] sm:$0xff]  ;;  %v12729_v49 = vld [vmem:[#allocation33_spill] sm:$0xff] }
 0x1b2   :  { %9653 = vtanh.f32 %v1700_v41  ;;  %v12727_v23 = vld [vmem:[#allocation30_spill] sm:$0xff]  ;;  %v12730_v3 = vld [vmem:[#allocation29_spill] sm:$0xff] }
 0x1b3   :  { %9655 = vtanh.f32 %v1701_v2  ;;  %v12731_v41 = vld [vmem:[#allocation37_spill] sm:$0xff]  ;;  %v12732_v34 = vld [vmem:[#allocation34_spill] sm:$0xff] }
 0x1b4   :  { %9657 = vtanh.f32 %v1702_v14  ;;  %v12733_v15 = vld [vmem:[#allocation38_spill] sm:$0xff]  ;;  %v12734_v2 = vld [vmem:[#allocation41_spill] sm:$0xff]  ;;  %v12736_v14 = vld [vmem:[#allocation4_spill] sm:$0xff] }
 0x1b5   :  { %9659 = vtanh.f32 %v1703_v10  ;;  %v12737_v13 = vld [vmem:[#allocation5_spill] sm:$0xff]  ;;  %v12738_v10 = vld [vmem:[#allocation6_spill] sm:$0xff] }
 0x1b6   :  { %9661 = vtanh.f32 %v1704_v16  ;;  %v12739_v16 = vld [vmem:[#allocation8_spill] sm:$0xff] }
 0x1bc   :  { %v9648_v54 = vpop.eup %9647 }
 0x1bd   :  { %v9650_v6 = vpop.eup %9649  ;;  %1713 = vst [vmem:[%s12544_s5] sm:$0x1] %v9648_v54 }
 0x1be   :  { %v9652_v20 = vpop.eup %9651  ;;  %1714 = vst [vmem:[%s12544_s5 + $0x8] sm:$0x1] %v9650_v6  ;;  %v1737_v18 = vrot.slane %v9650_v6, 7  ;;  %v12741_v6 = vld [vmem:[#allocation14_spill] sm:$0xff] }
 0x1bf   :  { %v9654_v4 = vpop.eup %9653  ;;  %1715 = vst [vmem:[%s12544_s5 + $0x10] sm:$0x1] %v9652_v20  ;;  %v1740_v19 = vrot.slane %v9652_v20, 6  ;;  %v12742_v20 = vld [vmem:[#allocation17_spill] sm:$0xff] }
 0x1c0   :  { %v9656_v43 = vpop.eup %9655  ;;  %1716 = vst [vmem:[%s12544_s5 + $0x18] sm:$0x1] %v9654_v4  ;;  %v1739_v53 = vsel %vm1738_vm1, %v1737_v18, %v9648_v54  ;;  %v1743_v28 = vrot.slane %v9654_v4, 5  ;;  %v12740_v54 = vld [vmem:[#allocation10_spill] sm:$0xff]  ;;  %v12743_v18 = vld [vmem:[#allocation21_spill] sm:$0xff]  ;;  %v12744_v4 = vld [vmem:[#allocation24_spill] sm:$0xff] }
 0x1c1   :  { %v9658_v56 = vpop.eup %9657  ;;  %1717 = vst [vmem:[%s12544_s5 + $0x20] sm:$0x1] %v9656_v43  ;;  %v1742_v26 = vsel %vm1741_vm2, %v1740_v19, %v1739_v53  ;;  %v1746_v21 = vrot.slane %v9656_v43, 4  ;;  %v12745_v19 = vld [vmem:[#allocation28_spill] sm:$0xff] }
 0x1c2   :  { %v9660_v40 = vpop.eup %9659  ;;  %1718 = vst [vmem:[%s12544_s5 + $0x28] sm:$0x1] %v9658_v56  ;;  %v1745_v7 = vsel %vm1744_vm3, %v1743_v28, %v1742_v26  ;;  %v1749_v37 = vrot.slane %v9658_v56, 3  ;;  %v12746_v43 = vld [vmem:[#allocation32_spill] sm:$0xff]  ;;  %v12749_v56 = vld [vmem:[#allocation43_spill] sm:$0xff] }
 0x1c3   :  { %v9662_v5 = vpop.eup %9661  ;;  %1719 = vst [vmem:[%s12544_s5 + $0x30] sm:$0x1] %v9660_v40  ;;  %v1748_v44 = vsel %vm1747_vm4, %v1746_v21, %v1745_v7  ;;  %v1752_v8 = vrot.slane %v9660_v40, 2  ;;  %v12747_v53 = vld [vmem:[#allocation36_spill] sm:$0xff]  ;;  %v12750_v26 = vld [vmem:[#allocation7_spill] sm:$0xff]  ;;  %v12751_v21 = vld [vmem:[#allocation46_spill] sm:$0xff] }
 0x1c4   :  { %1720 = vst [vmem:[%s12544_s5 + $0x38] sm:$0x1] %v9662_v5  ;;  %v1751_v57 = vsel %vm1750_vm5, %v1749_v37, %v1748_v44  ;;  %v1755_v32 = vrot.slane %v9662_v5, 1  ;;  %v12748_v28 = vld [vmem:[#allocation40_spill] sm:$0xff]  ;;  %v12752_v40 = vld [vmem:[#allocation9_spill] sm:$0xff]  ;;  %v12755_v5 = vld [vmem:[#allocation19_spill] sm:$0xff] }
 0x1c5   :  { %v1754_v38 = vsel %vm1753_vm6, %v1752_v8, %v1751_v57  ;;  %v12753_v7 = vld [vmem:[#allocation48_spill] sm:$0xff]  ;;  %v12756_v44 = vld [vmem:[#allocation23_spill] sm:$0xff] }
 0x1c6   :  { %v1757_v63 = vsel %vm1756_vm7, %v1755_v32, %v1754_v38  ;;  %v12754_v37 = vld [vmem:[#allocation12_spill] sm:$0xff]  ;;  %v12757_v8 = vld [vmem:[#allocation27_spill] sm:$0xff] }
 0x1c7   :  { %v10894_v50 = vand.u32 4294901760, %v1757_v63  ;;  %v12758_v57 = vld [vmem:[#allocation31_spill] sm:$0xff] }
 0x1c8   :  { %v12759_v32 = vld [vmem:[#allocation35_spill] sm:$0xff] }
 0x1c9   :  { %v10897_v59 = vsub.f32 %v1757_v63, %v10894_v50  ;;  %8243 = vmatmul.mubr.f32.vlgmr.msra.gmra.mxu1 %v10894_v50  ;;  %v12760_v38 = vld [vmem:[#allocation39_spill] sm:$0xff]  ;;  %v12761_v63 = vld [vmem:[#allocation42_spill] sm:$0xff] }
 0x1ca   :  { %8281 = vmatpush3.msra.mxu1 %v10286_v9  ;;  %8312 = vmatprep.mubr.msk.f32.mxu1 %vm9776_vm0, %v12718_v45 }
 0x1cb   :  { %8282 = vmatprep.subr.mxu1 %v12718_v45  ;;  %v1842_v29 = vand.u32 4294901760, %v10897_v59 }
 0x1cc   :  { %8283 = vmatpush3.msra.mxu1 %v10297_v11 }
 0x1cd   :  { %8284 = vmatprep.subr.mxu1 %v12718_v45  ;;  %v1843_v52 = vsub.f32 %v10897_v59, %v1842_v29 }
 0x1ce   :  { %8285 = vmatpush3.msra.mxu1 %v10311_v27 }
 0x1cf   :  { %8286 = vmatprep.subr.mxu1 %v12718_v45  ;;  %v1844_v60 = vand.u32 4294901760, %v1843_v52  ;;  %v12765_v52 = vld [vmem:[#allocation50_spill] sm:$0xff] }
 0x1d0   :  { %8287 = vmatpush3.msra.mxu1 %v10331_v47 }
 0x1d1   :  { %8288 = vmatprep.subr.mxu1 %v12718_v45  ;;  %8208 = vmatmul.mubr.f32.vlgmr.msra.gmra.mxu0 %v1844_v60  ;;  %v12766_v60 = vld [vmem:[#allocation51_spill] sm:$0xff] }
 0x1d2   :  { %8246 = vmatpush3.msra.mxu0 %v10305_v24  ;;  %8289 = vmatpush3.msra.mxu1 %v10340_v1 }
 0x1d3   :  { %8247 = vmatprep.subr.mxu0 %v12718_v45  ;;  %8290 = vmatprep.subr.mxu1 %v12718_v45 }
 0x1d4   :  { %8248 = vmatpush3.msra.mxu0 %v10319_v39  ;;  %8291 = vmatpush3.msra.mxu1 %v10362_v30 }
 0x1d5   :  { %8249 = vmatprep.subr.mxu0 %v12718_v45  ;;  %8292 = vmatprep.subr.mxu1 %v12718_v45 }
 0x1d6   :  { %8250 = vmatpush3.msra.mxu0 %v10336_v58  ;;  %8293 = vmatpush3.msra.mxu1 %v10381_v51 }
 0x1d7   :  { %8251 = vmatprep.subr.mxu0 %v12718_v45  ;;  %8294 = vmatprep.subr.mxu1 %v12718_v45 }
 0x1d8   :  { %8252 = vmatpush3.msra.mxu0 %v10358_v25  ;;  %8295 = vmatpush3.msra.mxu1 %v10395_v12 }
 0x1d9   :  { %8253 = vmatprep.subr.mxu0 %v12718_v45  ;;  %8296 = vmatprep.subr.mxu1 %v12718_v45 }
 0x1da   :  { %8254 = vmatpush3.msra.mxu0 %v10375_v31  ;;  %8297 = vmatpush3.msra.mxu1 %v10412_v48 }
 0x1db   :  { %8255 = vmatprep.subr.mxu0 %v12718_v45  ;;  %8298 = vmatprep.subr.mxu1 %v12718_v45 }
 0x1dc   :  { %8256 = vmatpush3.msra.mxu0 %v10398_v61  ;;  %8299 = vmatpush3.msra.mxu1 %v12719_v17 }
 0x1dd   :  { %8257 = vmatprep.subr.mxu0 %v12718_v45  ;;  %8300 = vmatprep.subr.mxu1 %v12718_v45 }
 0x1de   :  { %8258 = vmatpush3.msra.mxu0 %v12720_v22  ;;  %8301 = vmatpush3.msra.mxu1 %v12721_v35 }
 0x1df   :  { %8259 = vmatprep.subr.mxu0 %v12718_v45  ;;  %8302 = vmatprep.subr.mxu1 %v12718_v45 }
 0x1e0   :  { %8260 = vmatpush3.msra.mxu0 %v12722_v0  ;;  %8303 = vmatpush3.msra.mxu1 %v12723_v62 }
 0x1e1   :  { %8261 = vmatprep.subr.mxu0 %v12718_v45  ;;  %8304 = vmatprep.subr.mxu1 %v12718_v45 }
 0x1e2   :  { %8262 = vmatpush3.msra.mxu0 %v12724_v33  ;;  %8305 = vmatpush3.msra.mxu1 %v12725_v36 }
 0x1e3   :  { %8263 = vmatprep.subr.mxu0 %v12718_v45  ;;  %8306 = vmatprep.subr.mxu1 %v12718_v45 }
 0x1e4   :  { %8264 = vmatpush3.msra.mxu0 %v12726_v46  ;;  %8307 = vmatpush3.msra.mxu1 %v12727_v23 }
 0x1e5   :  { %8265 = vmatprep.subr.mxu0 %v12718_v45  ;;  %8308 = vmatprep.subr.mxu1 %v12718_v45 }
 0x1e6   :  { %8266 = vmatpush3.msra.mxu0 %v12728_v55  ;;  %8309 = vmatpush3.msra.mxu1 %v12729_v49 }
 0x1e7   :  { %8267 = vmatprep.subr.mxu0 %v12718_v45  ;;  %8310 = vmatprep.subr.mxu1 %v12718_v45 }
 0x1e8   :  { %8268 = vmatpush3.msra.mxu0 %v12730_v3  ;;  %8311 = vmatpush3.msra.mxu1 %v12731_v41 }
 0x1e9   :  { %8269 = vmatprep.subr.mxu0 %v12718_v45  ;;  %8313 = vmatmul.mubr.f32.vlgmr.msra.gmra.mxu1 %v1842_v29  ;;  %v12764_v29 = vld [vmem:[#allocation49_spill] sm:$0xff] }
 0x1ea   :  { %8350 = vmatprep.subr.mxu1 %v12718_v45  ;;  %8270 = vmatpush3.msra.mxu0 %v12732_v34 }
 0x1eb   :  { %8351 = vmatpush3.msra.mxu1 %v10286_v9  ;;  %8271 = vmatprep.subr.mxu0 %v12718_v45 }
 0x1ec   :  { %8352 = vmatprep.subr.mxu1 %v12718_v45  ;;  %8272 = vmatpush3.msra.mxu0 %v12733_v15 }
 0x1ed   :  { %8353 = vmatpush3.msra.mxu1 %v10297_v11  ;;  %8273 = vmatprep.subr.mxu0 %v12718_v45 }
 0x1ee   :  { %8354 = vmatprep.subr.mxu1 %v12718_v45  ;;  %8274 = vmatpush3.msra.mxu0 %v12734_v2 }
 0x1ef   :  { %8355 = vmatpush3.msra.mxu1 %v10311_v27  ;;  %8275 = vmatprep.subr.mxu0 %v12718_v45 }
 0x1f0   :  { %8356 = vmatprep.subr.mxu1 %v12718_v45  ;;  %8276 = vmatpush3.msra.mxu0 %v12735_v42 }
 0x1f1   :  { %8277 = vmatprep.mubr.msk.f32.mxu0 %vm9776_vm0, %v12718_v45  ;;  %8357 = vmatpush3.msra.mxu1 %v10331_v47 }
 0x1f2   :  { %8278 = vmatmul.mubr.f32.vlgmr.msra.gmra.mxu0 %v10897_v59  ;;  %8315 = vmatprep.subr.mxu0 %v12718_v45  ;;  %v12763_v59 = vld [vmem:[#allocation47_spill] sm:$0xff] }
 0x1f3   :  { %8358 = vmatprep.subr.mxu1 %v12718_v45  ;;  %8316 = vmatpush3.msra.mxu0 %v12736_v14 }
 0x1f4   :  { %8359 = vmatpush3.msra.mxu1 %v10340_v1  ;;  %8317 = vmatprep.subr.mxu0 %v12718_v45 }
 0x1f5   :  { %8360 = vmatprep.subr.mxu1 %v12718_v45  ;;  %8318 = vmatpush3.msra.mxu0 %v12737_v13 }
 0x1f6   :  { %8361 = vmatpush3.msra.mxu1 %v10362_v30  ;;  %8319 = vmatprep.subr.mxu0 %v12718_v45 }
 0x1f7   :  { %8362 = vmatprep.subr.mxu1 %v12718_v45  ;;  %8320 = vmatpush3.msra.mxu0 %v12738_v10 }
 0x1f8   :  { %8363 = vmatpush3.msra.mxu1 %v10381_v51  ;;  %8321 = vmatprep.subr.mxu0 %v12718_v45 }
 0x1f9   :  { %8364 = vmatprep.subr.mxu1 %v12718_v45  ;;  %8322 = vmatpush3.msra.mxu0 %v12739_v16 }
 0x1fa   :  { %8365 = vmatpush3.msra.mxu1 %v10395_v12  ;;  %8323 = vmatprep.subr.mxu0 %v12718_v45 }
 0x1fb   :  { %8366 = vmatprep.subr.mxu1 %v12718_v45  ;;  %8324 = vmatpush3.msra.mxu0 %v12740_v54 }
 0x1fc   :  { %8367 = vmatpush3.msra.mxu1 %v10412_v48  ;;  %8325 = vmatprep.subr.mxu0 %v12718_v45 }
 0x1fd   :  { %8368 = vmatprep.subr.mxu1 %v12718_v45  ;;  %8326 = vmatpush3.msra.mxu0 %v12741_v6 }
 0x1fe   :  { %8369 = vmatpush3.msra.mxu1 %v12719_v17  ;;  %8327 = vmatprep.subr.mxu0 %v12718_v45 }
 0x1ff   :  { %8370 = vmatprep.subr.mxu1 %v12718_v45  ;;  %8328 = vmatpush3.msra.mxu0 %v12742_v20  ;;  %v1725_v20 = vld [vmem:[#allocation3 + $0x21] sm:$0x1] }
 0x200   :  { %8371 = vmatpush3.msra.mxu1 %v12721_v35  ;;  %8329 = vmatprep.subr.mxu0 %v12718_v45 }
 0x201   :  { %8372 = vmatprep.subr.mxu1 %v12718_v45  ;;  %8330 = vmatpush3.msra.mxu0 %v12743_v18 }
 0x202   :  { %8373 = vmatpush3.msra.mxu1 %v12723_v62  ;;  %8331 = vmatprep.subr.mxu0 %v12718_v45 }
 0x203   :  { %8374 = vmatprep.subr.mxu1 %v12718_v45  ;;  %8332 = vmatpush3.msra.mxu0 %v12744_v4  ;;  %v1723_v4 = vld [vmem:[#allocation3 + $0x11] sm:$0x1] }
 0x204   :  { %8375 = vmatpush3.msra.mxu1 %v12725_v36  ;;  %8333 = vmatprep.subr.mxu0 %v12718_v45 }
 0x205   :  { %8376 = vmatprep.subr.mxu1 %v12718_v45  ;;  %8334 = vmatpush3.msra.mxu0 %v12745_v19 }
 0x206   :  { %8377 = vmatpush3.msra.mxu1 %v12727_v23  ;;  %8335 = vmatprep.subr.mxu0 %v12718_v45 }
 0x207   :  { %8378 = vmatprep.subr.mxu1 %v12718_v45  ;;  %8336 = vmatpush3.msra.mxu0 %v12746_v43 }
 0x208   :  { %8379 = vmatpush3.msra.mxu1 %v12729_v49  ;;  %8337 = vmatprep.subr.mxu0 %v12718_v45 }
 0x209   :  { %8380 = vmatprep.subr.mxu1 %v12718_v45  ;;  %8338 = vmatpush3.msra.mxu0 %v12747_v53 }
 0x20a   :  { %8381 = vmatpush3.msra.mxu1 %v12731_v41  ;;  %8382 = vmatprep.mubr.msk.f32.mxu1 %vm9776_vm0, %v12718_v45 }
 0x20b   :  { %8339 = vmatprep.subr.mxu0 %v12718_v45  ;;  %8383 = vmatmul.mubr.f32.vlgmr.msra.gmra.mxu1 %v10894_v50 }
 0x20c   :  { %8340 = vmatpush3.msra.mxu0 %v12748_v28  ;;  %8347 = vmatprep.mubr.msk.f32.mxu0 %vm9776_vm0, %v12718_v45  ;;  %v1721_v28 = vld [vmem:[#allocation3 + $0x1] sm:$0x1] }
 0x20d   :  { %8341 = vmatprep.subr.mxu0 %v12718_v45  ;;  %8420 = vmatprep.subr.mxu1 %v12718_v45 }
 0x20e   :  { %8342 = vmatpush3.msra.mxu0 %v12749_v56  ;;  %8421 = vmatpush3.msra.mxu1 %v12750_v26  ;;  %v1722_v56 = vld [vmem:[#allocation3 + $0x9] sm:$0x1] }
 0x20f   :  { %8343 = vmatprep.subr.mxu0 %v12718_v45  ;;  %8422 = vmatprep.subr.mxu1 %v12718_v45 }
 0x210   :  { %8344 = vmatpush3.msra.mxu0 %v12751_v21  ;;  %8423 = vmatpush3.msra.mxu1 %v12752_v40 }
 0x211   :  { %8345 = vmatprep.subr.mxu0 %v12718_v45  ;;  %8424 = vmatprep.subr.mxu1 %v12718_v45 }
 0x212   :  { %8346 = vmatpush3.msra.mxu0 %v12753_v7  ;;  %8425 = vmatpush3.msra.mxu1 %v12754_v37 }
 0x213   :  { %8348 = vmatmul.mubr.f32.vlgmr.msra.gmra.mxu0 %v10894_v50  ;;  %8426 = vmatprep.subr.mxu1 %v12718_v45  ;;  %v12762_v50 = vld [vmem:[#allocation45_spill] sm:$0xff] }
 0x214   :  { %8427 = vmatpush3.msra.mxu1 %v12755_v5  ;;  %8385 = vmatprep.subr.mxu0 %v12718_v45 }
 0x215   :  { %8428 = vmatprep.subr.mxu1 %v12718_v45  ;;  %8386 = vmatpush3.msra.mxu0 %v10286_v9 }
 0x216   :  { %8429 = vmatpush3.msra.mxu1 %v12756_v44  ;;  %8387 = vmatprep.subr.mxu0 %v12718_v45 }
 0x217   :  { %8430 = vmatprep.subr.mxu1 %v12718_v45  ;;  %8388 = vmatpush3.msra.mxu0 %v10297_v11 }
 0x218   :  { %8431 = vmatpush3.msra.mxu1 %v12757_v8  ;;  %8389 = vmatprep.subr.mxu0 %v12718_v45 }
 0x219   :  { %8432 = vmatprep.subr.mxu1 %v12718_v45  ;;  %8390 = vmatpush3.msra.mxu0 %v10311_v27 }
 0x21a   :  { %8433 = vmatpush3.msra.mxu1 %v12758_v57  ;;  %8391 = vmatprep.subr.mxu0 %v12718_v45 }
 0x21b   :  { %8434 = vmatprep.subr.mxu1 %v12718_v45  ;;  %8392 = vmatpush3.msra.mxu0 %v10331_v47 }
 0x21c   :  { %8435 = vmatpush3.msra.mxu1 %v12759_v32  ;;  %8393 = vmatprep.subr.mxu0 %v12718_v45 }
 0x21d   :  { %8436 = vmatprep.subr.mxu1 %v12718_v45  ;;  %8394 = vmatpush3.msra.mxu0 %v10340_v1 }
 0x21e   :  { %8437 = vmatpush3.msra.mxu1 %v12760_v38  ;;  %8395 = vmatprep.subr.mxu0 %v12718_v45 }
 0x21f   :  { %8438 = vmatprep.subr.mxu1 %v12718_v45  ;;  %8396 = vmatpush3.msra.mxu0 %v10362_v30 }
 0x220   :  { %8439 = vmatpush3.msra.mxu1 %v12761_v63  ;;  %8397 = vmatprep.subr.mxu0 %v12718_v45 }
 0x221   :  { %8440 = vmatprep.subr.mxu1 %v12718_v45  ;;  %8398 = vmatpush3.msra.mxu0 %v10381_v51 }
 0x222   :  { %8441 = vmatpush3.msra.mxu1 %v12762_v50  ;;  %8399 = vmatprep.subr.mxu0 %v12718_v45 }
 0x223   :  { %8442 = vmatprep.subr.mxu1 %v12718_v45  ;;  %8400 = vmatpush3.msra.mxu0 %v10395_v12 }
 0x224   :  { %8443 = vmatpush3.msra.mxu1 %v12763_v59  ;;  %8401 = vmatprep.subr.mxu0 %v12718_v45 }
 0x225   :  { %8444 = vmatprep.subr.mxu1 %v12718_v45  ;;  %8402 = vmatpush3.msra.mxu0 %v10412_v48 }
 0x226   :  { %8445 = vmatpush3.msra.mxu1 %v12764_v29  ;;  %8403 = vmatprep.subr.mxu0 %v12718_v45  ;;  %v12767_v29 = vld [vmem:[#allocation52_spill] sm:$0xff] }
 0x227   :  { %8446 = vmatprep.subr.mxu1 %v12718_v45  ;;  %8404 = vmatpush3.msra.mxu0 %v12719_v17 }
 0x228   :  { %8447 = vmatpush3.msra.mxu1 %v12765_v52  ;;  %8405 = vmatprep.subr.mxu0 %v12718_v45 }
 0x229   :  { %8448 = vmatprep.subr.mxu1 %v12718_v45  ;;  %8406 = vmatpush3.msra.mxu0 %v12721_v35 }
 0x22a   :  { %8449 = vmatpush3.msra.mxu1 %v12766_v60  ;;  %8407 = vmatprep.subr.mxu0 %v12718_v45 }
 0x22b   :  { %8450 = vmatprep.subr.mxu1 %v12718_v45  ;;  %8408 = vmatpush3.msra.mxu0 %v12723_v62 }
 0x22c   :  { %8451 = vmatpush3.msra.mxu1 %v12767_v29  ;;  %8409 = vmatprep.subr.mxu0 %v12718_v45 }
 0x22d   :  { %8452 = vmatprep.mubr.msk.f32.mxu1 %vm9776_vm0, %v12718_v45  ;;  %8490 = vmatprep.subr.mxu1 %v12718_v45 }
 0x22e   :  { %8410 = vmatpush3.msra.mxu0 %v12725_v36  ;;  %8417 = vmatprep.mubr.msk.f32.mxu0 %vm9776_vm0, %v12718_v45 }
 0x22f   :  { %8411 = vmatprep.subr.mxu0 %v12718_v45 }
 0x230   :  { %8412 = vmatpush3.msra.mxu0 %v12727_v23 }
 0x231   :  { %8413 = vmatprep.subr.mxu0 %v12718_v45 }
 0x232   :  { %8414 = vmatpush3.msra.mxu0 %v12729_v49 }
 0x233   :  { %8415 = vmatprep.subr.mxu0 %v12718_v45 }
 0x234   :  { %8416 = vmatpush3.msra.mxu0 %v12731_v41 }
 0x235   :  { %8455 = vmatprep.subr.mxu0 %v12718_v45 }
 0x289   :  { %v1997_v29 = vpop.f32.mrf.mxu1 }
 0x28b   :  { %v8244_v60 = vpop.f32.mrf.mxu1 }
 0x291   :  { %v1846_v52 = vpop.f32.mrf.mxu0 }
 0x292   :  { %v1998_v8 = vadd.f32 %v1997_v29, %v1846_v52 }
 0x293   :  { %v8209_v59 = vpop.f32.mrf.mxu0 }
 0x294   :  { %v1724_v59 = vld [vmem:[#allocation3 + $0x19] sm:$0x1] }
 0x2a9   :  { %v2190_v50 = vpop.f32.mrf.mxu1 }
 0x2ab   :  { %v8314_v63 = vpop.f32.mrf.mxu1 }
 0x2b2   :  { %v2101_v38 = vpop.f32.mrf.mxu0 }
 0x2b3   :  { %v2102_v5 = vadd.f32 %v2101_v38, %v1998_v8 }
 0x2b4   :  { %v8279_v32 = vpop.f32.mrf.mxu0 }
 0x2b5   :  { %v2191_v37 = vadd.f32 %v2190_v50, %v2102_v5 }
 0x2cb   :  { %v2396_v57 = vpop.f32.mrf.mxu1 }
 0x2cd   :  { %v8384_v44 = vpop.f32.mrf.mxu1 }
 0x2d3   :  { %v2309_v7 = vpop.f32.mrf.mxu0 }
 0x2d4   :  { %v2310_v40 = vadd.f32 %v2309_v7, %v2191_v37  ;;  %v1726_v7 = vld [vmem:[#allocation3 + $0x29] sm:$0x1] }
 0x2d5   :  { %v8349_v21 = vpop.f32.mrf.mxu0 }
 0x2d6   :  { %v2397_v26 = vadd.f32 %v2396_v57, %v2310_v40  ;;  %v1727_v40 = vld [vmem:[#allocation3 + $0x31] sm:$0x1]  ;;  %v1728_v57 = vld [vmem:[#allocation3 + $0x39] sm:$0x1] }
 0x2d8   :  { %v2401_v53 = vrot.slane %v2397_v26, 1  ;;  %v2402_v43 = vrot.slane %v2397_v26, 2  ;;  %v2403_v60 = vrot.slane %v2397_v26, 3  ;;  %v2404_v19 = vrot.slane %v2397_v26, 4 }
 0x2d9   :  { %v2416_v63 = vadd.f32 %v2397_v26, %v1721_v28  ;;  %v2405_v18 = vrot.slane %v2397_v26, 5  ;;  %v2406_v32 = vrot.slane %v2397_v26, 6  ;;  %v2407_v8 = vrot.slane %v2397_v26, 7 }
 0x2da   :  { %v2417_v29 = vadd.f32 %v2401_v53, %v1722_v56  ;;  %v2418_v44 = vadd.f32 %v2402_v43, %v1723_v4  ;;  %v2419_v5 = vadd.f32 %v2403_v60, %v1724_v59  ;;  %v2420_v21 = vadd.f32 %v2404_v19, %v1725_v20 }
 0x2db   :  { %9663 = vtanh.f32 %v2416_v63  ;;  %v2421_v37 = vadd.f32 %v2405_v18, %v1726_v7  ;;  %v2422_v38 = vadd.f32 %v2406_v32, %v1727_v40  ;;  %v2423_v50 = vadd.f32 %v2407_v8, %v1728_v57 }
 0x2dc   :  { %9665 = vtanh.f32 %v2417_v29 }
 0x2dd   :  { %9667 = vtanh.f32 %v2418_v44 }
 0x2de   :  { %9669 = vtanh.f32 %v2419_v5 }
 0x2df   :  { %9671 = vtanh.f32 %v2420_v21 }
 0x2e0   :  { %9673 = vtanh.f32 %v2421_v37 }
 0x2e1   :  { %9675 = vtanh.f32 %v2422_v38 }
 0x2e2   :  { %9677 = vtanh.f32 %v2423_v50 }
 0x2e8   :  { %v9664_v28 = vpop.eup %9663 }
 0x2e9   :  { %v9666_v53 = vpop.eup %9665  ;;  %2432 = vst [vmem:[%s12544_s5 + $0x1] sm:$0x1] %v9664_v28 }
 0x2ea   :  { %v9668_v4 = vpop.eup %9667  ;;  %2433 = vst [vmem:[%s12544_s5 + $0x9] sm:$0x1] %v9666_v53  ;;  %v2456_v20 = vrot.slane %v9666_v53, 7 }
 0x2eb   :  { %v9670_v18 = vpop.eup %9669  ;;  %2434 = vst [vmem:[%s12544_s5 + $0x11] sm:$0x1] %v9668_v4  ;;  %v2458_v19 = vrot.slane %v9668_v4, 6  ;;  %v12768_v4 = vld [vmem:[#allocation17_spill] sm:$0xff] }
 0x2ec   :  { %v9672_v43 = vpop.eup %9671  ;;  %2435 = vst [vmem:[%s12544_s5 + $0x19] sm:$0x1] %v9670_v18  ;;  %v2457_v56 = vsel %vm1738_vm1, %v2456_v20, %v9664_v28  ;;  %v2460_v26 = vrot.slane %v9670_v18, 5  ;;  %v12769_v20 = vld [vmem:[#allocation21_spill] sm:$0xff]  ;;  %v12770_v18 = vld [vmem:[#allocation24_spill] sm:$0xff] }
 0x2ed   :  { %v9674_v52 = vpop.eup %9673  ;;  %2436 = vst [vmem:[%s12544_s5 + $0x21] sm:$0x1] %v9672_v43  ;;  %v2459_v60 = vsel %vm1741_vm2, %v2458_v19, %v2457_v56  ;;  %v2462_v59 = vrot.slane %v9672_v43, 4  ;;  %v12771_v19 = vld [vmem:[#allocation28_spill] sm:$0xff] }
 0x2ee   :  { %v9676_v63 = vpop.eup %9675  ;;  %2437 = vst [vmem:[%s12544_s5 + $0x29] sm:$0x1] %v9674_v52  ;;  %v2461_v32 = vsel %vm1744_vm3, %v2460_v26, %v2459_v60  ;;  %v2464_v29 = vrot.slane %v9674_v52, 3  ;;  %v12772_v43 = vld [vmem:[#allocation32_spill] sm:$0xff]  ;;  %v12775_v52 = vld [vmem:[#allocation43_spill] sm:$0xff] }
 0x2ef   :  { %v9678_v44 = vpop.eup %9677  ;;  %2438 = vst [vmem:[%s12544_s5 + $0x31] sm:$0x1] %v9676_v63  ;;  %v2463_v8 = vsel %vm1747_vm4, %v2462_v59, %v2461_v32  ;;  %v2466_v5 = vrot.slane %v9676_v63, 2  ;;  %v12773_v56 = vld [vmem:[#allocation36_spill] sm:$0xff]  ;;  %v12776_v60 = vld [vmem:[#allocation7_spill] sm:$0xff]  ;;  %v12777_v59 = vld [vmem:[#allocation46_spill] sm:$0xff] }
 0x2f0   :  { %2439 = vst [vmem:[%s12544_s5 + $0x39] sm:$0x1] %v9678_v44  ;;  %v2465_v7 = vsel %vm1750_vm5, %v2464_v29, %v2463_v8  ;;  %v2468_v21 = vrot.slane %v9678_v44, 1  ;;  %v12774_v26 = vld [vmem:[#allocation40_spill] sm:$0xff]  ;;  %v12778_v63 = vld [vmem:[#allocation9_spill] sm:$0xff]  ;;  %v12781_v44 = vld [vmem:[#allocation19_spill] sm:$0xff] }
 0x2f1   :  { %v2467_v40 = vsel %vm1753_vm6, %v2466_v5, %v2465_v7  ;;  %v12779_v32 = vld [vmem:[#allocation48_spill] sm:$0xff]  ;;  %v12782_v8 = vld [vmem:[#allocation23_spill] sm:$0xff] }
 0x2f2   :  { %v2469_v37 = vsel %vm1756_vm7, %v2468_v21, %v2467_v40  ;;  %v12780_v29 = vld [vmem:[#allocation12_spill] sm:$0xff]  ;;  %v12783_v5 = vld [vmem:[#allocation27_spill] sm:$0xff] }
 0x2f3   :  { %v11140_v57 = vand.u32 4294901760, %v2469_v37  ;;  %v12784_v7 = vld [vmem:[#allocation31_spill] sm:$0xff] }
 0x2f4   :  { %v12785_v21 = vld [vmem:[#allocation35_spill] sm:$0xff] }
 0x2f5   :  { %v11143_v38 = vsub.f32 %v2469_v37, %v11140_v57  ;;  %8453 = vmatmul.mubr.f32.vlgmr.msra.gmra.mxu1 %v11140_v57  ;;  %v12786_v40 = vld [vmem:[#allocation39_spill] sm:$0xff]  ;;  %v12787_v37 = vld [vmem:[#allocation42_spill] sm:$0xff] }
 0x2f6   :  { %8491 = vmatpush3.msra.mxu1 %v10286_v9  ;;  %8522 = vmatprep.mubr.msk.f32.mxu1 %vm9776_vm0, %v12718_v45 }
 0x2f7   :  { %8492 = vmatprep.subr.mxu1 %v12718_v45  ;;  %v2554_v50 = vand.u32 4294901760, %v11143_v38 }
 0x2f8   :  { %8493 = vmatpush3.msra.mxu1 %v10297_v11 }
 0x2f9   :  { %8494 = vmatprep.subr.mxu1 %v12718_v45  ;;  %v2555_v28 = vsub.f32 %v11143_v38, %v2554_v50 }
 0x2fa   :  { %8495 = vmatpush3.msra.mxu1 %v10311_v27 }
 0x2fb   :  { %8496 = vmatprep.subr.mxu1 %v12718_v45  ;;  %v2556_v53 = vand.u32 4294901760, %v2555_v28  ;;  %v12791_v28 = vld [vmem:[#allocation50_spill] sm:$0xff] }
 0x2fc   :  { %8497 = vmatpush3.msra.mxu1 %v10331_v47 }
 0x2fd   :  { %8498 = vmatprep.subr.mxu1 %v12718_v45  ;;  %8418 = vmatmul.mubr.f32.vlgmr.msra.gmra.mxu0 %v2556_v53  ;;  %v12792_v53 = vld [vmem:[#allocation51_spill] sm:$0xff] }
 0x2fe   :  { %8456 = vmatpush3.msra.mxu0 %v10305_v24  ;;  %8499 = vmatpush3.msra.mxu1 %v10340_v1 }
 0x2ff   :  { %8457 = vmatprep.subr.mxu0 %v12718_v45  ;;  %8500 = vmatprep.subr.mxu1 %v12718_v45 }
 0x300   :  { %8458 = vmatpush3.msra.mxu0 %v10319_v39  ;;  %8501 = vmatpush3.msra.mxu1 %v10362_v30 }
 0x301   :  { %8459 = vmatprep.subr.mxu0 %v12718_v45  ;;  %8502 = vmatprep.subr.mxu1 %v12718_v45 }
 0x302   :  { %8460 = vmatpush3.msra.mxu0 %v10336_v58  ;;  %8503 = vmatpush3.msra.mxu1 %v10381_v51 }
 0x303   :  { %8461 = vmatprep.subr.mxu0 %v12718_v45  ;;  %8504 = vmatprep.subr.mxu1 %v12718_v45 }
 0x304   :  { %8462 = vmatpush3.msra.mxu0 %v10358_v25  ;;  %8505 = vmatpush3.msra.mxu1 %v10395_v12 }
 0x305   :  { %8463 = vmatprep.subr.mxu0 %v12718_v45  ;;  %8506 = vmatprep.subr.mxu1 %v12718_v45 }
 0x306   :  { %8464 = vmatpush3.msra.mxu0 %v10375_v31  ;;  %8507 = vmatpush3.msra.mxu1 %v10412_v48 }
 0x307   :  { %8465 = vmatprep.subr.mxu0 %v12718_v45  ;;  %8508 = vmatprep.subr.mxu1 %v12718_v45 }
 0x308   :  { %8466 = vmatpush3.msra.mxu0 %v10398_v61  ;;  %8509 = vmatpush3.msra.mxu1 %v12719_v17 }
 0x309   :  { %8467 = vmatprep.subr.mxu0 %v12718_v45  ;;  %8510 = vmatprep.subr.mxu1 %v12718_v45 }
 0x30a   :  { %8468 = vmatpush3.msra.mxu0 %v12720_v22  ;;  %8511 = vmatpush3.msra.mxu1 %v12721_v35 }
 0x30b   :  { %8469 = vmatprep.subr.mxu0 %v12718_v45  ;;  %8512 = vmatprep.subr.mxu1 %v12718_v45 }
 0x30c   :  { %8470 = vmatpush3.msra.mxu0 %v12722_v0  ;;  %8513 = vmatpush3.msra.mxu1 %v12723_v62 }
 0x30d   :  { %8471 = vmatprep.subr.mxu0 %v12718_v45  ;;  %8514 = vmatprep.subr.mxu1 %v12718_v45 }
 0x30e   :  { %8472 = vmatpush3.msra.mxu0 %v12724_v33  ;;  %8515 = vmatpush3.msra.mxu1 %v12725_v36 }
 0x30f   :  { %8473 = vmatprep.subr.mxu0 %v12718_v45  ;;  %8516 = vmatprep.subr.mxu1 %v12718_v45 }
 0x310   :  { %8474 = vmatpush3.msra.mxu0 %v12726_v46  ;;  %8517 = vmatpush3.msra.mxu1 %v12727_v23 }
 0x311   :  { %8475 = vmatprep.subr.mxu0 %v12718_v45  ;;  %8518 = vmatprep.subr.mxu1 %v12718_v45 }
 0x312   :  { %8476 = vmatpush3.msra.mxu0 %v12728_v55  ;;  %8519 = vmatpush3.msra.mxu1 %v12729_v49 }
 0x313   :  { %8477 = vmatprep.subr.mxu0 %v12718_v45  ;;  %8520 = vmatprep.subr.mxu1 %v12718_v45 }
 0x314   :  { %8478 = vmatpush3.msra.mxu0 %v12730_v3  ;;  %8521 = vmatpush3.msra.mxu1 %v12731_v41 }
 0x315   :  { %8479 = vmatprep.subr.mxu0 %v12718_v45  ;;  %8523 = vmatmul.mubr.f32.vlgmr.msra.gmra.mxu1 %v2554_v50  ;;  %v12790_v50 = vld [vmem:[#allocation49_spill] sm:$0xff] }
 0x316   :  { %8560 = vmatprep.subr.mxu1 %v12718_v45  ;;  %8480 = vmatpush3.msra.mxu0 %v12732_v34 }
 0x317   :  { %8561 = vmatpush3.msra.mxu1 %v10286_v9  ;;  %8481 = vmatprep.subr.mxu0 %v12718_v45 }
 0x318   :  { %8562 = vmatprep.subr.mxu1 %v12718_v45  ;;  %8482 = vmatpush3.msra.mxu0 %v12733_v15 }
 0x319   :  { %8563 = vmatpush3.msra.mxu1 %v10297_v11  ;;  %8483 = vmatprep.subr.mxu0 %v12718_v45 }
 0x31a   :  { %8564 = vmatprep.subr.mxu1 %v12718_v45  ;;  %8484 = vmatpush3.msra.mxu0 %v12734_v2 }
 0x31b   :  { %8565 = vmatpush3.msra.mxu1 %v10311_v27  ;;  %8485 = vmatprep.subr.mxu0 %v12718_v45 }
 0x31c   :  { %8566 = vmatprep.subr.mxu1 %v12718_v45  ;;  %8486 = vmatpush3.msra.mxu0 %v12735_v42 }
 0x31d   :  { %8487 = vmatprep.mubr.msk.f32.mxu0 %vm9776_vm0, %v12718_v45  ;;  %8567 = vmatpush3.msra.mxu1 %v10331_v47 }
 0x31e   :  { %8488 = vmatmul.mubr.f32.vlgmr.msra.gmra.mxu0 %v11143_v38  ;;  %8525 = vmatprep.subr.mxu0 %v12718_v45  ;;  %v12789_v38 = vld [vmem:[#allocation47_spill] sm:$0xff] }
 0x31f   :  { %8568 = vmatprep.subr.mxu1 %v12718_v45  ;;  %8526 = vmatpush3.msra.mxu0 %v12736_v14 }
 0x320   :  { %8569 = vmatpush3.msra.mxu1 %v10340_v1  ;;  %8527 = vmatprep.subr.mxu0 %v12718_v45 }
 0x321   :  { %8570 = vmatprep.subr.mxu1 %v12718_v45  ;;  %8528 = vmatpush3.msra.mxu0 %v12737_v13 }
 0x322   :  { %8571 = vmatpush3.msra.mxu1 %v10362_v30  ;;  %8529 = vmatprep.subr.mxu0 %v12718_v45 }
 0x323   :  { %8572 = vmatprep.subr.mxu1 %v12718_v45  ;;  %8530 = vmatpush3.msra.mxu0 %v12738_v10 }
 0x324   :  { %8573 = vmatpush3.msra.mxu1 %v10381_v51  ;;  %8531 = vmatprep.subr.mxu0 %v12718_v45 }
 0x325   :  { %8574 = vmatprep.subr.mxu1 %v12718_v45  ;;  %8532 = vmatpush3.msra.mxu0 %v12739_v16 }
 0x326   :  { %8575 = vmatpush3.msra.mxu1 %v10395_v12  ;;  %8533 = vmatprep.subr.mxu0 %v12718_v45 }
 0x327   :  { %8576 = vmatprep.subr.mxu1 %v12718_v45  ;;  %8534 = vmatpush3.msra.mxu0 %v12740_v54 }
 0x328   :  { %8577 = vmatpush3.msra.mxu1 %v10412_v48  ;;  %8535 = vmatprep.subr.mxu0 %v12718_v45 }
 0x329   :  { %8578 = vmatprep.subr.mxu1 %v12718_v45  ;;  %8536 = vmatpush3.msra.mxu0 %v12741_v6 }
 0x32a   :  { %8579 = vmatpush3.msra.mxu1 %v12719_v17  ;;  %8537 = vmatprep.subr.mxu0 %v12718_v45 }
 0x32b   :  { %8580 = vmatprep.subr.mxu1 %v12718_v45  ;;  %8538 = vmatpush3.msra.mxu0 %v12768_v4  ;;  %v2444_v4 = vld [vmem:[#allocation3 + $0x22] sm:$0x1] }
 0x32c   :  { %8581 = vmatpush3.msra.mxu1 %v12721_v35  ;;  %8539 = vmatprep.subr.mxu0 %v12718_v45 }
 0x32d   :  { %8582 = vmatprep.subr.mxu1 %v12718_v45  ;;  %8540 = vmatpush3.msra.mxu0 %v12769_v20 }
 0x32e   :  { %8583 = vmatpush3.msra.mxu1 %v12723_v62  ;;  %8541 = vmatprep.subr.mxu0 %v12718_v45 }
 0x32f   :  { %8584 = vmatprep.subr.mxu1 %v12718_v45  ;;  %8542 = vmatpush3.msra.mxu0 %v12770_v18  ;;  %v2442_v18 = vld [vmem:[#allocation3 + $0x12] sm:$0x1] }
 0x330   :  { %8585 = vmatpush3.msra.mxu1 %v12725_v36  ;;  %8543 = vmatprep.subr.mxu0 %v12718_v45 }
 0x331   :  { %8586 = vmatprep.subr.mxu1 %v12718_v45  ;;  %8544 = vmatpush3.msra.mxu0 %v12771_v19 }
 0x332   :  { %8587 = vmatpush3.msra.mxu1 %v12727_v23  ;;  %8545 = vmatprep.subr.mxu0 %v12718_v45 }
 0x333   :  { %8588 = vmatprep.subr.mxu1 %v12718_v45  ;;  %8546 = vmatpush3.msra.mxu0 %v12772_v43 }
 0x334   :  { %8589 = vmatpush3.msra.mxu1 %v12729_v49  ;;  %8547 = vmatprep.subr.mxu0 %v12718_v45 }
 0x335   :  { %8590 = vmatprep.subr.mxu1 %v12718_v45  ;;  %8548 = vmatpush3.msra.mxu0 %v12773_v56 }
 0x336   :  { %8591 = vmatpush3.msra.mxu1 %v12731_v41  ;;  %8592 = vmatprep.mubr.msk.f32.mxu1 %vm9776_vm0, %v12718_v45 }
 0x337   :  { %8549 = vmatprep.subr.mxu0 %v12718_v45  ;;  %8593 = vmatmul.mubr.f32.vlgmr.msra.gmra.mxu1 %v11140_v57 }
 0x338   :  { %8550 = vmatpush3.msra.mxu0 %v12774_v26  ;;  %8557 = vmatprep.mubr.msk.f32.mxu0 %vm9776_vm0, %v12718_v45  ;;  %v2440_v26 = vld [vmem:[#allocation3 + $0x2] sm:$0x1] }
 0x339   :  { %8551 = vmatprep.subr.mxu0 %v12718_v45  ;;  %8630 = vmatprep.subr.mxu1 %v12718_v45 }
 0x33a   :  { %8552 = vmatpush3.msra.mxu0 %v12775_v52  ;;  %8631 = vmatpush3.msra.mxu1 %v12776_v60  ;;  %v2441_v52 = vld [vmem:[#allocation3 + $0xa] sm:$0x1] }
 0x33b   :  { %8553 = vmatprep.subr.mxu0 %v12718_v45  ;;  %8632 = vmatprep.subr.mxu1 %v12718_v45 }
 0x33c   :  { %8554 = vmatpush3.msra.mxu0 %v12777_v59  ;;  %8633 = vmatpush3.msra.mxu1 %v12778_v63 }
 0x33d   :  { %8555 = vmatprep.subr.mxu0 %v12718_v45  ;;  %8634 = vmatprep.subr.mxu1 %v12718_v45 }
 0x33e   :  { %8556 = vmatpush3.msra.mxu0 %v12779_v32  ;;  %8635 = vmatpush3.msra.mxu1 %v12780_v29 }
 0x33f   :  { %8558 = vmatmul.mubr.f32.vlgmr.msra.gmra.mxu0 %v11140_v57  ;;  %8636 = vmatprep.subr.mxu1 %v12718_v45  ;;  %v12788_v57 = vld [vmem:[#allocation45_spill] sm:$0xff] }
 0x340   :  { %8637 = vmatpush3.msra.mxu1 %v12781_v44  ;;  %8595 = vmatprep.subr.mxu0 %v12718_v45 }
 0x341   :  { %8638 = vmatprep.subr.mxu1 %v12718_v45  ;;  %8596 = vmatpush3.msra.mxu0 %v10286_v9 }
 0x342   :  { %8639 = vmatpush3.msra.mxu1 %v12782_v8  ;;  %8597 = vmatprep.subr.mxu0 %v12718_v45 }
 0x343   :  { %8640 = vmatprep.subr.mxu1 %v12718_v45  ;;  %8598 = vmatpush3.msra.mxu0 %v10297_v11 }
 0x344   :  { %8641 = vmatpush3.msra.mxu1 %v12783_v5  ;;  %8599 = vmatprep.subr.mxu0 %v12718_v45 }
 0x345   :  { %8642 = vmatprep.subr.mxu1 %v12718_v45  ;;  %8600 = vmatpush3.msra.mxu0 %v10311_v27 }
 0x346   :  { %8643 = vmatpush3.msra.mxu1 %v12784_v7  ;;  %8601 = vmatprep.subr.mxu0 %v12718_v45 }
 0x347   :  { %8644 = vmatprep.subr.mxu1 %v12718_v45  ;;  %8602 = vmatpush3.msra.mxu0 %v10331_v47 }
 0x348   :  { %8645 = vmatpush3.msra.mxu1 %v12785_v21  ;;  %8603 = vmatprep.subr.mxu0 %v12718_v45 }
 0x349   :  { %8646 = vmatprep.subr.mxu1 %v12718_v45  ;;  %8604 = vmatpush3.msra.mxu0 %v10340_v1 }
 0x34a   :  { %8647 = vmatpush3.msra.mxu1 %v12786_v40  ;;  %8605 = vmatprep.subr.mxu0 %v12718_v45 }
 0x34b   :  { %8648 = vmatprep.subr.mxu1 %v12718_v45  ;;  %8606 = vmatpush3.msra.mxu0 %v10362_v30 }
 0x34c   :  { %8649 = vmatpush3.msra.mxu1 %v12787_v37  ;;  %8607 = vmatprep.subr.mxu0 %v12718_v45 }
 0x34d   :  { %8650 = vmatprep.subr.mxu1 %v12718_v45  ;;  %8608 = vmatpush3.msra.mxu0 %v10381_v51 }
 0x34e   :  { %8651 = vmatpush3.msra.mxu1 %v12788_v57  ;;  %8609 = vmatprep.subr.mxu0 %v12718_v45 }
 0x34f   :  { %8652 = vmatprep.subr.mxu1 %v12718_v45  ;;  %8610 = vmatpush3.msra.mxu0 %v10395_v12 }
 0x350   :  { %8653 = vmatpush3.msra.mxu1 %v12789_v38  ;;  %8611 = vmatprep.subr.mxu0 %v12718_v45 }
 0x351   :  { %8654 = vmatprep.subr.mxu1 %v12718_v45  ;;  %8612 = vmatpush3.msra.mxu0 %v10412_v48 }
 0x352   :  { %8655 = vmatpush3.msra.mxu1 %v12790_v50  ;;  %8613 = vmatprep.subr.mxu0 %v12718_v45  ;;  %v12793_v50 = vld [vmem:[#allocation52_spill] sm:$0xff] }
 0x353   :  { %8656 = vmatprep.subr.mxu1 %v12718_v45  ;;  %8614 = vmatpush3.msra.mxu0 %v12719_v17 }
 0x354   :  { %8657 = vmatpush3.msra.mxu1 %v12791_v28  ;;  %8615 = vmatprep.subr.mxu0 %v12718_v45 }
 0x355   :  { %8658 = vmatprep.subr.mxu1 %v12718_v45  ;;  %8616 = vmatpush3.msra.mxu0 %v12721_v35 }
 0x356   :  { %8659 = vmatpush3.msra.mxu1 %v12792_v53  ;;  %8617 = vmatprep.subr.mxu0 %v12718_v45 }
 0x357   :  { %8660 = vmatprep.subr.mxu1 %v12718_v45  ;;  %8618 = vmatpush3.msra.mxu0 %v12723_v62 }
 0x358   :  { %8661 = vmatpush3.msra.mxu1 %v12793_v50  ;;  %8619 = vmatprep.subr.mxu0 %v12718_v45 }
 0x359   :  { %8662 = vmatprep.mubr.msk.f32.mxu1 %vm9776_vm0, %v12718_v45  ;;  %8700 = vmatprep.subr.mxu1 %v12718_v45 }
 0x35a   :  { %8620 = vmatpush3.msra.mxu0 %v12725_v36  ;;  %8627 = vmatprep.mubr.msk.f32.mxu0 %vm9776_vm0, %v12718_v45 }
 0x35b   :  { %8621 = vmatprep.subr.mxu0 %v12718_v45 }
 0x35c   :  { %8622 = vmatpush3.msra.mxu0 %v12727_v23 }
 0x35d   :  { %8623 = vmatprep.subr.mxu0 %v12718_v45 }
 0x35e   :  { %8624 = vmatpush3.msra.mxu0 %v12729_v49 }
 0x35f   :  { %8625 = vmatprep.subr.mxu0 %v12718_v45 }
 0x360   :  { %8626 = vmatpush3.msra.mxu0 %v12731_v41 }
 0x361   :  { %8665 = vmatprep.subr.mxu0 %v12718_v45 }
 0x3b5   :  { %v2709_v50 = vpop.f32.mrf.mxu1 }
 0x3b7   :  { %v8454_v53 = vpop.f32.mrf.mxu1 }
 0x3bd   :  { %v2558_v28 = vpop.f32.mrf.mxu0 }
 0x3be   :  { %v2710_v5 = vadd.f32 %v2709_v50, %v2558_v28 }
 0x3bf   :  { %v8419_v38 = vpop.f32.mrf.mxu0 }
 0x3c0   :  { %v2443_v38 = vld [vmem:[#allocation3 + $0x1a] sm:$0x1] }
 0x3d5   :  { %v2902_v57 = vpop.f32.mrf.mxu1 }
 0x3d7   :  { %v8524_v37 = vpop.f32.mrf.mxu1 }
 0x3de   :  { %v2813_v40 = vpop.f32.mrf.mxu0 }
 0x3df   :  { %v2814_v44 = vadd.f32 %v2813_v40, %v2710_v5 }
 0x3e0   :  { %v8489_v21 = vpop.f32.mrf.mxu0 }
 0x3e1   :  { %v2903_v29 = vadd.f32 %v2902_v57, %v2814_v44 }
 0x3f7   :  { %v3108_v7 = vpop.f32.mrf.mxu1 }
 0x3f9   :  { %v8594_v8 = vpop.f32.mrf.mxu1 }
 0x3ff   :  { %v3021_v32 = vpop.f32.mrf.mxu0 }
 0x400   :  { %v3022_v63 = vadd.f32 %v3021_v32, %v2903_v29  ;;  %v2445_v32 = vld [vmem:[#allocation3 + $0x2a] sm:$0x1] }
 0x401   :  { %v8559_v59 = vpop.f32.mrf.mxu0 }
 0x402   :  { %v3109_v60 = vadd.f32 %v3108_v7, %v3022_v63  ;;  %v2446_v63 = vld [vmem:[#allocation3 + $0x32] sm:$0x1]  ;;  %v2447_v7 = vld [vmem:[#allocation3 + $0x3a] sm:$0x1] }
 0x404   :  { %v3113_v56 = vrot.slane %v3109_v60, 1  ;;  %v3114_v43 = vrot.slane %v3109_v60, 2  ;;  %v3115_v53 = vrot.slane %v3109_v60, 3  ;;  %v3116_v19 = vrot.slane %v3109_v60, 4 }
 0x405   :  { %v3128_v37 = vadd.f32 %v3109_v60, %v2440_v26  ;;  %v3117_v20 = vrot.slane %v3109_v60, 5  ;;  %v3118_v21 = vrot.slane %v3109_v60, 6  ;;  %v3119_v5 = vrot.slane %v3109_v60, 7 }
 0x406   :  { %v3129_v50 = vadd.f32 %v3113_v56, %v2441_v52  ;;  %v3130_v8 = vadd.f32 %v3114_v43, %v2442_v18  ;;  %v3131_v44 = vadd.f32 %v3115_v53, %v2443_v38  ;;  %v3132_v59 = vadd.f32 %v3116_v19, %v2444_v4 }
 0x407   :  { %9679 = vtanh.f32 %v3128_v37  ;;  %v3133_v29 = vadd.f32 %v3117_v20, %v2445_v32  ;;  %v3134_v40 = vadd.f32 %v3118_v21, %v2446_v63  ;;  %v3135_v57 = vadd.f32 %v3119_v5, %v2447_v7 }
 0x408   :  { %9681 = vtanh.f32 %v3129_v50 }
 0x409   :  { %9683 = vtanh.f32 %v3130_v8 }
 0x40a   :  { %9685 = vtanh.f32 %v3131_v44 }
 0x40b   :  { %9687 = vtanh.f32 %v3132_v59 }
 0x40c   :  { %9689 = vtanh.f32 %v3133_v29 }
 0x40d   :  { %9691 = vtanh.f32 %v3134_v40 }
 0x40e   :  { %9693 = vtanh.f32 %v3135_v57 }
 0x414   :  { %v9680_v26 = vpop.eup %9679 }
 0x415   :  { %v9682_v56 = vpop.eup %9681  ;;  %3144 = vst [vmem:[%s12544_s5 + $0x2] sm:$0x1] %v9680_v26 }
 0x416   :  { %v9684_v18 = vpop.eup %9683  ;;  %3145 = vst [vmem:[%s12544_s5 + $0xa] sm:$0x1] %v9682_v56  ;;  %v3168_v4 = vrot.slane %v9682_v56, 7 }
 0x417   :  { %v9686_v20 = vpop.eup %9685  ;;  %3146 = vst [vmem:[%s12544_s5 + $0x12] sm:$0x1] %v9684_v18  ;;  %v3170_v19 = vrot.slane %v9684_v18, 6  ;;  %v12794_v18 = vld [vmem:[#allocation17_spill] sm:$0xff] }
 0x418   :  { %v9688_v43 = vpop.eup %9687  ;;  %3147 = vst [vmem:[%s12544_s5 + $0x1a] sm:$0x1] %v9686_v20  ;;  %v3169_v52 = vsel %vm1738_vm1, %v3168_v4, %v9680_v26  ;;  %v3172_v60 = vrot.slane %v9686_v20, 5  ;;  %v12795_v4 = vld [vmem:[#allocation21_spill] sm:$0xff]  ;;  %v12796_v20 = vld [vmem:[#allocation24_spill] sm:$0xff] }
 0x419   :  { %v9690_v28 = vpop.eup %9689  ;;  %3148 = vst [vmem:[%s12544_s5 + $0x22] sm:$0x1] %v9688_v43  ;;  %v3171_v53 = vsel %vm1741_vm2, %v3170_v19, %v3169_v52  ;;  %v3174_v38 = vrot.slane %v9688_v43, 4  ;;  %v12797_v19 = vld [vmem:[#allocation28_spill] sm:$0xff] }
 0x41a   :  { %v9692_v37 = vpop.eup %9691  ;;  %3149 = vst [vmem:[%s12544_s5 + $0x2a] sm:$0x1] %v9690_v28  ;;  %v3173_v21 = vsel %vm1744_vm3, %v3172_v60, %v3171_v53  ;;  %v3176_v50 = vrot.slane %v9690_v28, 3  ;;  %v12798_v43 = vld [vmem:[#allocation32_spill] sm:$0xff]  ;;  %v12801_v28 = vld [vmem:[#allocation43_spill] sm:$0xff] }
 0x41b   :  { %v9694_v8 = vpop.eup %9693  ;;  %3150 = vst [vmem:[%s12544_s5 + $0x32] sm:$0x1] %v9692_v37  ;;  %v3175_v5 = vsel %vm1747_vm4, %v3174_v38, %v3173_v21  ;;  %v3178_v44 = vrot.slane %v9692_v37, 2  ;;  %v12799_v52 = vld [vmem:[#allocation36_spill] sm:$0xff]  ;;  %v12802_v53 = vld [vmem:[#allocation7_spill] sm:$0xff]  ;;  %v12803_v38 = vld [vmem:[#allocation46_spill] sm:$0xff] }
 0x41c   :  { %3151 = vst [vmem:[%s12544_s5 + $0x3a] sm:$0x1] %v9694_v8  ;;  %v3177_v32 = vsel %vm1750_vm5, %v3176_v50, %v3175_v5  ;;  %v3180_v59 = vrot.slane %v9694_v8, 1  ;;  %v12800_v60 = vld [vmem:[#allocation40_spill] sm:$0xff]  ;;  %v12804_v37 = vld [vmem:[#allocation9_spill] sm:$0xff]  ;;  %v12807_v8 = vld [vmem:[#allocation19_spill] sm:$0xff] }
 0x41d   :  { %v3179_v63 = vsel %vm1753_vm6, %v3178_v44, %v3177_v32  ;;  %v12805_v21 = vld [vmem:[#allocation48_spill] sm:$0xff]  ;;  %v12808_v5 = vld [vmem:[#allocation23_spill] sm:$0xff] }
 0x41e   :  { %v3181_v29 = vsel %vm1756_vm7, %v3180_v59, %v3179_v63  ;;  %v12806_v50 = vld [vmem:[#allocation12_spill] sm:$0xff]  ;;  %v12809_v44 = vld [vmem:[#allocation27_spill] sm:$0xff] }
 0x41f   :  { %v11386_v7 = vand.u32 4294901760, %v3181_v29  ;;  %v12810_v32 = vld [vmem:[#allocation31_spill] sm:$0xff] }
 0x420   :  { %v12811_v59 = vld [vmem:[#allocation35_spill] sm:$0xff] }
 0x421   :  { %v11389_v40 = vsub.f32 %v3181_v29, %v11386_v7  ;;  %8663 = vmatmul.mubr.f32.vlgmr.msra.gmra.mxu1 %v11386_v7  ;;  %v12812_v63 = vld [vmem:[#allocation39_spill] sm:$0xff]  ;;  %v12813_v29 = vld [vmem:[#allocation42_spill] sm:$0xff] }
 0x422   :  { %8701 = vmatpush3.msra.mxu1 %v10286_v9  ;;  %8732 = vmatprep.mubr.msk.f32.mxu1 %vm9776_vm0, %v12718_v45 }
 0x423   :  { %8702 = vmatprep.subr.mxu1 %v12718_v45  ;;  %v3266_v57 = vand.u32 4294901760, %v11389_v40 }
 0x424   :  { %8703 = vmatpush3.msra.mxu1 %v10297_v11 }
 0x425   :  { %8704 = vmatprep.subr.mxu1 %v12718_v45  ;;  %v3267_v26 = vsub.f32 %v11389_v40, %v3266_v57 }
 0x426   :  { %8705 = vmatpush3.msra.mxu1 %v10311_v27 }
 0x427   :  { %8706 = vmatprep.subr.mxu1 %v12718_v45  ;;  %v3268_v56 = vand.u32 4294901760, %v3267_v26  ;;  %v12817_v26 = vld [vmem:[#allocation50_spill] sm:$0xff] }
 0x428   :  { %8707 = vmatpush3.msra.mxu1 %v10331_v47 }
 0x429   :  { %8708 = vmatprep.subr.mxu1 %v12718_v45  ;;  %8628 = vmatmul.mubr.f32.vlgmr.msra.gmra.mxu0 %v3268_v56  ;;  %v12818_v56 = vld [vmem:[#allocation51_spill] sm:$0xff] }
 0x42a   :  { %8666 = vmatpush3.msra.mxu0 %v10305_v24  ;;  %8709 = vmatpush3.msra.mxu1 %v10340_v1 }
 0x42b   :  { %8667 = vmatprep.subr.mxu0 %v12718_v45  ;;  %8710 = vmatprep.subr.mxu1 %v12718_v45 }
 0x42c   :  { %8668 = vmatpush3.msra.mxu0 %v10319_v39  ;;  %8711 = vmatpush3.msra.mxu1 %v10362_v30 }
 0x42d   :  { %8669 = vmatprep.subr.mxu0 %v12718_v45  ;;  %8712 = vmatprep.subr.mxu1 %v12718_v45 }
 0x42e   :  { %8670 = vmatpush3.msra.mxu0 %v10336_v58  ;;  %8713 = vmatpush3.msra.mxu1 %v10381_v51 }
 0x42f   :  { %8671 = vmatprep.subr.mxu0 %v12718_v45  ;;  %8714 = vmatprep.subr.mxu1 %v12718_v45 }
 0x430   :  { %8672 = vmatpush3.msra.mxu0 %v10358_v25  ;;  %8715 = vmatpush3.msra.mxu1 %v10395_v12 }
 0x431   :  { %8673 = vmatprep.subr.mxu0 %v12718_v45  ;;  %8716 = vmatprep.subr.mxu1 %v12718_v45 }
 0x432   :  { %8674 = vmatpush3.msra.mxu0 %v10375_v31  ;;  %8717 = vmatpush3.msra.mxu1 %v10412_v48 }
 0x433   :  { %8675 = vmatprep.subr.mxu0 %v12718_v45  ;;  %8718 = vmatprep.subr.mxu1 %v12718_v45 }
 0x434   :  { %8676 = vmatpush3.msra.mxu0 %v10398_v61  ;;  %8719 = vmatpush3.msra.mxu1 %v12719_v17 }
 0x435   :  { %8677 = vmatprep.subr.mxu0 %v12718_v45  ;;  %8720 = vmatprep.subr.mxu1 %v12718_v45 }
 0x436   :  { %8678 = vmatpush3.msra.mxu0 %v12720_v22  ;;  %8721 = vmatpush3.msra.mxu1 %v12721_v35 }
 0x437   :  { %8679 = vmatprep.subr.mxu0 %v12718_v45  ;;  %8722 = vmatprep.subr.mxu1 %v12718_v45 }
 0x438   :  { %8680 = vmatpush3.msra.mxu0 %v12722_v0  ;;  %8723 = vmatpush3.msra.mxu1 %v12723_v62 }
 0x439   :  { %8681 = vmatprep.subr.mxu0 %v12718_v45  ;;  %8724 = vmatprep.subr.mxu1 %v12718_v45 }
 0x43a   :  { %8682 = vmatpush3.msra.mxu0 %v12724_v33  ;;  %8725 = vmatpush3.msra.mxu1 %v12725_v36 }
 0x43b   :  { %8683 = vmatprep.subr.mxu0 %v12718_v45  ;;  %8726 = vmatprep.subr.mxu1 %v12718_v45 }
 0x43c   :  { %8684 = vmatpush3.msra.mxu0 %v12726_v46  ;;  %8727 = vmatpush3.msra.mxu1 %v12727_v23 }
 0x43d   :  { %8685 = vmatprep.subr.mxu0 %v12718_v45  ;;  %8728 = vmatprep.subr.mxu1 %v12718_v45 }
 0x43e   :  { %8686 = vmatpush3.msra.mxu0 %v12728_v55  ;;  %8729 = vmatpush3.msra.mxu1 %v12729_v49 }
 0x43f   :  { %8687 = vmatprep.subr.mxu0 %v12718_v45  ;;  %8730 = vmatprep.subr.mxu1 %v12718_v45 }
 0x440   :  { %8688 = vmatpush3.msra.mxu0 %v12730_v3  ;;  %8731 = vmatpush3.msra.mxu1 %v12731_v41 }
 0x441   :  { %8689 = vmatprep.subr.mxu0 %v12718_v45  ;;  %8733 = vmatmul.mubr.f32.vlgmr.msra.gmra.mxu1 %v3266_v57  ;;  %v12816_v57 = vld [vmem:[#allocation49_spill] sm:$0xff] }
 0x442   :  { %8770 = vmatprep.subr.mxu1 %v12718_v45  ;;  %8690 = vmatpush3.msra.mxu0 %v12732_v34 }
 0x443   :  { %8771 = vmatpush3.msra.mxu1 %v10286_v9  ;;  %8691 = vmatprep.subr.mxu0 %v12718_v45 }
 0x444   :  { %8772 = vmatprep.subr.mxu1 %v12718_v45  ;;  %8692 = vmatpush3.msra.mxu0 %v12733_v15 }
 0x445   :  { %8773 = vmatpush3.msra.mxu1 %v10297_v11  ;;  %8693 = vmatprep.subr.mxu0 %v12718_v45 }
 0x446   :  { %8774 = vmatprep.subr.mxu1 %v12718_v45  ;;  %8694 = vmatpush3.msra.mxu0 %v12734_v2 }
 0x447   :  { %8775 = vmatpush3.msra.mxu1 %v10311_v27  ;;  %8695 = vmatprep.subr.mxu0 %v12718_v45 }
 0x448   :  { %8776 = vmatprep.subr.mxu1 %v12718_v45  ;;  %8696 = vmatpush3.msra.mxu0 %v12735_v42 }
 0x449   :  { %8697 = vmatprep.mubr.msk.f32.mxu0 %vm9776_vm0, %v12718_v45  ;;  %8777 = vmatpush3.msra.mxu1 %v10331_v47 }
 0x44a   :  { %8698 = vmatmul.mubr.f32.vlgmr.msra.gmra.mxu0 %v11389_v40  ;;  %8735 = vmatprep.subr.mxu0 %v12718_v45  ;;  %v12815_v40 = vld [vmem:[#allocation47_spill] sm:$0xff] }
 0x44b   :  { %8778 = vmatprep.subr.mxu1 %v12718_v45  ;;  %8736 = vmatpush3.msra.mxu0 %v12736_v14 }
 0x44c   :  { %8779 = vmatpush3.msra.mxu1 %v10340_v1  ;;  %8737 = vmatprep.subr.mxu0 %v12718_v45 }
 0x44d   :  { %8780 = vmatprep.subr.mxu1 %v12718_v45  ;;  %8738 = vmatpush3.msra.mxu0 %v12737_v13 }
 0x44e   :  { %8781 = vmatpush3.msra.mxu1 %v10362_v30  ;;  %8739 = vmatprep.subr.mxu0 %v12718_v45 }
 0x44f   :  { %8782 = vmatprep.subr.mxu1 %v12718_v45  ;;  %8740 = vmatpush3.msra.mxu0 %v12738_v10 }
 0x450   :  { %8783 = vmatpush3.msra.mxu1 %v10381_v51  ;;  %8741 = vmatprep.subr.mxu0 %v12718_v45 }
 0x451   :  { %8784 = vmatprep.subr.mxu1 %v12718_v45  ;;  %8742 = vmatpush3.msra.mxu0 %v12739_v16 }
 0x452   :  { %8785 = vmatpush3.msra.mxu1 %v10395_v12  ;;  %8743 = vmatprep.subr.mxu0 %v12718_v45 }
 0x453   :  { %8786 = vmatprep.subr.mxu1 %v12718_v45  ;;  %8744 = vmatpush3.msra.mxu0 %v12740_v54 }
 0x454   :  { %8787 = vmatpush3.msra.mxu1 %v10412_v48  ;;  %8745 = vmatprep.subr.mxu0 %v12718_v45 }
 0x455   :  { %8788 = vmatprep.subr.mxu1 %v12718_v45  ;;  %8746 = vmatpush3.msra.mxu0 %v12741_v6 }
 0x456   :  { %8789 = vmatpush3.msra.mxu1 %v12719_v17  ;;  %8747 = vmatprep.subr.mxu0 %v12718_v45 }
 0x457   :  { %8790 = vmatprep.subr.mxu1 %v12718_v45  ;;  %8748 = vmatpush3.msra.mxu0 %v12794_v18  ;;  %v3156_v18 = vld [vmem:[#allocation3 + $0x23] sm:$0x1] }
 0x458   :  { %8791 = vmatpush3.msra.mxu1 %v12721_v35  ;;  %8749 = vmatprep.subr.mxu0 %v12718_v45 }
 0x459   :  { %8792 = vmatprep.subr.mxu1 %v12718_v45  ;;  %8750 = vmatpush3.msra.mxu0 %v12795_v4 }
 0x45a   :  { %8793 = vmatpush3.msra.mxu1 %v12723_v62  ;;  %8751 = vmatprep.subr.mxu0 %v12718_v45 }
 0x45b   :  { %8794 = vmatprep.subr.mxu1 %v12718_v45  ;;  %8752 = vmatpush3.msra.mxu0 %v12796_v20  ;;  %v3154_v20 = vld [vmem:[#allocation3 + $0x13] sm:$0x1] }
 0x45c   :  { %8795 = vmatpush3.msra.mxu1 %v12725_v36  ;;  %8753 = vmatprep.subr.mxu0 %v12718_v45 }
 0x45d   :  { %8796 = vmatprep.subr.mxu1 %v12718_v45  ;;  %8754 = vmatpush3.msra.mxu0 %v12797_v19 }
 0x45e   :  { %8797 = vmatpush3.msra.mxu1 %v12727_v23  ;;  %8755 = vmatprep.subr.mxu0 %v12718_v45 }
 0x45f   :  { %8798 = vmatprep.subr.mxu1 %v12718_v45  ;;  %8756 = vmatpush3.msra.mxu0 %v12798_v43 }
 0x460   :  { %8799 = vmatpush3.msra.mxu1 %v12729_v49  ;;  %8757 = vmatprep.subr.mxu0 %v12718_v45 }
 0x461   :  { %8800 = vmatprep.subr.mxu1 %v12718_v45  ;;  %8758 = vmatpush3.msra.mxu0 %v12799_v52 }
 0x462   :  { %8801 = vmatpush3.msra.mxu1 %v12731_v41  ;;  %8802 = vmatprep.mubr.msk.f32.mxu1 %vm9776_vm0, %v12718_v45 }
 0x463   :  { %8759 = vmatprep.subr.mxu0 %v12718_v45  ;;  %8803 = vmatmul.mubr.f32.vlgmr.msra.gmra.mxu1 %v11386_v7 }
 0x464   :  { %8760 = vmatpush3.msra.mxu0 %v12800_v60  ;;  %8767 = vmatprep.mubr.msk.f32.mxu0 %vm9776_vm0, %v12718_v45  ;;  %v3152_v60 = vld [vmem:[#allocation3 + $0x3] sm:$0x1] }
 0x465   :  { %8761 = vmatprep.subr.mxu0 %v12718_v45  ;;  %8840 = vmatprep.subr.mxu1 %v12718_v45 }
 0x466   :  { %8762 = vmatpush3.msra.mxu0 %v12801_v28  ;;  %8841 = vmatpush3.msra.mxu1 %v12802_v53  ;;  %v3153_v28 = vld [vmem:[#allocation3 + $0xb] sm:$0x1] }
 0x467   :  { %8763 = vmatprep.subr.mxu0 %v12718_v45  ;;  %8842 = vmatprep.subr.mxu1 %v12718_v45 }
 0x468   :  { %8764 = vmatpush3.msra.mxu0 %v12803_v38  ;;  %8843 = vmatpush3.msra.mxu1 %v12804_v37 }
 0x469   :  { %8765 = vmatprep.subr.mxu0 %v12718_v45  ;;  %8844 = vmatprep.subr.mxu1 %v12718_v45 }
 0x46a   :  { %8766 = vmatpush3.msra.mxu0 %v12805_v21  ;;  %8845 = vmatpush3.msra.mxu1 %v12806_v50 }
 0x46b   :  { %8768 = vmatmul.mubr.f32.vlgmr.msra.gmra.mxu0 %v11386_v7  ;;  %8846 = vmatprep.subr.mxu1 %v12718_v45  ;;  %v12814_v7 = vld [vmem:[#allocation45_spill] sm:$0xff] }
 0x46c   :  { %8847 = vmatpush3.msra.mxu1 %v12807_v8  ;;  %8805 = vmatprep.subr.mxu0 %v12718_v45 }
 0x46d   :  { %8848 = vmatprep.subr.mxu1 %v12718_v45  ;;  %8806 = vmatpush3.msra.mxu0 %v10286_v9 }
 0x46e   :  { %8849 = vmatpush3.msra.mxu1 %v12808_v5  ;;  %8807 = vmatprep.subr.mxu0 %v12718_v45 }
 0x46f   :  { %8850 = vmatprep.subr.mxu1 %v12718_v45  ;;  %8808 = vmatpush3.msra.mxu0 %v10297_v11 }
 0x470   :  { %8851 = vmatpush3.msra.mxu1 %v12809_v44  ;;  %8809 = vmatprep.subr.mxu0 %v12718_v45 }
 0x471   :  { %8852 = vmatprep.subr.mxu1 %v12718_v45  ;;  %8810 = vmatpush3.msra.mxu0 %v10311_v27 }
 0x472   :  { %8853 = vmatpush3.msra.mxu1 %v12810_v32  ;;  %8811 = vmatprep.subr.mxu0 %v12718_v45 }
 0x473   :  { %8854 = vmatprep.subr.mxu1 %v12718_v45  ;;  %8812 = vmatpush3.msra.mxu0 %v10331_v47 }
 0x474   :  { %8855 = vmatpush3.msra.mxu1 %v12811_v59  ;;  %8813 = vmatprep.subr.mxu0 %v12718_v45 }
 0x475   :  { %8856 = vmatprep.subr.mxu1 %v12718_v45  ;;  %8814 = vmatpush3.msra.mxu0 %v10340_v1 }
 0x476   :  { %8857 = vmatpush3.msra.mxu1 %v12812_v63  ;;  %8815 = vmatprep.subr.mxu0 %v12718_v45 }
 0x477   :  { %8858 = vmatprep.subr.mxu1 %v12718_v45  ;;  %8816 = vmatpush3.msra.mxu0 %v10362_v30 }
 0x478   :  { %8859 = vmatpush3.msra.mxu1 %v12813_v29  ;;  %8817 = vmatprep.subr.mxu0 %v12718_v45 }
 0x479   :  { %8860 = vmatprep.subr.mxu1 %v12718_v45  ;;  %8818 = vmatpush3.msra.mxu0 %v10381_v51 }
 0x47a   :  { %8861 = vmatpush3.msra.mxu1 %v12814_v7  ;;  %8819 = vmatprep.subr.mxu0 %v12718_v45 }
 0x47b   :  { %8862 = vmatprep.subr.mxu1 %v12718_v45  ;;  %8820 = vmatpush3.msra.mxu0 %v10395_v12 }
 0x47c   :  { %8863 = vmatpush3.msra.mxu1 %v12815_v40  ;;  %8821 = vmatprep.subr.mxu0 %v12718_v45 }
 0x47d   :  { %8864 = vmatprep.subr.mxu1 %v12718_v45  ;;  %8822 = vmatpush3.msra.mxu0 %v10412_v48 }
 0x47e   :  { %8865 = vmatpush3.msra.mxu1 %v12816_v57  ;;  %8823 = vmatprep.subr.mxu0 %v12718_v45  ;;  %v12819_v57 = vld [vmem:[#allocation52_spill] sm:$0xff] }
 0x47f   :  { %8866 = vmatprep.subr.mxu1 %v12718_v45  ;;  %8824 = vmatpush3.msra.mxu0 %v12719_v17 }
 0x480   :  { %8867 = vmatpush3.msra.mxu1 %v12817_v26  ;;  %8825 = vmatprep.subr.mxu0 %v12718_v45 }
 0x481   :  { %8868 = vmatprep.subr.mxu1 %v12718_v45  ;;  %8826 = vmatpush3.msra.mxu0 %v12721_v35 }
 0x482   :  { %8869 = vmatpush3.msra.mxu1 %v12818_v56  ;;  %8827 = vmatprep.subr.mxu0 %v12718_v45 }
 0x483   :  { %8870 = vmatprep.subr.mxu1 %v12718_v45  ;;  %8828 = vmatpush3.msra.mxu0 %v12723_v62 }
 0x484   :  { %8871 = vmatpush3.msra.mxu1 %v12819_v57  ;;  %8829 = vmatprep.subr.mxu0 %v12718_v45 }
 0x485   :  { %8872 = vmatprep.mubr.msk.f32.mxu1 %vm9776_vm0, %v12718_v45  ;;  %8910 = vmatprep.subr.mxu1 %v12718_v45 }
 0x486   :  { %8830 = vmatpush3.msra.mxu0 %v12725_v36  ;;  %8837 = vmatprep.mubr.msk.f32.mxu0 %vm9776_vm0, %v12718_v45 }
 0x487   :  { %8831 = vmatprep.subr.mxu0 %v12718_v45 }
 0x488   :  { %8832 = vmatpush3.msra.mxu0 %v12727_v23 }
 0x489   :  { %8833 = vmatprep.subr.mxu0 %v12718_v45 }
 0x48a   :  { %8834 = vmatpush3.msra.mxu0 %v12729_v49 }
 0x48b   :  { %8835 = vmatprep.subr.mxu0 %v12718_v45 }
 0x48c   :  { %8836 = vmatpush3.msra.mxu0 %v12731_v41 }
 0x48d   :  { %8875 = vmatprep.subr.mxu0 %v12718_v45 }
 0x4e1   :  { %v3421_v57 = vpop.f32.mrf.mxu1 }
 0x4e3   :  { %v8664_v56 = vpop.f32.mrf.mxu1 }
 0x4e9   :  { %v3270_v26 = vpop.f32.mrf.mxu0 }
 0x4ea   :  { %v3422_v44 = vadd.f32 %v3421_v57, %v3270_v26 }
 0x4eb   :  { %v8629_v40 = vpop.f32.mrf.mxu0 }
 0x4ec   :  { %v3155_v40 = vld [vmem:[#allocation3 + $0x1b] sm:$0x1] }
 0x501   :  { %v3614_v7 = vpop.f32.mrf.mxu1 }
 0x503   :  { %v8734_v29 = vpop.f32.mrf.mxu1 }
 0x50a   :  { %v3525_v63 = vpop.f32.mrf.mxu0 }
 0x50b   :  { %v3526_v8 = vadd.f32 %v3525_v63, %v3422_v44 }
 0x50c   :  { %v8699_v59 = vpop.f32.mrf.mxu0 }
 0x50d   :  { %v3615_v50 = vadd.f32 %v3614_v7, %v3526_v8 }
 0x523   :  { %v3820_v32 = vpop.f32.mrf.mxu1 }
 0x525   :  { %v8804_v5 = vpop.f32.mrf.mxu1 }
 0x52b   :  { %v3733_v21 = vpop.f32.mrf.mxu0 }
 0x52c   :  { %v3734_v37 = vadd.f32 %v3733_v21, %v3615_v50  ;;  %v3157_v21 = vld [vmem:[#allocation3 + $0x2b] sm:$0x1] }
 0x52d   :  { %v8769_v38 = vpop.f32.mrf.mxu0 }
 0x52e   :  { %v3821_v53 = vadd.f32 %v3820_v32, %v3734_v37  ;;  %v3158_v37 = vld [vmem:[#allocation3 + $0x33] sm:$0x1]  ;;  %v3159_v32 = vld [vmem:[#allocation3 + $0x3b] sm:$0x1] }
 0x530   :  { %v3825_v52 = vrot.slane %v3821_v53, 1  ;;  %v3826_v43 = vrot.slane %v3821_v53, 2  ;;  %v3827_v56 = vrot.slane %v3821_v53, 3  ;;  %v3828_v19 = vrot.slane %v3821_v53, 4 }
 0x531   :  { %v3840_v29 = vadd.f32 %v3821_v53, %v3152_v60  ;;  %v3829_v4 = vrot.slane %v3821_v53, 5  ;;  %v3830_v59 = vrot.slane %v3821_v53, 6  ;;  %v3831_v44 = vrot.slane %v3821_v53, 7 }
 0x532   :  { %v3841_v57 = vadd.f32 %v3825_v52, %v3153_v28  ;;  %v3842_v5 = vadd.f32 %v3826_v43, %v3154_v20  ;;  %v3843_v8 = vadd.f32 %v3827_v56, %v3155_v40  ;;  %v3844_v38 = vadd.f32 %v3828_v19, %v3156_v18 }
 0x533   :  { %9695 = vtanh.f32 %v3840_v29  ;;  %v3845_v50 = vadd.f32 %v3829_v4, %v3157_v21  ;;  %v3846_v63 = vadd.f32 %v3830_v59, %v3158_v37  ;;  %v3847_v7 = vadd.f32 %v3831_v44, %v3159_v32 }
 0x534   :  { %9697 = vtanh.f32 %v3841_v57 }
 0x535   :  { %9699 = vtanh.f32 %v3842_v5 }
 0x536   :  { %9701 = vtanh.f32 %v3843_v8 }
 0x537   :  { %9703 = vtanh.f32 %v3844_v38 }
 0x538   :  { %9705 = vtanh.f32 %v3845_v50 }
 0x539   :  { %9707 = vtanh.f32 %v3846_v63 }
 0x53a   :  { %9709 = vtanh.f32 %v3847_v7 }
 0x540   :  { %v9696_v60 = vpop.eup %9695 }
 0x541   :  { %v9698_v52 = vpop.eup %9697  ;;  %3856 = vst [vmem:[%s12544_s5 + $0x3] sm:$0x1] %v9696_v60 }
 0x542   :  { %v9700_v20 = vpop.eup %9699  ;;  %3857 = vst [vmem:[%s12544_s5 + $0xb] sm:$0x1] %v9698_v52  ;;  %v3880_v18 = vrot.slane %v9698_v52, 7 }
 0x543   :  { %v9702_v4 = vpop.eup %9701  ;;  %3858 = vst [vmem:[%s12544_s5 + $0x13] sm:$0x1] %v9700_v20  ;;  %v3882_v19 = vrot.slane %v9700_v20, 6  ;;  %v12820_v20 = vld [vmem:[#allocation17_spill] sm:$0xff] }
 0x544   :  { %v9704_v43 = vpop.eup %9703  ;;  %3859 = vst [vmem:[%s12544_s5 + $0x1b] sm:$0x1] %v9702_v4  ;;  %v3881_v28 = vsel %vm1738_vm1, %v3880_v18, %v9696_v60  ;;  %v3884_v53 = vrot.slane %v9702_v4, 5  ;;  %v12821_v18 = vld [vmem:[#allocation21_spill] sm:$0xff]  ;;  %v12822_v4 = vld [vmem:[#allocation24_spill] sm:$0xff] }
 0x545   :  { %v9706_v26 = vpop.eup %9705  ;;  %3860 = vst [vmem:[%s12544_s5 + $0x23] sm:$0x1] %v9704_v43  ;;  %v3883_v56 = vsel %vm1741_vm2, %v3882_v19, %v3881_v28  ;;  %v3886_v40 = vrot.slane %v9704_v43, 4  ;;  %v12823_v19 = vld [vmem:[#allocation28_spill] sm:$0xff] }
 0x546   :  { %v9708_v29 = vpop.eup %9707  ;;  %3861 = vst [vmem:[%s12544_s5 + $0x2b] sm:$0x1] %v9706_v26  ;;  %v3885_v59 = vsel %vm1744_vm3, %v3884_v53, %v3883_v56  ;;  %v3888_v57 = vrot.slane %v9706_v26, 3  ;;  %v12824_v43 = vld [vmem:[#allocation32_spill] sm:$0xff]  ;;  %v12827_v26 = vld [vmem:[#allocation43_spill] sm:$0xff] }
 0x547   :  { %v9710_v5 = vpop.eup %9709  ;;  %3862 = vst [vmem:[%s12544_s5 + $0x33] sm:$0x1] %v9708_v29  ;;  %v3887_v44 = vsel %vm1747_vm4, %v3886_v40, %v3885_v59  ;;  %v3890_v8 = vrot.slane %v9708_v29, 2  ;;  %v12825_v28 = vld [vmem:[#allocation36_spill] sm:$0xff]  ;;  %v12828_v56 = vld [vmem:[#allocation7_spill] sm:$0xff]  ;;  %v12829_v40 = vld [vmem:[#allocation46_spill] sm:$0xff] }
 0x548   :  { %3863 = vst [vmem:[%s12544_s5 + $0x3b] sm:$0x1] %v9710_v5  ;;  %v3889_v21 = vsel %vm1750_vm5, %v3888_v57, %v3887_v44  ;;  %v3892_v38 = vrot.slane %v9710_v5, 1  ;;  %v12826_v53 = vld [vmem:[#allocation40_spill] sm:$0xff]  ;;  %v12830_v29 = vld [vmem:[#allocation9_spill] sm:$0xff]  ;;  %v12833_v5 = vld [vmem:[#allocation19_spill] sm:$0xff] }
 0x549   :  { %v3891_v37 = vsel %vm1753_vm6, %v3890_v8, %v3889_v21  ;;  %v12831_v59 = vld [vmem:[#allocation48_spill] sm:$0xff]  ;;  %v12834_v44 = vld [vmem:[#allocation23_spill] sm:$0xff] }
 0x54a   :  { %v3893_v50 = vsel %vm1756_vm7, %v3892_v38, %v3891_v37  ;;  %v12832_v57 = vld [vmem:[#allocation12_spill] sm:$0xff]  ;;  %v12835_v8 = vld [vmem:[#allocation27_spill] sm:$0xff] }
 0x54b   :  { %v11632_v32 = vand.u32 4294901760, %v3893_v50  ;;  %v12836_v21 = vld [vmem:[#allocation31_spill] sm:$0xff] }
 0x54c   :  { %v12837_v38 = vld [vmem:[#allocation35_spill] sm:$0xff] }
 0x54d   :  { %v11635_v63 = vsub.f32 %v3893_v50, %v11632_v32  ;;  %8873 = vmatmul.mubr.f32.vlgmr.msra.gmra.mxu1 %v11632_v32  ;;  %v12838_v37 = vld [vmem:[#allocation39_spill] sm:$0xff]  ;;  %v12839_v50 = vld [vmem:[#allocation42_spill] sm:$0xff] }
 0x54e   :  { %8911 = vmatpush3.msra.mxu1 %v10286_v9  ;;  %8942 = vmatprep.mubr.msk.f32.mxu1 %vm9776_vm0, %v12718_v45 }
 0x54f   :  { %8912 = vmatprep.subr.mxu1 %v12718_v45  ;;  %v3978_v7 = vand.u32 4294901760, %v11635_v63 }
 0x550   :  { %8913 = vmatpush3.msra.mxu1 %v10297_v11 }
 0x551   :  { %8914 = vmatprep.subr.mxu1 %v12718_v45  ;;  %v3979_v60 = vsub.f32 %v11635_v63, %v3978_v7 }
 0x552   :  { %8915 = vmatpush3.msra.mxu1 %v10311_v27 }
 0x553   :  { %8916 = vmatprep.subr.mxu1 %v12718_v45  ;;  %v3980_v52 = vand.u32 4294901760, %v3979_v60  ;;  %v12843_v60 = vld [vmem:[#allocation50_spill] sm:$0xff] }
 0x554   :  { %8917 = vmatpush3.msra.mxu1 %v10331_v47 }
 0x555   :  { %8918 = vmatprep.subr.mxu1 %v12718_v45  ;;  %8838 = vmatmul.mubr.f32.vlgmr.msra.gmra.mxu0 %v3980_v52  ;;  %v12844_v52 = vld [vmem:[#allocation51_spill] sm:$0xff] }
 0x556   :  { %8876 = vmatpush3.msra.mxu0 %v10305_v24  ;;  %8919 = vmatpush3.msra.mxu1 %v10340_v1 }
 0x557   :  { %8877 = vmatprep.subr.mxu0 %v12718_v45  ;;  %8920 = vmatprep.subr.mxu1 %v12718_v45 }
 0x558   :  { %8878 = vmatpush3.msra.mxu0 %v10319_v39  ;;  %8921 = vmatpush3.msra.mxu1 %v10362_v30 }
 0x559   :  { %8879 = vmatprep.subr.mxu0 %v12718_v45  ;;  %8922 = vmatprep.subr.mxu1 %v12718_v45 }
 0x55a   :  { %8880 = vmatpush3.msra.mxu0 %v10336_v58  ;;  %8923 = vmatpush3.msra.mxu1 %v10381_v51 }
 0x55b   :  { %8881 = vmatprep.subr.mxu0 %v12718_v45  ;;  %8924 = vmatprep.subr.mxu1 %v12718_v45 }
 0x55c   :  { %8882 = vmatpush3.msra.mxu0 %v10358_v25  ;;  %8925 = vmatpush3.msra.mxu1 %v10395_v12 }
 0x55d   :  { %8883 = vmatprep.subr.mxu0 %v12718_v45  ;;  %8926 = vmatprep.subr.mxu1 %v12718_v45 }
 0x55e   :  { %8884 = vmatpush3.msra.mxu0 %v10375_v31  ;;  %8927 = vmatpush3.msra.mxu1 %v10412_v48 }
 0x55f   :  { %8885 = vmatprep.subr.mxu0 %v12718_v45  ;;  %8928 = vmatprep.subr.mxu1 %v12718_v45 }
 0x560   :  { %8886 = vmatpush3.msra.mxu0 %v10398_v61  ;;  %8929 = vmatpush3.msra.mxu1 %v12719_v17 }
 0x561   :  { %8887 = vmatprep.subr.mxu0 %v12718_v45  ;;  %8930 = vmatprep.subr.mxu1 %v12718_v45 }
 0x562   :  { %8888 = vmatpush3.msra.mxu0 %v12720_v22  ;;  %8931 = vmatpush3.msra.mxu1 %v12721_v35 }
 0x563   :  { %8889 = vmatprep.subr.mxu0 %v12718_v45  ;;  %8932 = vmatprep.subr.mxu1 %v12718_v45 }
 0x564   :  { %8890 = vmatpush3.msra.mxu0 %v12722_v0  ;;  %8933 = vmatpush3.msra.mxu1 %v12723_v62 }
 0x565   :  { %8891 = vmatprep.subr.mxu0 %v12718_v45  ;;  %8934 = vmatprep.subr.mxu1 %v12718_v45 }
 0x566   :  { %8892 = vmatpush3.msra.mxu0 %v12724_v33  ;;  %8935 = vmatpush3.msra.mxu1 %v12725_v36 }
 0x567   :  { %8893 = vmatprep.subr.mxu0 %v12718_v45  ;;  %8936 = vmatprep.subr.mxu1 %v12718_v45 }
 0x568   :  { %8894 = vmatpush3.msra.mxu0 %v12726_v46  ;;  %8937 = vmatpush3.msra.mxu1 %v12727_v23 }
 0x569   :  { %8895 = vmatprep.subr.mxu0 %v12718_v45  ;;  %8938 = vmatprep.subr.mxu1 %v12718_v45 }
 0x56a   :  { %8896 = vmatpush3.msra.mxu0 %v12728_v55  ;;  %8939 = vmatpush3.msra.mxu1 %v12729_v49 }
 0x56b   :  { %8897 = vmatprep.subr.mxu0 %v12718_v45  ;;  %8940 = vmatprep.subr.mxu1 %v12718_v45 }
 0x56c   :  { %8898 = vmatpush3.msra.mxu0 %v12730_v3  ;;  %8941 = vmatpush3.msra.mxu1 %v12731_v41 }
 0x56d   :  { %8899 = vmatprep.subr.mxu0 %v12718_v45  ;;  %8943 = vmatmul.mubr.f32.vlgmr.msra.gmra.mxu1 %v3978_v7  ;;  %v12842_v7 = vld [vmem:[#allocation49_spill] sm:$0xff] }
 0x56e   :  { %8980 = vmatprep.subr.mxu1 %v12718_v45  ;;  %8900 = vmatpush3.msra.mxu0 %v12732_v34 }
 0x56f   :  { %8981 = vmatpush3.msra.mxu1 %v10286_v9  ;;  %8901 = vmatprep.subr.mxu0 %v12718_v45 }
 0x570   :  { %8982 = vmatprep.subr.mxu1 %v12718_v45  ;;  %8902 = vmatpush3.msra.mxu0 %v12733_v15 }
 0x571   :  { %8983 = vmatpush3.msra.mxu1 %v10297_v11  ;;  %8903 = vmatprep.subr.mxu0 %v12718_v45 }
 0x572   :  { %8984 = vmatprep.subr.mxu1 %v12718_v45  ;;  %8904 = vmatpush3.msra.mxu0 %v12734_v2 }
 0x573   :  { %8985 = vmatpush3.msra.mxu1 %v10311_v27  ;;  %8905 = vmatprep.subr.mxu0 %v12718_v45 }
 0x574   :  { %8986 = vmatprep.subr.mxu1 %v12718_v45  ;;  %8906 = vmatpush3.msra.mxu0 %v12735_v42 }
 0x575   :  { %8907 = vmatprep.mubr.msk.f32.mxu0 %vm9776_vm0, %v12718_v45  ;;  %8987 = vmatpush3.msra.mxu1 %v10331_v47 }
 0x576   :  { %8908 = vmatmul.mubr.f32.vlgmr.msra.gmra.mxu0 %v11635_v63  ;;  %8945 = vmatprep.subr.mxu0 %v12718_v45  ;;  %v12841_v63 = vld [vmem:[#allocation47_spill] sm:$0xff] }
 0x577   :  { %8988 = vmatprep.subr.mxu1 %v12718_v45  ;;  %8946 = vmatpush3.msra.mxu0 %v12736_v14 }
 0x578   :  { %8989 = vmatpush3.msra.mxu1 %v10340_v1  ;;  %8947 = vmatprep.subr.mxu0 %v12718_v45 }
 0x579   :  { %8990 = vmatprep.subr.mxu1 %v12718_v45  ;;  %8948 = vmatpush3.msra.mxu0 %v12737_v13 }
 0x57a   :  { %8991 = vmatpush3.msra.mxu1 %v10362_v30  ;;  %8949 = vmatprep.subr.mxu0 %v12718_v45 }
 0x57b   :  { %8992 = vmatprep.subr.mxu1 %v12718_v45  ;;  %8950 = vmatpush3.msra.mxu0 %v12738_v10 }
 0x57c   :  { %8993 = vmatpush3.msra.mxu1 %v10381_v51  ;;  %8951 = vmatprep.subr.mxu0 %v12718_v45 }
 0x57d   :  { %8994 = vmatprep.subr.mxu1 %v12718_v45  ;;  %8952 = vmatpush3.msra.mxu0 %v12739_v16 }
 0x57e   :  { %8995 = vmatpush3.msra.mxu1 %v10395_v12  ;;  %8953 = vmatprep.subr.mxu0 %v12718_v45 }
 0x57f   :  { %8996 = vmatprep.subr.mxu1 %v12718_v45  ;;  %8954 = vmatpush3.msra.mxu0 %v12740_v54 }
 0x580   :  { %8997 = vmatpush3.msra.mxu1 %v10412_v48  ;;  %8955 = vmatprep.subr.mxu0 %v12718_v45 }
 0x581   :  { %8998 = vmatprep.subr.mxu1 %v12718_v45  ;;  %8956 = vmatpush3.msra.mxu0 %v12741_v6 }
 0x582   :  { %8999 = vmatpush3.msra.mxu1 %v12719_v17  ;;  %8957 = vmatprep.subr.mxu0 %v12718_v45 }
 0x583   :  { %9000 = vmatprep.subr.mxu1 %v12718_v45  ;;  %8958 = vmatpush3.msra.mxu0 %v12820_v20  ;;  %v3868_v20 = vld [vmem:[#allocation3 + $0x24] sm:$0x1] }
 0x584   :  { %9001 = vmatpush3.msra.mxu1 %v12721_v35  ;;  %8959 = vmatprep.subr.mxu0 %v12718_v45 }
 0x585   :  { %9002 = vmatprep.subr.mxu1 %v12718_v45  ;;  %8960 = vmatpush3.msra.mxu0 %v12821_v18 }
 0x586   :  { %9003 = vmatpush3.msra.mxu1 %v12723_v62  ;;  %8961 = vmatprep.subr.mxu0 %v12718_v45 }
 0x587   :  { %9004 = vmatprep.subr.mxu1 %v12718_v45  ;;  %8962 = vmatpush3.msra.mxu0 %v12822_v4  ;;  %v3866_v4 = vld [vmem:[#allocation3 + $0x14] sm:$0x1] }
 0x588   :  { %9005 = vmatpush3.msra.mxu1 %v12725_v36  ;;  %8963 = vmatprep.subr.mxu0 %v12718_v45 }
 0x589   :  { %9006 = vmatprep.subr.mxu1 %v12718_v45  ;;  %8964 = vmatpush3.msra.mxu0 %v12823_v19 }
 0x58a   :  { %9007 = vmatpush3.msra.mxu1 %v12727_v23  ;;  %8965 = vmatprep.subr.mxu0 %v12718_v45 }
 0x58b   :  { %9008 = vmatprep.subr.mxu1 %v12718_v45  ;;  %8966 = vmatpush3.msra.mxu0 %v12824_v43 }
 0x58c   :  { %9009 = vmatpush3.msra.mxu1 %v12729_v49  ;;  %8967 = vmatprep.subr.mxu0 %v12718_v45 }
 0x58d   :  { %9010 = vmatprep.subr.mxu1 %v12718_v45  ;;  %8968 = vmatpush3.msra.mxu0 %v12825_v28 }
 0x58e   :  { %9011 = vmatpush3.msra.mxu1 %v12731_v41  ;;  %9012 = vmatprep.mubr.msk.f32.mxu1 %vm9776_vm0, %v12718_v45 }
 0x58f   :  { %8969 = vmatprep.subr.mxu0 %v12718_v45  ;;  %9013 = vmatmul.mubr.f32.vlgmr.msra.gmra.mxu1 %v11632_v32 }
 0x590   :  { %8970 = vmatpush3.msra.mxu0 %v12826_v53  ;;  %8977 = vmatprep.mubr.msk.f32.mxu0 %vm9776_vm0, %v12718_v45  ;;  %v3864_v53 = vld [vmem:[#allocation3 + $0x4] sm:$0x1] }
 0x591   :  { %8971 = vmatprep.subr.mxu0 %v12718_v45  ;;  %9050 = vmatprep.subr.mxu1 %v12718_v45 }
 0x592   :  { %8972 = vmatpush3.msra.mxu0 %v12827_v26  ;;  %9051 = vmatpush3.msra.mxu1 %v12828_v56  ;;  %v3865_v26 = vld [vmem:[#allocation3 + $0xc] sm:$0x1] }
 0x593   :  { %8973 = vmatprep.subr.mxu0 %v12718_v45  ;;  %9052 = vmatprep.subr.mxu1 %v12718_v45 }
 0x594   :  { %8974 = vmatpush3.msra.mxu0 %v12829_v40  ;;  %9053 = vmatpush3.msra.mxu1 %v12830_v29 }
 0x595   :  { %8975 = vmatprep.subr.mxu0 %v12718_v45  ;;  %9054 = vmatprep.subr.mxu1 %v12718_v45 }
 0x596   :  { %8976 = vmatpush3.msra.mxu0 %v12831_v59  ;;  %9055 = vmatpush3.msra.mxu1 %v12832_v57 }
 0x597   :  { %8978 = vmatmul.mubr.f32.vlgmr.msra.gmra.mxu0 %v11632_v32  ;;  %9056 = vmatprep.subr.mxu1 %v12718_v45  ;;  %v12840_v32 = vld [vmem:[#allocation45_spill] sm:$0xff] }
 0x598   :  { %9057 = vmatpush3.msra.mxu1 %v12833_v5  ;;  %9015 = vmatprep.subr.mxu0 %v12718_v45 }
 0x599   :  { %9058 = vmatprep.subr.mxu1 %v12718_v45  ;;  %9016 = vmatpush3.msra.mxu0 %v10286_v9 }
 0x59a   :  { %9059 = vmatpush3.msra.mxu1 %v12834_v44  ;;  %9017 = vmatprep.subr.mxu0 %v12718_v45 }
 0x59b   :  { %9060 = vmatprep.subr.mxu1 %v12718_v45  ;;  %9018 = vmatpush3.msra.mxu0 %v10297_v11 }
 0x59c   :  { %9061 = vmatpush3.msra.mxu1 %v12835_v8  ;;  %9019 = vmatprep.subr.mxu0 %v12718_v45 }
 0x59d   :  { %9062 = vmatprep.subr.mxu1 %v12718_v45  ;;  %9020 = vmatpush3.msra.mxu0 %v10311_v27 }
 0x59e   :  { %9063 = vmatpush3.msra.mxu1 %v12836_v21  ;;  %9021 = vmatprep.subr.mxu0 %v12718_v45 }
 0x59f   :  { %9064 = vmatprep.subr.mxu1 %v12718_v45  ;;  %9022 = vmatpush3.msra.mxu0 %v10331_v47 }
 0x5a0   :  { %9065 = vmatpush3.msra.mxu1 %v12837_v38  ;;  %9023 = vmatprep.subr.mxu0 %v12718_v45 }
 0x5a1   :  { %9066 = vmatprep.subr.mxu1 %v12718_v45  ;;  %9024 = vmatpush3.msra.mxu0 %v10340_v1 }
 0x5a2   :  { %9067 = vmatpush3.msra.mxu1 %v12838_v37  ;;  %9025 = vmatprep.subr.mxu0 %v12718_v45 }
 0x5a3   :  { %9068 = vmatprep.subr.mxu1 %v12718_v45  ;;  %9026 = vmatpush3.msra.mxu0 %v10362_v30 }
 0x5a4   :  { %9069 = vmatpush3.msra.mxu1 %v12839_v50  ;;  %9027 = vmatprep.subr.mxu0 %v12718_v45 }
 0x5a5   :  { %9070 = vmatprep.subr.mxu1 %v12718_v45  ;;  %9028 = vmatpush3.msra.mxu0 %v10381_v51 }
 0x5a6   :  { %9071 = vmatpush3.msra.mxu1 %v12840_v32  ;;  %9029 = vmatprep.subr.mxu0 %v12718_v45 }
 0x5a7   :  { %9072 = vmatprep.subr.mxu1 %v12718_v45  ;;  %9030 = vmatpush3.msra.mxu0 %v10395_v12 }
 0x5a8   :  { %9073 = vmatpush3.msra.mxu1 %v12841_v63  ;;  %9031 = vmatprep.subr.mxu0 %v12718_v45 }
 0x5a9   :  { %9074 = vmatprep.subr.mxu1 %v12718_v45  ;;  %9032 = vmatpush3.msra.mxu0 %v10412_v48 }
 0x5aa   :  { %9075 = vmatpush3.msra.mxu1 %v12842_v7  ;;  %9033 = vmatprep.subr.mxu0 %v12718_v45  ;;  %v12845_v7 = vld [vmem:[#allocation52_spill] sm:$0xff] }
 0x5ab   :  { %9076 = vmatprep.subr.mxu1 %v12718_v45  ;;  %9034 = vmatpush3.msra.mxu0 %v12719_v17 }
 0x5ac   :  { %9077 = vmatpush3.msra.mxu1 %v12843_v60  ;;  %9035 = vmatprep.subr.mxu0 %v12718_v45 }
 0x5ad   :  { %9078 = vmatprep.subr.mxu1 %v12718_v45  ;;  %9036 = vmatpush3.msra.mxu0 %v12721_v35 }
 0x5ae   :  { %9079 = vmatpush3.msra.mxu1 %v12844_v52  ;;  %9037 = vmatprep.subr.mxu0 %v12718_v45 }
 0x5af   :  { %9080 = vmatprep.subr.mxu1 %v12718_v45  ;;  %9038 = vmatpush3.msra.mxu0 %v12723_v62 }
 0x5b0   :  { %9081 = vmatpush3.msra.mxu1 %v12845_v7  ;;  %9039 = vmatprep.subr.mxu0 %v12718_v45 }
 0x5b1   :  { %9082 = vmatprep.mubr.msk.f32.mxu1 %vm9776_vm0, %v12718_v45  ;;  %9120 = vmatprep.subr.mxu1 %v12718_v45 }
 0x5b2   :  { %9040 = vmatpush3.msra.mxu0 %v12725_v36  ;;  %9047 = vmatprep.mubr.msk.f32.mxu0 %vm9776_vm0, %v12718_v45 }
 0x5b3   :  { %9041 = vmatprep.subr.mxu0 %v12718_v45 }
 0x5b4   :  { %9042 = vmatpush3.msra.mxu0 %v12727_v23 }
 0x5b5   :  { %9043 = vmatprep.subr.mxu0 %v12718_v45 }
 0x5b6   :  { %9044 = vmatpush3.msra.mxu0 %v12729_v49 }
 0x5b7   :  { %9045 = vmatprep.subr.mxu0 %v12718_v45 }
 0x5b8   :  { %9046 = vmatpush3.msra.mxu0 %v12731_v41 }
 0x5b9   :  { %9085 = vmatprep.subr.mxu0 %v12718_v45 }
 0x60d   :  { %v4133_v7 = vpop.f32.mrf.mxu1 }
 0x60f   :  { %v8874_v52 = vpop.f32.mrf.mxu1 }
 0x615   :  { %v3982_v60 = vpop.f32.mrf.mxu0 }
 0x616   :  { %v4134_v8 = vadd.f32 %v4133_v7, %v3982_v60 }
 0x617   :  { %v8839_v63 = vpop.f32.mrf.mxu0 }
 0x618   :  { %v3867_v63 = vld [vmem:[#allocation3 + $0x1c] sm:$0x1] }
 0x62d   :  { %v4326_v32 = vpop.f32.mrf.mxu1 }
 0x62f   :  { %v8944_v50 = vpop.f32.mrf.mxu1 }
 0x636   :  { %v4237_v37 = vpop.f32.mrf.mxu0 }
 0x637   :  { %v4238_v5 = vadd.f32 %v4237_v37, %v4134_v8 }
 0x638   :  { %v8909_v38 = vpop.f32.mrf.mxu0 }
 0x639   :  { %v4327_v57 = vadd.f32 %v4326_v32, %v4238_v5 }
 0x64f   :  { %v4532_v21 = vpop.f32.mrf.mxu1 }
 0x651   :  { %v9014_v44 = vpop.f32.mrf.mxu1 }
 0x657   :  { %v4445_v59 = vpop.f32.mrf.mxu0 }
 0x658   :  { %v4446_v29 = vadd.f32 %v4445_v59, %v4327_v57  ;;  %v3869_v59 = vld [vmem:[#allocation3 + $0x2c] sm:$0x1] }
 0x659   :  { %v8979_v40 = vpop.f32.mrf.mxu0 }
 0x65a   :  { %v4533_v56 = vadd.f32 %v4532_v21, %v4446_v29  ;;  %v3870_v29 = vld [vmem:[#allocation3 + $0x34] sm:$0x1]  ;;  %v3871_v21 = vld [vmem:[#allocation3 + $0x3c] sm:$0x1] }
 0x65c   :  { %v4537_v28 = vrot.slane %v4533_v56, 1  ;;  %v4538_v43 = vrot.slane %v4533_v56, 2  ;;  %v4539_v52 = vrot.slane %v4533_v56, 3  ;;  %v4540_v19 = vrot.slane %v4533_v56, 4 }
 0x65d   :  { %v4552_v50 = vadd.f32 %v4533_v56, %v3864_v53  ;;  %v4541_v18 = vrot.slane %v4533_v56, 5  ;;  %v4542_v38 = vrot.slane %v4533_v56, 6  ;;  %v4543_v8 = vrot.slane %v4533_v56, 7 }
 0x65e   :  { %v4553_v7 = vadd.f32 %v4537_v28, %v3865_v26  ;;  %v4554_v44 = vadd.f32 %v4538_v43, %v3866_v4  ;;  %v4555_v5 = vadd.f32 %v4539_v52, %v3867_v63  ;;  %v4556_v40 = vadd.f32 %v4540_v19, %v3868_v20 }
 0x65f   :  { %9711 = vtanh.f32 %v4552_v50  ;;  %v4557_v57 = vadd.f32 %v4541_v18, %v3869_v59  ;;  %v4558_v37 = vadd.f32 %v4542_v38, %v3870_v29  ;;  %v4559_v32 = vadd.f32 %v4543_v8, %v3871_v21 }
 0x660   :  { %9713 = vtanh.f32 %v4553_v7 }
 0x661   :  { %9715 = vtanh.f32 %v4554_v44 }
 0x662   :  { %9717 = vtanh.f32 %v4555_v5 }
 0x663   :  { %9719 = vtanh.f32 %v4556_v40 }
 0x664   :  { %9721 = vtanh.f32 %v4557_v57 }
 0x665   :  { %9723 = vtanh.f32 %v4558_v37 }
 0x666   :  { %9725 = vtanh.f32 %v4559_v32 }
 0x66c   :  { %v9712_v53 = vpop.eup %9711 }
 0x66d   :  { %v9714_v28 = vpop.eup %9713  ;;  %4568 = vst [vmem:[%s12544_s5 + $0x4] sm:$0x1] %v9712_v53 }
 0x66e   :  { %v9716_v4 = vpop.eup %9715  ;;  %4569 = vst [vmem:[%s12544_s5 + $0xc] sm:$0x1] %v9714_v28  ;;  %v4592_v20 = vrot.slane %v9714_v28, 7 }
 0x66f   :  { %v9718_v18 = vpop.eup %9717  ;;  %4570 = vst [vmem:[%s12544_s5 + $0x14] sm:$0x1] %v9716_v4  ;;  %v4594_v19 = vrot.slane %v9716_v4, 6  ;;  %v12846_v4 = vld [vmem:[#allocation17_spill] sm:$0xff] }
 0x670   :  { %v9720_v43 = vpop.eup %9719  ;;  %4571 = vst [vmem:[%s12544_s5 + $0x1c] sm:$0x1] %v9718_v18  ;;  %v4593_v26 = vsel %vm1738_vm1, %v4592_v20, %v9712_v53  ;;  %v4596_v56 = vrot.slane %v9718_v18, 5  ;;  %v12847_v20 = vld [vmem:[#allocation21_spill] sm:$0xff]  ;;  %v12848_v18 = vld [vmem:[#allocation24_spill] sm:$0xff] }
 0x671   :  { %v9722_v60 = vpop.eup %9721  ;;  %4572 = vst [vmem:[%s12544_s5 + $0x24] sm:$0x1] %v9720_v43  ;;  %v4595_v52 = vsel %vm1741_vm2, %v4594_v19, %v4593_v26  ;;  %v4598_v63 = vrot.slane %v9720_v43, 4  ;;  %v12849_v19 = vld [vmem:[#allocation28_spill] sm:$0xff] }
 0x672   :  { %v9724_v50 = vpop.eup %9723  ;;  %4573 = vst [vmem:[%s12544_s5 + $0x2c] sm:$0x1] %v9722_v60  ;;  %v4597_v38 = vsel %vm1744_vm3, %v4596_v56, %v4595_v52  ;;  %v4600_v7 = vrot.slane %v9722_v60, 3  ;;  %v12850_v43 = vld [vmem:[#allocation32_spill] sm:$0xff]  ;;  %v12853_v60 = vld [vmem:[#allocation43_spill] sm:$0xff] }
 0x673   :  { %v9726_v44 = vpop.eup %9725  ;;  %4574 = vst [vmem:[%s12544_s5 + $0x34] sm:$0x1] %v9724_v50  ;;  %v4599_v8 = vsel %vm1747_vm4, %v4598_v63, %v4597_v38  ;;  %v4602_v5 = vrot.slane %v9724_v50, 2  ;;  %v12851_v26 = vld [vmem:[#allocation36_spill] sm:$0xff]  ;;  %v12854_v52 = vld [vmem:[#allocation7_spill] sm:$0xff]  ;;  %v12855_v63 = vld [vmem:[#allocation46_spill] sm:$0xff] }
 0x674   :  { %4575 = vst [vmem:[%s12544_s5 + $0x3c] sm:$0x1] %v9726_v44  ;;  %v4601_v59 = vsel %vm1750_vm5, %v4600_v7, %v4599_v8  ;;  %v4604_v40 = vrot.slane %v9726_v44, 1  ;;  %v12852_v56 = vld [vmem:[#allocation40_spill] sm:$0xff]  ;;  %v12856_v50 = vld [vmem:[#allocation9_spill] sm:$0xff]  ;;  %v12859_v44 = vld [vmem:[#allocation19_spill] sm:$0xff] }
 0x675   :  { %v4603_v29 = vsel %vm1753_vm6, %v4602_v5, %v4601_v59  ;;  %v12857_v38 = vld [vmem:[#allocation48_spill] sm:$0xff]  ;;  %v12860_v8 = vld [vmem:[#allocation23_spill] sm:$0xff] }
 0x676   :  { %v4605_v57 = vsel %vm1756_vm7, %v4604_v40, %v4603_v29  ;;  %v12858_v7 = vld [vmem:[#allocation12_spill] sm:$0xff]  ;;  %v12861_v5 = vld [vmem:[#allocation27_spill] sm:$0xff] }
 0x677   :  { %v11878_v21 = vand.u32 4294901760, %v4605_v57  ;;  %v12862_v59 = vld [vmem:[#allocation31_spill] sm:$0xff] }
 0x678   :  { %v12863_v40 = vld [vmem:[#allocation35_spill] sm:$0xff] }
 0x679   :  { %v11881_v37 = vsub.f32 %v4605_v57, %v11878_v21  ;;  %9083 = vmatmul.mubr.f32.vlgmr.msra.gmra.mxu1 %v11878_v21  ;;  %v12864_v29 = vld [vmem:[#allocation39_spill] sm:$0xff]  ;;  %v12865_v57 = vld [vmem:[#allocation42_spill] sm:$0xff] }
 0x67a   :  { %9121 = vmatpush3.msra.mxu1 %v10286_v9  ;;  %9152 = vmatprep.mubr.msk.f32.mxu1 %vm9776_vm0, %v12718_v45 }
 0x67b   :  { %9122 = vmatprep.subr.mxu1 %v12718_v45  ;;  %v4690_v32 = vand.u32 4294901760, %v11881_v37 }
 0x67c   :  { %9123 = vmatpush3.msra.mxu1 %v10297_v11 }
 0x67d   :  { %9124 = vmatprep.subr.mxu1 %v12718_v45  ;;  %v4691_v53 = vsub.f32 %v11881_v37, %v4690_v32 }
 0x67e   :  { %9125 = vmatpush3.msra.mxu1 %v10311_v27 }
 0x67f   :  { %9126 = vmatprep.subr.mxu1 %v12718_v45  ;;  %v4692_v28 = vand.u32 4294901760, %v4691_v53  ;;  %v12869_v53 = vld [vmem:[#allocation50_spill] sm:$0xff] }
 0x680   :  { %9127 = vmatpush3.msra.mxu1 %v10331_v47 }
 0x681   :  { %9128 = vmatprep.subr.mxu1 %v12718_v45  ;;  %9048 = vmatmul.mubr.f32.vlgmr.msra.gmra.mxu0 %v4692_v28  ;;  %v12870_v28 = vld [vmem:[#allocation51_spill] sm:$0xff] }
 0x682   :  { %9086 = vmatpush3.msra.mxu0 %v10305_v24  ;;  %9129 = vmatpush3.msra.mxu1 %v10340_v1 }
 0x683   :  { %9087 = vmatprep.subr.mxu0 %v12718_v45  ;;  %9130 = vmatprep.subr.mxu1 %v12718_v45 }
 0x684   :  { %9088 = vmatpush3.msra.mxu0 %v10319_v39  ;;  %9131 = vmatpush3.msra.mxu1 %v10362_v30 }
 0x685   :  { %9089 = vmatprep.subr.mxu0 %v12718_v45  ;;  %9132 = vmatprep.subr.mxu1 %v12718_v45 }
 0x686   :  { %9090 = vmatpush3.msra.mxu0 %v10336_v58  ;;  %9133 = vmatpush3.msra.mxu1 %v10381_v51 }
 0x687   :  { %9091 = vmatprep.subr.mxu0 %v12718_v45  ;;  %9134 = vmatprep.subr.mxu1 %v12718_v45 }
 0x688   :  { %9092 = vmatpush3.msra.mxu0 %v10358_v25  ;;  %9135 = vmatpush3.msra.mxu1 %v10395_v12 }
 0x689   :  { %9093 = vmatprep.subr.mxu0 %v12718_v45  ;;  %9136 = vmatprep.subr.mxu1 %v12718_v45 }
 0x68a   :  { %9094 = vmatpush3.msra.mxu0 %v10375_v31  ;;  %9137 = vmatpush3.msra.mxu1 %v10412_v48 }
 0x68b   :  { %9095 = vmatprep.subr.mxu0 %v12718_v45  ;;  %9138 = vmatprep.subr.mxu1 %v12718_v45 }
 0x68c   :  { %9096 = vmatpush3.msra.mxu0 %v10398_v61  ;;  %9139 = vmatpush3.msra.mxu1 %v12719_v17 }
 0x68d   :  { %9097 = vmatprep.subr.mxu0 %v12718_v45  ;;  %9140 = vmatprep.subr.mxu1 %v12718_v45 }
 0x68e   :  { %9098 = vmatpush3.msra.mxu0 %v12720_v22  ;;  %9141 = vmatpush3.msra.mxu1 %v12721_v35 }
 0x68f   :  { %9099 = vmatprep.subr.mxu0 %v12718_v45  ;;  %9142 = vmatprep.subr.mxu1 %v12718_v45 }
 0x690   :  { %9100 = vmatpush3.msra.mxu0 %v12722_v0  ;;  %9143 = vmatpush3.msra.mxu1 %v12723_v62 }
 0x691   :  { %9101 = vmatprep.subr.mxu0 %v12718_v45  ;;  %9144 = vmatprep.subr.mxu1 %v12718_v45 }
 0x692   :  { %9102 = vmatpush3.msra.mxu0 %v12724_v33  ;;  %9145 = vmatpush3.msra.mxu1 %v12725_v36 }
 0x693   :  { %9103 = vmatprep.subr.mxu0 %v12718_v45  ;;  %9146 = vmatprep.subr.mxu1 %v12718_v45 }
 0x694   :  { %9104 = vmatpush3.msra.mxu0 %v12726_v46  ;;  %9147 = vmatpush3.msra.mxu1 %v12727_v23 }
 0x695   :  { %9105 = vmatprep.subr.mxu0 %v12718_v45  ;;  %9148 = vmatprep.subr.mxu1 %v12718_v45 }
 0x696   :  { %9106 = vmatpush3.msra.mxu0 %v12728_v55  ;;  %9149 = vmatpush3.msra.mxu1 %v12729_v49 }
 0x697   :  { %9107 = vmatprep.subr.mxu0 %v12718_v45  ;;  %9150 = vmatprep.subr.mxu1 %v12718_v45 }
 0x698   :  { %9108 = vmatpush3.msra.mxu0 %v12730_v3  ;;  %9151 = vmatpush3.msra.mxu1 %v12731_v41 }
 0x699   :  { %9109 = vmatprep.subr.mxu0 %v12718_v45  ;;  %9153 = vmatmul.mubr.f32.vlgmr.msra.gmra.mxu1 %v4690_v32  ;;  %v12868_v32 = vld [vmem:[#allocation49_spill] sm:$0xff] }
 0x69a   :  { %9190 = vmatprep.subr.mxu1 %v12718_v45  ;;  %9110 = vmatpush3.msra.mxu0 %v12732_v34 }
 0x69b   :  { %9191 = vmatpush3.msra.mxu1 %v10286_v9  ;;  %9111 = vmatprep.subr.mxu0 %v12718_v45 }
 0x69c   :  { %9192 = vmatprep.subr.mxu1 %v12718_v45  ;;  %9112 = vmatpush3.msra.mxu0 %v12733_v15 }
 0x69d   :  { %9193 = vmatpush3.msra.mxu1 %v10297_v11  ;;  %9113 = vmatprep.subr.mxu0 %v12718_v45 }
 0x69e   :  { %9194 = vmatprep.subr.mxu1 %v12718_v45  ;;  %9114 = vmatpush3.msra.mxu0 %v12734_v2 }
 0x69f   :  { %9195 = vmatpush3.msra.mxu1 %v10311_v27  ;;  %9115 = vmatprep.subr.mxu0 %v12718_v45 }
 0x6a0   :  { %9196 = vmatprep.subr.mxu1 %v12718_v45  ;;  %9116 = vmatpush3.msra.mxu0 %v12735_v42 }
 0x6a1   :  { %9117 = vmatprep.mubr.msk.f32.mxu0 %vm9776_vm0, %v12718_v45  ;;  %9197 = vmatpush3.msra.mxu1 %v10331_v47 }
 0x6a2   :  { %9118 = vmatmul.mubr.f32.vlgmr.msra.gmra.mxu0 %v11881_v37  ;;  %9155 = vmatprep.subr.mxu0 %v12718_v45  ;;  %v12867_v37 = vld [vmem:[#allocation47_spill] sm:$0xff] }
 0x6a3   :  { %9198 = vmatprep.subr.mxu1 %v12718_v45  ;;  %9156 = vmatpush3.msra.mxu0 %v12736_v14 }
 0x6a4   :  { %9199 = vmatpush3.msra.mxu1 %v10340_v1  ;;  %9157 = vmatprep.subr.mxu0 %v12718_v45 }
 0x6a5   :  { %9200 = vmatprep.subr.mxu1 %v12718_v45  ;;  %9158 = vmatpush3.msra.mxu0 %v12737_v13 }
 0x6a6   :  { %9201 = vmatpush3.msra.mxu1 %v10362_v30  ;;  %9159 = vmatprep.subr.mxu0 %v12718_v45 }
 0x6a7   :  { %9202 = vmatprep.subr.mxu1 %v12718_v45  ;;  %9160 = vmatpush3.msra.mxu0 %v12738_v10 }
 0x6a8   :  { %9203 = vmatpush3.msra.mxu1 %v10381_v51  ;;  %9161 = vmatprep.subr.mxu0 %v12718_v45 }
 0x6a9   :  { %9204 = vmatprep.subr.mxu1 %v12718_v45  ;;  %9162 = vmatpush3.msra.mxu0 %v12739_v16 }
 0x6aa   :  { %9205 = vmatpush3.msra.mxu1 %v10395_v12  ;;  %9163 = vmatprep.subr.mxu0 %v12718_v45 }
 0x6ab   :  { %9206 = vmatprep.subr.mxu1 %v12718_v45  ;;  %9164 = vmatpush3.msra.mxu0 %v12740_v54 }
 0x6ac   :  { %9207 = vmatpush3.msra.mxu1 %v10412_v48  ;;  %9165 = vmatprep.subr.mxu0 %v12718_v45 }
 0x6ad   :  { %9208 = vmatprep.subr.mxu1 %v12718_v45  ;;  %9166 = vmatpush3.msra.mxu0 %v12741_v6 }
 0x6ae   :  { %9209 = vmatpush3.msra.mxu1 %v12719_v17  ;;  %9167 = vmatprep.subr.mxu0 %v12718_v45 }
 0x6af   :  { %9210 = vmatprep.subr.mxu1 %v12718_v45  ;;  %9168 = vmatpush3.msra.mxu0 %v12846_v4  ;;  %v4580_v4 = vld [vmem:[#allocation3 + $0x25] sm:$0x1] }
 0x6b0   :  { %9211 = vmatpush3.msra.mxu1 %v12721_v35  ;;  %9169 = vmatprep.subr.mxu0 %v12718_v45 }
 0x6b1   :  { %9212 = vmatprep.subr.mxu1 %v12718_v45  ;;  %9170 = vmatpush3.msra.mxu0 %v12847_v20 }
 0x6b2   :  { %9213 = vmatpush3.msra.mxu1 %v12723_v62  ;;  %9171 = vmatprep.subr.mxu0 %v12718_v45 }
 0x6b3   :  { %9214 = vmatprep.subr.mxu1 %v12718_v45  ;;  %9172 = vmatpush3.msra.mxu0 %v12848_v18  ;;  %v4578_v18 = vld [vmem:[#allocation3 + $0x15] sm:$0x1] }
 0x6b4   :  { %9215 = vmatpush3.msra.mxu1 %v12725_v36  ;;  %9173 = vmatprep.subr.mxu0 %v12718_v45 }
 0x6b5   :  { %9216 = vmatprep.subr.mxu1 %v12718_v45  ;;  %9174 = vmatpush3.msra.mxu0 %v12849_v19 }
 0x6b6   :  { %9217 = vmatpush3.msra.mxu1 %v12727_v23  ;;  %9175 = vmatprep.subr.mxu0 %v12718_v45 }
 0x6b7   :  { %9218 = vmatprep.subr.mxu1 %v12718_v45  ;;  %9176 = vmatpush3.msra.mxu0 %v12850_v43 }
 0x6b8   :  { %9219 = vmatpush3.msra.mxu1 %v12729_v49  ;;  %9177 = vmatprep.subr.mxu0 %v12718_v45 }
 0x6b9   :  { %9220 = vmatprep.subr.mxu1 %v12718_v45  ;;  %9178 = vmatpush3.msra.mxu0 %v12851_v26 }
 0x6ba   :  { %9221 = vmatpush3.msra.mxu1 %v12731_v41  ;;  %9222 = vmatprep.mubr.msk.f32.mxu1 %vm9776_vm0, %v12718_v45 }
 0x6bb   :  { %9179 = vmatprep.subr.mxu0 %v12718_v45  ;;  %9223 = vmatmul.mubr.f32.vlgmr.msra.gmra.mxu1 %v11878_v21 }
 0x6bc   :  { %9180 = vmatpush3.msra.mxu0 %v12852_v56  ;;  %9187 = vmatprep.mubr.msk.f32.mxu0 %vm9776_vm0, %v12718_v45  ;;  %v4576_v56 = vld [vmem:[#allocation3 + $0x5] sm:$0x1] }
 0x6bd   :  { %9181 = vmatprep.subr.mxu0 %v12718_v45  ;;  %9260 = vmatprep.subr.mxu1 %v12718_v45 }
 0x6be   :  { %9182 = vmatpush3.msra.mxu0 %v12853_v60  ;;  %9261 = vmatpush3.msra.mxu1 %v12854_v52  ;;  %v4577_v60 = vld [vmem:[#allocation3 + $0xd] sm:$0x1] }
 0x6bf   :  { %9183 = vmatprep.subr.mxu0 %v12718_v45  ;;  %9262 = vmatprep.subr.mxu1 %v12718_v45 }
 0x6c0   :  { %9184 = vmatpush3.msra.mxu0 %v12855_v63  ;;  %9263 = vmatpush3.msra.mxu1 %v12856_v50 }
 0x6c1   :  { %9185 = vmatprep.subr.mxu0 %v12718_v45  ;;  %9264 = vmatprep.subr.mxu1 %v12718_v45 }
 0x6c2   :  { %9186 = vmatpush3.msra.mxu0 %v12857_v38  ;;  %9265 = vmatpush3.msra.mxu1 %v12858_v7 }
 0x6c3   :  { %9188 = vmatmul.mubr.f32.vlgmr.msra.gmra.mxu0 %v11878_v21  ;;  %9266 = vmatprep.subr.mxu1 %v12718_v45  ;;  %v12866_v21 = vld [vmem:[#allocation45_spill] sm:$0xff] }
 0x6c4   :  { %9267 = vmatpush3.msra.mxu1 %v12859_v44  ;;  %9225 = vmatprep.subr.mxu0 %v12718_v45 }
 0x6c5   :  { %9268 = vmatprep.subr.mxu1 %v12718_v45  ;;  %9226 = vmatpush3.msra.mxu0 %v10286_v9 }
 0x6c6   :  { %9269 = vmatpush3.msra.mxu1 %v12860_v8  ;;  %9227 = vmatprep.subr.mxu0 %v12718_v45 }
 0x6c7   :  { %9270 = vmatprep.subr.mxu1 %v12718_v45  ;;  %9228 = vmatpush3.msra.mxu0 %v10297_v11 }
 0x6c8   :  { %9271 = vmatpush3.msra.mxu1 %v12861_v5  ;;  %9229 = vmatprep.subr.mxu0 %v12718_v45 }
 0x6c9   :  { %9272 = vmatprep.subr.mxu1 %v12718_v45  ;;  %9230 = vmatpush3.msra.mxu0 %v10311_v27 }
 0x6ca   :  { %9273 = vmatpush3.msra.mxu1 %v12862_v59  ;;  %9231 = vmatprep.subr.mxu0 %v12718_v45 }
 0x6cb   :  { %9274 = vmatprep.subr.mxu1 %v12718_v45  ;;  %9232 = vmatpush3.msra.mxu0 %v10331_v47 }
 0x6cc   :  { %9275 = vmatpush3.msra.mxu1 %v12863_v40  ;;  %9233 = vmatprep.subr.mxu0 %v12718_v45 }
 0x6cd   :  { %9276 = vmatprep.subr.mxu1 %v12718_v45  ;;  %9234 = vmatpush3.msra.mxu0 %v10340_v1 }
 0x6ce   :  { %9277 = vmatpush3.msra.mxu1 %v12864_v29  ;;  %9235 = vmatprep.subr.mxu0 %v12718_v45 }
 0x6cf   :  { %9278 = vmatprep.subr.mxu1 %v12718_v45  ;;  %9236 = vmatpush3.msra.mxu0 %v10362_v30 }
 0x6d0   :  { %9279 = vmatpush3.msra.mxu1 %v12865_v57  ;;  %9237 = vmatprep.subr.mxu0 %v12718_v45 }
 0x6d1   :  { %9280 = vmatprep.subr.mxu1 %v12718_v45  ;;  %9238 = vmatpush3.msra.mxu0 %v10381_v51 }
 0x6d2   :  { %9281 = vmatpush3.msra.mxu1 %v12866_v21  ;;  %9239 = vmatprep.subr.mxu0 %v12718_v45 }
 0x6d3   :  { %9282 = vmatprep.subr.mxu1 %v12718_v45  ;;  %9240 = vmatpush3.msra.mxu0 %v10395_v12 }
 0x6d4   :  { %9283 = vmatpush3.msra.mxu1 %v12867_v37  ;;  %9241 = vmatprep.subr.mxu0 %v12718_v45 }
 0x6d5   :  { %9284 = vmatprep.subr.mxu1 %v12718_v45  ;;  %9242 = vmatpush3.msra.mxu0 %v10412_v48 }
 0x6d6   :  { %9285 = vmatpush3.msra.mxu1 %v12868_v32  ;;  %9243 = vmatprep.subr.mxu0 %v12718_v45  ;;  %v12871_v32 = vld [vmem:[#allocation52_spill] sm:$0xff] }
 0x6d7   :  { %9286 = vmatprep.subr.mxu1 %v12718_v45  ;;  %9244 = vmatpush3.msra.mxu0 %v12719_v17 }
 0x6d8   :  { %9287 = vmatpush3.msra.mxu1 %v12869_v53  ;;  %9245 = vmatprep.subr.mxu0 %v12718_v45 }
 0x6d9   :  { %9288 = vmatprep.subr.mxu1 %v12718_v45  ;;  %9246 = vmatpush3.msra.mxu0 %v12721_v35 }
 0x6da   :  { %9289 = vmatpush3.msra.mxu1 %v12870_v28  ;;  %9247 = vmatprep.subr.mxu0 %v12718_v45 }
 0x6db   :  { %9290 = vmatprep.subr.mxu1 %v12718_v45  ;;  %9248 = vmatpush3.msra.mxu0 %v12723_v62 }
 0x6dc   :  { %9291 = vmatpush3.msra.mxu1 %v12871_v32  ;;  %9249 = vmatprep.subr.mxu0 %v12718_v45 }
 0x6dd   :  { %9292 = vmatprep.mubr.msk.f32.mxu1 %vm9776_vm0, %v12718_v45  ;;  %9330 = vmatprep.subr.mxu1 %v12718_v45 }
 0x6de   :  { %9250 = vmatpush3.msra.mxu0 %v12725_v36  ;;  %9257 = vmatprep.mubr.msk.f32.mxu0 %vm9776_vm0, %v12718_v45 }
 0x6df   :  { %9251 = vmatprep.subr.mxu0 %v12718_v45 }
 0x6e0   :  { %9252 = vmatpush3.msra.mxu0 %v12727_v23 }
 0x6e1   :  { %9253 = vmatprep.subr.mxu0 %v12718_v45 }
 0x6e2   :  { %9254 = vmatpush3.msra.mxu0 %v12729_v49 }
 0x6e3   :  { %9255 = vmatprep.subr.mxu0 %v12718_v45 }
 0x6e4   :  { %9256 = vmatpush3.msra.mxu0 %v12731_v41 }
 0x6e5   :  { %9295 = vmatprep.subr.mxu0 %v12718_v45 }
 0x739   :  { %v4845_v32 = vpop.f32.mrf.mxu1 }
 0x73b   :  { %v9084_v28 = vpop.f32.mrf.mxu1 }
 0x741   :  { %v4694_v53 = vpop.f32.mrf.mxu0 }
 0x742   :  { %v4846_v5 = vadd.f32 %v4845_v32, %v4694_v53 }
 0x743   :  { %v9049_v37 = vpop.f32.mrf.mxu0 }
 0x744   :  { %v4579_v37 = vld [vmem:[#allocation3 + $0x1d] sm:$0x1] }
 0x759   :  { %v5038_v21 = vpop.f32.mrf.mxu1 }
 0x75b   :  { %v9154_v57 = vpop.f32.mrf.mxu1 }
 0x762   :  { %v4949_v29 = vpop.f32.mrf.mxu0 }
 0x763   :  { %v4950_v44 = vadd.f32 %v4949_v29, %v4846_v5 }
 0x764   :  { %v9119_v40 = vpop.f32.mrf.mxu0 }
 0x765   :  { %v5039_v7 = vadd.f32 %v5038_v21, %v4950_v44 }
 0x77b   :  { %v5244_v59 = vpop.f32.mrf.mxu1 }
 0x77d   :  { %v9224_v8 = vpop.f32.mrf.mxu1 }
 0x783   :  { %v5157_v38 = vpop.f32.mrf.mxu0 }
 0x784   :  { %v5158_v50 = vadd.f32 %v5157_v38, %v5039_v7  ;;  %v4581_v38 = vld [vmem:[#allocation3 + $0x2d] sm:$0x1] }
 0x785   :  { %v9189_v63 = vpop.f32.mrf.mxu0 }
 0x786   :  { %v5245_v52 = vadd.f32 %v5244_v59, %v5158_v50  ;;  %v4582_v50 = vld [vmem:[#allocation3 + $0x35] sm:$0x1]  ;;  %v4583_v59 = vld [vmem:[#allocation3 + $0x3d] sm:$0x1] }
 0x788   :  { %v5249_v26 = vrot.slane %v5245_v52, 1  ;;  %v5250_v43 = vrot.slane %v5245_v52, 2  ;;  %v5251_v28 = vrot.slane %v5245_v52, 3  ;;  %v5252_v19 = vrot.slane %v5245_v52, 4 }
 0x789   :  { %v5264_v57 = vadd.f32 %v5245_v52, %v4576_v56  ;;  %v5253_v20 = vrot.slane %v5245_v52, 5  ;;  %v5254_v40 = vrot.slane %v5245_v52, 6  ;;  %v5255_v5 = vrot.slane %v5245_v52, 7 }
 0x78a   :  { %v5265_v32 = vadd.f32 %v5249_v26, %v4577_v60  ;;  %v5266_v8 = vadd.f32 %v5250_v43, %v4578_v18  ;;  %v5267_v44 = vadd.f32 %v5251_v28, %v4579_v37  ;;  %v5268_v63 = vadd.f32 %v5252_v19, %v4580_v4 }
 0x78b   :  { %9727 = vtanh.f32 %v5264_v57  ;;  %v5269_v7 = vadd.f32 %v5253_v20, %v4581_v38  ;;  %v5270_v29 = vadd.f32 %v5254_v40, %v4582_v50  ;;  %v5271_v21 = vadd.f32 %v5255_v5, %v4583_v59 }
 0x78c   :  { %9729 = vtanh.f32 %v5265_v32 }
 0x78d   :  { %9731 = vtanh.f32 %v5266_v8 }
 0x78e   :  { %9733 = vtanh.f32 %v5267_v44 }
 0x78f   :  { %9735 = vtanh.f32 %v5268_v63 }
 0x790   :  { %9737 = vtanh.f32 %v5269_v7 }
 0x791   :  { %9739 = vtanh.f32 %v5270_v29 }
 0x792   :  { %9741 = vtanh.f32 %v5271_v21 }
 0x798   :  { %v9728_v56 = vpop.eup %9727 }
 0x799   :  { %v9730_v26 = vpop.eup %9729  ;;  %5280 = vst [vmem:[%s12544_s5 + $0x5] sm:$0x1] %v9728_v56 }
 0x79a   :  { %v9732_v18 = vpop.eup %9731  ;;  %5281 = vst [vmem:[%s12544_s5 + $0xd] sm:$0x1] %v9730_v26  ;;  %v5304_v4 = vrot.slane %v9730_v26, 7 }
 0x79b   :  { %v9734_v20 = vpop.eup %9733  ;;  %5282 = vst [vmem:[%s12544_s5 + $0x15] sm:$0x1] %v9732_v18  ;;  %v5306_v19 = vrot.slane %v9732_v18, 6  ;;  %v12872_v18 = vld [vmem:[#allocation17_spill] sm:$0xff] }
 0x79c   :  { %v9736_v43 = vpop.eup %9735  ;;  %5283 = vst [vmem:[%s12544_s5 + $0x1d] sm:$0x1] %v9734_v20  ;;  %v5305_v60 = vsel %vm1738_vm1, %v5304_v4, %v9728_v56  ;;  %v5308_v52 = vrot.slane %v9734_v20, 5  ;;  %v12873_v4 = vld [vmem:[#allocation21_spill] sm:$0xff]  ;;  %v12874_v20 = vld [vmem:[#allocation24_spill] sm:$0xff] }
 0x79d   :  { %v9738_v53 = vpop.eup %9737  ;;  %5284 = vst [vmem:[%s12544_s5 + $0x25] sm:$0x1] %v9736_v43  ;;  %v5307_v28 = vsel %vm1741_vm2, %v5306_v19, %v5305_v60  ;;  %v5310_v37 = vrot.slane %v9736_v43, 4  ;;  %v12875_v19 = vld [vmem:[#allocation28_spill] sm:$0xff] }
 0x79e   :  { %v9740_v57 = vpop.eup %9739  ;;  %5285 = vst [vmem:[%s12544_s5 + $0x2d] sm:$0x1] %v9738_v53  ;;  %v5309_v40 = vsel %vm1744_vm3, %v5308_v52, %v5307_v28  ;;  %v5312_v32 = vrot.slane %v9738_v53, 3  ;;  %v12876_v43 = vld [vmem:[#allocation32_spill] sm:$0xff]  ;;  %v12879_v53 = vld [vmem:[#allocation43_spill] sm:$0xff] }
 0x79f   :  { %v9742_v8 = vpop.eup %9741  ;;  %5286 = vst [vmem:[%s12544_s5 + $0x35] sm:$0x1] %v9740_v57  ;;  %v5311_v5 = vsel %vm1747_vm4, %v5310_v37, %v5309_v40  ;;  %v5314_v44 = vrot.slane %v9740_v57, 2  ;;  %v12877_v60 = vld [vmem:[#allocation36_spill] sm:$0xff]  ;;  %v12880_v28 = vld [vmem:[#allocation7_spill] sm:$0xff]  ;;  %v12881_v37 = vld [vmem:[#allocation46_spill] sm:$0xff] }
 0x7a0   :  { %5287 = vst [vmem:[%s12544_s5 + $0x3d] sm:$0x1] %v9742_v8  ;;  %v5313_v38 = vsel %vm1750_vm5, %v5312_v32, %v5311_v5  ;;  %v5316_v63 = vrot.slane %v9742_v8, 1  ;;  %v12878_v52 = vld [vmem:[#allocation40_spill] sm:$0xff]  ;;  %v12882_v57 = vld [vmem:[#allocation9_spill] sm:$0xff]  ;;  %v12885_v8 = vld [vmem:[#allocation19_spill] sm:$0xff] }
 0x7a1   :  { %v5315_v50 = vsel %vm1753_vm6, %v5314_v44, %v5313_v38  ;;  %v12883_v40 = vld [vmem:[#allocation48_spill] sm:$0xff]  ;;  %v12886_v5 = vld [vmem:[#allocation23_spill] sm:$0xff] }
 0x7a2   :  { %v5317_v7 = vsel %vm1756_vm7, %v5316_v63, %v5315_v50  ;;  %v12884_v32 = vld [vmem:[#allocation12_spill] sm:$0xff]  ;;  %v12887_v44 = vld [vmem:[#allocation27_spill] sm:$0xff] }
 0x7a3   :  { %v12124_v59 = vand.u32 4294901760, %v5317_v7  ;;  %v12888_v38 = vld [vmem:[#allocation31_spill] sm:$0xff] }
 0x7a4   :  { %v12889_v63 = vld [vmem:[#allocation35_spill] sm:$0xff] }
 0x7a5   :  { %v12127_v29 = vsub.f32 %v5317_v7, %v12124_v59  ;;  %9293 = vmatmul.mubr.f32.vlgmr.msra.gmra.mxu1 %v12124_v59  ;;  %v12890_v50 = vld [vmem:[#allocation39_spill] sm:$0xff]  ;;  %v12891_v7 = vld [vmem:[#allocation42_spill] sm:$0xff] }
 0x7a6   :  { %9331 = vmatpush3.msra.mxu1 %v10286_v9  ;;  %9362 = vmatprep.mubr.msk.f32.mxu1 %vm9776_vm0, %v12718_v45 }
 0x7a7   :  { %9332 = vmatprep.subr.mxu1 %v12718_v45  ;;  %v5402_v21 = vand.u32 4294901760, %v12127_v29 }
 0x7a8   :  { %9333 = vmatpush3.msra.mxu1 %v10297_v11 }
 0x7a9   :  { %9334 = vmatprep.subr.mxu1 %v12718_v45  ;;  %v5403_v56 = vsub.f32 %v12127_v29, %v5402_v21 }
 0x7aa   :  { %9335 = vmatpush3.msra.mxu1 %v10311_v27 }
 0x7ab   :  { %9336 = vmatprep.subr.mxu1 %v12718_v45  ;;  %v5404_v26 = vand.u32 4294901760, %v5403_v56  ;;  %v12895_v56 = vld [vmem:[#allocation50_spill] sm:$0xff] }
 0x7ac   :  { %9337 = vmatpush3.msra.mxu1 %v10331_v47 }
 0x7ad   :  { %9338 = vmatprep.subr.mxu1 %v12718_v45  ;;  %9258 = vmatmul.mubr.f32.vlgmr.msra.gmra.mxu0 %v5404_v26  ;;  %v12896_v26 = vld [vmem:[#allocation51_spill] sm:$0xff] }
 0x7ae   :  { %9296 = vmatpush3.msra.mxu0 %v10305_v24  ;;  %9339 = vmatpush3.msra.mxu1 %v10340_v1 }
 0x7af   :  { %9297 = vmatprep.subr.mxu0 %v12718_v45  ;;  %9340 = vmatprep.subr.mxu1 %v12718_v45 }
 0x7b0   :  { %9298 = vmatpush3.msra.mxu0 %v10319_v39  ;;  %9341 = vmatpush3.msra.mxu1 %v10362_v30 }
 0x7b1   :  { %9299 = vmatprep.subr.mxu0 %v12718_v45  ;;  %9342 = vmatprep.subr.mxu1 %v12718_v45 }
 0x7b2   :  { %9300 = vmatpush3.msra.mxu0 %v10336_v58  ;;  %9343 = vmatpush3.msra.mxu1 %v10381_v51 }
 0x7b3   :  { %9301 = vmatprep.subr.mxu0 %v12718_v45  ;;  %9344 = vmatprep.subr.mxu1 %v12718_v45 }
 0x7b4   :  { %9302 = vmatpush3.msra.mxu0 %v10358_v25  ;;  %9345 = vmatpush3.msra.mxu1 %v10395_v12 }
 0x7b5   :  { %9303 = vmatprep.subr.mxu0 %v12718_v45  ;;  %9346 = vmatprep.subr.mxu1 %v12718_v45 }
 0x7b6   :  { %9304 = vmatpush3.msra.mxu0 %v10375_v31  ;;  %9347 = vmatpush3.msra.mxu1 %v10412_v48 }
 0x7b7   :  { %9305 = vmatprep.subr.mxu0 %v12718_v45  ;;  %9348 = vmatprep.subr.mxu1 %v12718_v45 }
 0x7b8   :  { %9306 = vmatpush3.msra.mxu0 %v10398_v61  ;;  %9349 = vmatpush3.msra.mxu1 %v12719_v17 }
 0x7b9   :  { %9307 = vmatprep.subr.mxu0 %v12718_v45  ;;  %9350 = vmatprep.subr.mxu1 %v12718_v45 }
 0x7ba   :  { %9308 = vmatpush3.msra.mxu0 %v12720_v22  ;;  %9351 = vmatpush3.msra.mxu1 %v12721_v35 }
 0x7bb   :  { %9309 = vmatprep.subr.mxu0 %v12718_v45  ;;  %9352 = vmatprep.subr.mxu1 %v12718_v45 }
 0x7bc   :  { %9310 = vmatpush3.msra.mxu0 %v12722_v0  ;;  %9353 = vmatpush3.msra.mxu1 %v12723_v62 }
 0x7bd   :  { %9311 = vmatprep.subr.mxu0 %v12718_v45  ;;  %9354 = vmatprep.subr.mxu1 %v12718_v45 }
 0x7be   :  { %9312 = vmatpush3.msra.mxu0 %v12724_v33  ;;  %9355 = vmatpush3.msra.mxu1 %v12725_v36 }
 0x7bf   :  { %9313 = vmatprep.subr.mxu0 %v12718_v45  ;;  %9356 = vmatprep.subr.mxu1 %v12718_v45 }
 0x7c0   :  { %9314 = vmatpush3.msra.mxu0 %v12726_v46  ;;  %9357 = vmatpush3.msra.mxu1 %v12727_v23 }
 0x7c1   :  { %9315 = vmatprep.subr.mxu0 %v12718_v45  ;;  %9358 = vmatprep.subr.mxu1 %v12718_v45 }
 0x7c2   :  { %9316 = vmatpush3.msra.mxu0 %v12728_v55  ;;  %9359 = vmatpush3.msra.mxu1 %v12729_v49 }
 0x7c3   :  { %9317 = vmatprep.subr.mxu0 %v12718_v45  ;;  %9360 = vmatprep.subr.mxu1 %v12718_v45 }
 0x7c4   :  { %9318 = vmatpush3.msra.mxu0 %v12730_v3  ;;  %9361 = vmatpush3.msra.mxu1 %v12731_v41 }
 0x7c5   :  { %9319 = vmatprep.subr.mxu0 %v12718_v45  ;;  %9363 = vmatmul.mubr.f32.vlgmr.msra.gmra.mxu1 %v5402_v21  ;;  %v12894_v21 = vld [vmem:[#allocation49_spill] sm:$0xff] }
 0x7c6   :  { %9400 = vmatprep.subr.mxu1 %v12718_v45  ;;  %9320 = vmatpush3.msra.mxu0 %v12732_v34 }
 0x7c7   :  { %9401 = vmatpush3.msra.mxu1 %v10286_v9  ;;  %9321 = vmatprep.subr.mxu0 %v12718_v45 }
 0x7c8   :  { %9402 = vmatprep.subr.mxu1 %v12718_v45  ;;  %9322 = vmatpush3.msra.mxu0 %v12733_v15 }
 0x7c9   :  { %9403 = vmatpush3.msra.mxu1 %v10297_v11  ;;  %9323 = vmatprep.subr.mxu0 %v12718_v45 }
 0x7ca   :  { %9404 = vmatprep.subr.mxu1 %v12718_v45  ;;  %9324 = vmatpush3.msra.mxu0 %v12734_v2 }
 0x7cb   :  { %9405 = vmatpush3.msra.mxu1 %v10311_v27  ;;  %9325 = vmatprep.subr.mxu0 %v12718_v45 }
 0x7cc   :  { %9406 = vmatprep.subr.mxu1 %v12718_v45  ;;  %9326 = vmatpush3.msra.mxu0 %v12735_v42 }
 0x7cd   :  { %9327 = vmatprep.mubr.msk.f32.mxu0 %vm9776_vm0, %v12718_v45  ;;  %9407 = vmatpush3.msra.mxu1 %v10331_v47 }
 0x7ce   :  { %9328 = vmatmul.mubr.f32.vlgmr.msra.gmra.mxu0 %v12127_v29  ;;  %9365 = vmatprep.subr.mxu0 %v12718_v45  ;;  %v12893_v29 = vld [vmem:[#allocation47_spill] sm:$0xff] }
 0x7cf   :  { %9408 = vmatprep.subr.mxu1 %v12718_v45  ;;  %9366 = vmatpush3.msra.mxu0 %v12736_v14 }
 0x7d0   :  { %9409 = vmatpush3.msra.mxu1 %v10340_v1  ;;  %9367 = vmatprep.subr.mxu0 %v12718_v45 }
 0x7d1   :  { %9410 = vmatprep.subr.mxu1 %v12718_v45  ;;  %9368 = vmatpush3.msra.mxu0 %v12737_v13 }
 0x7d2   :  { %9411 = vmatpush3.msra.mxu1 %v10362_v30  ;;  %9369 = vmatprep.subr.mxu0 %v12718_v45 }
 0x7d3   :  { %9412 = vmatprep.subr.mxu1 %v12718_v45  ;;  %9370 = vmatpush3.msra.mxu0 %v12738_v10 }
 0x7d4   :  { %9413 = vmatpush3.msra.mxu1 %v10381_v51  ;;  %9371 = vmatprep.subr.mxu0 %v12718_v45 }
 0x7d5   :  { %9414 = vmatprep.subr.mxu1 %v12718_v45  ;;  %9372 = vmatpush3.msra.mxu0 %v12739_v16 }
 0x7d6   :  { %9415 = vmatpush3.msra.mxu1 %v10395_v12  ;;  %9373 = vmatprep.subr.mxu0 %v12718_v45 }
 0x7d7   :  { %9416 = vmatprep.subr.mxu1 %v12718_v45  ;;  %9374 = vmatpush3.msra.mxu0 %v12740_v54 }
 0x7d8   :  { %9417 = vmatpush3.msra.mxu1 %v10412_v48  ;;  %9375 = vmatprep.subr.mxu0 %v12718_v45 }
 0x7d9   :  { %9418 = vmatprep.subr.mxu1 %v12718_v45  ;;  %9376 = vmatpush3.msra.mxu0 %v12741_v6 }
 0x7da   :  { %9419 = vmatpush3.msra.mxu1 %v12719_v17  ;;  %9377 = vmatprep.subr.mxu0 %v12718_v45 }
 0x7db   :  { %9420 = vmatprep.subr.mxu1 %v12718_v45  ;;  %9378 = vmatpush3.msra.mxu0 %v12872_v18  ;;  %v5292_v18 = vld [vmem:[#allocation3 + $0x26] sm:$0x1] }
 0x7dc   :  { %9421 = vmatpush3.msra.mxu1 %v12721_v35  ;;  %9379 = vmatprep.subr.mxu0 %v12718_v45 }
 0x7dd   :  { %9422 = vmatprep.subr.mxu1 %v12718_v45  ;;  %9380 = vmatpush3.msra.mxu0 %v12873_v4 }
 0x7de   :  { %9423 = vmatpush3.msra.mxu1 %v12723_v62  ;;  %9381 = vmatprep.subr.mxu0 %v12718_v45 }
 0x7df   :  { %9424 = vmatprep.subr.mxu1 %v12718_v45  ;;  %9382 = vmatpush3.msra.mxu0 %v12874_v20  ;;  %v5290_v20 = vld [vmem:[#allocation3 + $0x16] sm:$0x1] }
 0x7e0   :  { %9425 = vmatpush3.msra.mxu1 %v12725_v36  ;;  %9383 = vmatprep.subr.mxu0 %v12718_v45 }
 0x7e1   :  { %9426 = vmatprep.subr.mxu1 %v12718_v45  ;;  %9384 = vmatpush3.msra.mxu0 %v12875_v19 }
 0x7e2   :  { %9427 = vmatpush3.msra.mxu1 %v12727_v23  ;;  %9385 = vmatprep.subr.mxu0 %v12718_v45 }
 0x7e3   :  { %9428 = vmatprep.subr.mxu1 %v12718_v45  ;;  %9386 = vmatpush3.msra.mxu0 %v12876_v43 }
 0x7e4   :  { %9429 = vmatpush3.msra.mxu1 %v12729_v49  ;;  %9387 = vmatprep.subr.mxu0 %v12718_v45 }
 0x7e5   :  { %9430 = vmatprep.subr.mxu1 %v12718_v45  ;;  %9388 = vmatpush3.msra.mxu0 %v12877_v60 }
 0x7e6   :  { %9431 = vmatpush3.msra.mxu1 %v12731_v41  ;;  %9432 = vmatprep.mubr.msk.f32.mxu1 %vm9776_vm0, %v12718_v45 }
 0x7e7   :  { %9389 = vmatprep.subr.mxu0 %v12718_v45  ;;  %9433 = vmatmul.mubr.f32.vlgmr.msra.gmra.mxu1 %v12124_v59 }
 0x7e8   :  { %9390 = vmatpush3.msra.mxu0 %v12878_v52  ;;  %9397 = vmatprep.mubr.msk.f32.mxu0 %vm9776_vm0, %v12718_v45  ;;  %v5288_v52 = vld [vmem:[#allocation3 + $0x6] sm:$0x1] }
 0x7e9   :  { %9391 = vmatprep.subr.mxu0 %v12718_v45  ;;  %9470 = vmatprep.subr.mxu1 %v12718_v45 }
 0x7ea   :  { %9392 = vmatpush3.msra.mxu0 %v12879_v53  ;;  %9471 = vmatpush3.msra.mxu1 %v12880_v28  ;;  %v12897_v28 = vld [vmem:[#allocation52_spill] sm:$0xff]  ;;  %v5289_v53 = vld [vmem:[#allocation3 + $0xe] sm:$0x1] }
 0x7eb   :  { %9393 = vmatprep.subr.mxu0 %v12718_v45  ;;  %9472 = vmatprep.subr.mxu1 %v12718_v45 }
 0x7ec   :  { %9394 = vmatpush3.msra.mxu0 %v12881_v37  ;;  %9473 = vmatpush3.msra.mxu1 %v12882_v57 }
 0x7ed   :  { %9395 = vmatprep.subr.mxu0 %v12718_v45  ;;  %9474 = vmatprep.subr.mxu1 %v12718_v45 }
 0x7ee   :  { %9396 = vmatpush3.msra.mxu0 %v12883_v40  ;;  %9475 = vmatpush3.msra.mxu1 %v12884_v32 }
 0x7ef   :  { %9398 = vmatmul.mubr.f32.vlgmr.msra.gmra.mxu0 %v12124_v59  ;;  %9476 = vmatprep.subr.mxu1 %v12718_v45  ;;  %v12892_v59 = vld [vmem:[#allocation45_spill] sm:$0xff] }
 0x7f0   :  { %9477 = vmatpush3.msra.mxu1 %v12885_v8  ;;  %9435 = vmatprep.subr.mxu0 %v12718_v45 }
 0x7f1   :  { %9478 = vmatprep.subr.mxu1 %v12718_v45  ;;  %9436 = vmatpush3.msra.mxu0 %v10286_v9 }
 0x7f2   :  { %9479 = vmatpush3.msra.mxu1 %v12886_v5  ;;  %9437 = vmatprep.subr.mxu0 %v12718_v45 }
 0x7f3   :  { %9480 = vmatprep.subr.mxu1 %v12718_v45  ;;  %9438 = vmatpush3.msra.mxu0 %v10297_v11 }
 0x7f4   :  { %9481 = vmatpush3.msra.mxu1 %v12887_v44  ;;  %9439 = vmatprep.subr.mxu0 %v12718_v45 }
 0x7f5   :  { %9482 = vmatprep.subr.mxu1 %v12718_v45  ;;  %9440 = vmatpush3.msra.mxu0 %v10311_v27 }
 0x7f6   :  { %9483 = vmatpush3.msra.mxu1 %v12888_v38  ;;  %9441 = vmatprep.subr.mxu0 %v12718_v45 }
 0x7f7   :  { %9484 = vmatprep.subr.mxu1 %v12718_v45  ;;  %9442 = vmatpush3.msra.mxu0 %v10331_v47 }
 0x7f8   :  { %9485 = vmatpush3.msra.mxu1 %v12889_v63  ;;  %9443 = vmatprep.subr.mxu0 %v12718_v45 }
 0x7f9   :  { %9486 = vmatprep.subr.mxu1 %v12718_v45  ;;  %9444 = vmatpush3.msra.mxu0 %v10340_v1 }
 0x7fa   :  { %9487 = vmatpush3.msra.mxu1 %v12890_v50  ;;  %9445 = vmatprep.subr.mxu0 %v12718_v45 }
 0x7fb   :  { %9488 = vmatprep.subr.mxu1 %v12718_v45  ;;  %9446 = vmatpush3.msra.mxu0 %v10362_v30 }
 0x7fc   :  { %9489 = vmatpush3.msra.mxu1 %v12891_v7  ;;  %9447 = vmatprep.subr.mxu0 %v12718_v45 }
 0x7fd   :  { %9490 = vmatprep.subr.mxu1 %v12718_v45  ;;  %9448 = vmatpush3.msra.mxu0 %v10381_v51 }
 0x7fe   :  { %9491 = vmatpush3.msra.mxu1 %v12892_v59  ;;  %9449 = vmatprep.subr.mxu0 %v12718_v45 }
 0x7ff   :  { %9492 = vmatprep.subr.mxu1 %v12718_v45  ;;  %9450 = vmatpush3.msra.mxu0 %v10395_v12 }
 0x800   :  { %9493 = vmatpush3.msra.mxu1 %v12893_v29  ;;  %9451 = vmatprep.subr.mxu0 %v12718_v45 }
 0x801   :  { %9494 = vmatprep.subr.mxu1 %v12718_v45  ;;  %9452 = vmatpush3.msra.mxu0 %v10412_v48 }
 0x802   :  { %9495 = vmatpush3.msra.mxu1 %v12894_v21  ;;  %9453 = vmatprep.subr.mxu0 %v12718_v45 }
 0x803   :  { %9496 = vmatprep.subr.mxu1 %v12718_v45  ;;  %9454 = vmatpush3.msra.mxu0 %v12719_v17 }
 0x804   :  { %9497 = vmatpush3.msra.mxu1 %v12895_v56  ;;  %9455 = vmatprep.subr.mxu0 %v12718_v45 }
 0x805   :  { %9498 = vmatprep.subr.mxu1 %v12718_v45  ;;  %9456 = vmatpush3.msra.mxu0 %v12721_v35 }
 0x806   :  { %9499 = vmatpush3.msra.mxu1 %v12896_v26  ;;  %9457 = vmatprep.subr.mxu0 %v12718_v45 }
 0x807   :  { %9500 = vmatprep.subr.mxu1 %v12718_v45  ;;  %9458 = vmatpush3.msra.mxu0 %v12723_v62 }
 0x808   :  { %9501 = vmatpush3.msra.mxu1 %v12897_v28  ;;  %9459 = vmatprep.subr.mxu0 %v12718_v45 }
 0x809   :  { %9502 = vmatprep.mubr.msk.f32.mxu1 %vm9776_vm0, %v12718_v45  ;;  %9540 = vmatprep.subr.mxu1 %v12718_v45 }
 0x80a   :  { %9460 = vmatpush3.msra.mxu0 %v12725_v36  ;;  %9467 = vmatprep.mubr.msk.f32.mxu0 %vm9776_vm0, %v12718_v45 }
 0x80b   :  { %9461 = vmatprep.subr.mxu0 %v12718_v45 }
 0x80c   :  { %9462 = vmatpush3.msra.mxu0 %v12727_v23 }
 0x80d   :  { %9463 = vmatprep.subr.mxu0 %v12718_v45 }
 0x80e   :  { %9464 = vmatpush3.msra.mxu0 %v12729_v49 }
 0x80f   :  { %9465 = vmatprep.subr.mxu0 %v12718_v45 }
 0x810   :  { %9466 = vmatpush3.msra.mxu0 %v12731_v41 }
 0x811   :  { %9505 = vmatprep.subr.mxu0 %v12718_v45 }
 0x865   :  { %v5557_v57 = vpop.f32.mrf.mxu1 }
 0x867   :  { %v9294_v32 = vpop.f32.mrf.mxu1 }
 0x86d   :  { %v5406_v8 = vpop.f32.mrf.mxu0 }
 0x86e   :  { %v5558_v59 = vadd.f32 %v5557_v57, %v5406_v8 }
 0x86f   :  { %v9259_v5 = vpop.f32.mrf.mxu0 }
 0x870   :  { %v5291_v5 = vld [vmem:[#allocation3 + $0x1e] sm:$0x1] }
 0x885   :  { %v5750_v44 = vpop.f32.mrf.mxu1 }
 0x887   :  { %v9364_v38 = vpop.f32.mrf.mxu1 }
 0x88e   :  { %v5661_v63 = vpop.f32.mrf.mxu0 }
 0x88f   :  { %v5662_v21 = vadd.f32 %v5661_v63, %v5558_v59  ;;  %v5293_v59 = vld [vmem:[#allocation3 + $0x2e] sm:$0x1] }
 0x890   :  { %v9329_v50 = vpop.f32.mrf.mxu0 }
 0x891   :  { %v5751_v56 = vadd.f32 %v5750_v44, %v5662_v21  ;;  %v5295_v21 = vld [vmem:[#allocation3 + $0x3e] sm:$0x1] }
 0x8a7   :  { %v5956_v7 = vpop.f32.mrf.mxu1 }
 0x8a9   :  { %v9434_v29 = vpop.f32.mrf.mxu1 }
 0x8af   :  { %v5869_v26 = vpop.f32.mrf.mxu0 }
 0x8b0   :  { %v5870_v28 = vadd.f32 %v5869_v26, %v5751_v56 }
 0x8b1   :  { %v9399_v40 = vpop.f32.mrf.mxu0 }
 0x8b2   :  { %v5957_v37 = vadd.f32 %v5956_v7, %v5870_v28  ;;  %v5294_v7 = vld [vmem:[#allocation3 + $0x36] sm:$0x1] }
 0x8b4   :  { %v5961_v60 = vrot.slane %v5957_v37, 1  ;;  %v5962_v43 = vrot.slane %v5957_v37, 2  ;;  %v5963_v32 = vrot.slane %v5957_v37, 3  ;;  %v5964_v19 = vrot.slane %v5957_v37, 4 }
 0x8b5   :  { %v5976_v38 = vadd.f32 %v5957_v37, %v5288_v52  ;;  %v5965_v4 = vrot.slane %v5957_v37, 5  ;;  %v5966_v50 = vrot.slane %v5957_v37, 6  ;;  %v5967_v63 = vrot.slane %v5957_v37, 7 }
 0x8b6   :  { %v5977_v57 = vadd.f32 %v5961_v60, %v5289_v53  ;;  %v5978_v8 = vadd.f32 %v5962_v43, %v5290_v20  ;;  %v5979_v44 = vadd.f32 %v5963_v32, %v5291_v5  ;;  %v5980_v40 = vadd.f32 %v5964_v19, %v5292_v18 }
 0x8b7   :  { %9743 = vtanh.f32 %v5976_v38  ;;  %v5981_v29 = vadd.f32 %v5965_v4, %v5293_v59  ;;  %v5982_v56 = vadd.f32 %v5966_v50, %v5294_v7  ;;  %v5983_v26 = vadd.f32 %v5967_v63, %v5295_v21 }
 0x8b8   :  { %9745 = vtanh.f32 %v5977_v57 }
 0x8b9   :  { %9747 = vtanh.f32 %v5978_v8 }
 0x8ba   :  { %9749 = vtanh.f32 %v5979_v44 }
 0x8bb   :  { %9751 = vtanh.f32 %v5980_v40 }
 0x8bc   :  { %9753 = vtanh.f32 %v5981_v29 }
 0x8bd   :  { %9755 = vtanh.f32 %v5982_v56 }
 0x8be   :  { %9757 = vtanh.f32 %v5983_v26 }
 0x8c4   :  { %v9744_v52 = vpop.eup %9743 }
 0x8c5   :  { %v9746_v60 = vpop.eup %9745  ;;  %5992 = vst [vmem:[%s12544_s5 + $0x6] sm:$0x1] %v9744_v52 }
 0x8c6   :  { %v9748_v20 = vpop.eup %9747  ;;  %5993 = vst [vmem:[%s12544_s5 + $0xe] sm:$0x1] %v9746_v60  ;;  %v6016_v18 = vrot.slane %v9746_v60, 7 }
 0x8c7   :  { %v9750_v4 = vpop.eup %9749  ;;  %5994 = vst [vmem:[%s12544_s5 + $0x16] sm:$0x1] %v9748_v20  ;;  %v6018_v19 = vrot.slane %v9748_v20, 6 }
 0x8c8   :  { %v9752_v43 = vpop.eup %9751  ;;  %5995 = vst [vmem:[%s12544_s5 + $0x1e] sm:$0x1] %v9750_v4  ;;  %v6017_v53 = vsel %vm1738_vm1, %v6016_v18, %v9744_v52  ;;  %v6020_v37 = vrot.slane %v9750_v4, 5 }
 0x8c9   :  { %v9754_v28 = vpop.eup %9753  ;;  %5996 = vst [vmem:[%s12544_s5 + $0x26] sm:$0x1] %v9752_v43  ;;  %v6019_v32 = vsel %vm1741_vm2, %v6018_v19, %v6017_v53  ;;  %v6022_v5 = vrot.slane %v9752_v43, 4  ;;  %v6005_v43 = vld [vmem:[#allocation3 + $0x2f] sm:$0x1] }
 0x8ca   :  { %v9756_v38 = vpop.eup %9755  ;;  %5997 = vst [vmem:[%s12544_s5 + $0x2e] sm:$0x1] %v9754_v28  ;;  %v6021_v50 = vsel %vm1744_vm3, %v6020_v37, %v6019_v32  ;;  %v6024_v57 = vrot.slane %v9754_v28, 3  ;;  %v6006_v37 = vld [vmem:[#allocation3 + $0x37] sm:$0x1] }
 0x8cb   :  { %v9758_v8 = vpop.eup %9757  ;;  %5998 = vst [vmem:[%s12544_s5 + $0x36] sm:$0x1] %v9756_v38  ;;  %v6023_v63 = vsel %vm1747_vm4, %v6022_v5, %v6021_v50  ;;  %v6026_v44 = vrot.slane %v9756_v38, 2  ;;  %v6007_v32 = vld [vmem:[#allocation3 + $0x3f] sm:$0x1] }
 0x8cc   :  { %5999 = vst [vmem:[%s12544_s5 + $0x3e] sm:$0x1] %v9758_v8  ;;  %v6025_v59 = vsel %vm1750_vm5, %v6024_v57, %v6023_v63  ;;  %v6028_v40 = vrot.slane %v9758_v8, 1 }
 0x8cd   :  { %v6027_v7 = vsel %vm1753_vm6, %v6026_v44, %v6025_v59 }
 0x8ce   :  { %v6029_v29 = vsel %vm1756_vm7, %v6028_v40, %v6027_v7 }
 0x8cf   :  { %v12370_v21 = vand.u32 4294901760, %v6029_v29 }
 0x8d1   :  { %v12373_v56 = vsub.f32 %v6029_v29, %v12370_v21  ;;  %9503 = vmatmul.mubr.f32.vlgmr.msra.gmra.mxu1 %v12370_v21 }
 0x8d2   :  { %9541 = vmatpush3.msra.mxu1 %v10286_v9  ;;  %9572 = vmatprep.mubr.msk.f32.mxu1 %vm9776_vm0, %v12718_v45 }
 0x8d3   :  { %9542 = vmatprep.subr.mxu1 %v12718_v45  ;;  %v6114_v26 = vand.u32 4294901760, %v12373_v56 }
 0x8d4   :  { %9543 = vmatpush3.msra.mxu1 %v10297_v11 }
 0x8d5   :  { %9544 = vmatprep.subr.mxu1 %v12718_v45  ;;  %v6115_v52 = vsub.f32 %v12373_v56, %v6114_v26 }
 0x8d6   :  { %9545 = vmatpush3.msra.mxu1 %v10311_v27 }
 0x8d7   :  { %9546 = vmatprep.subr.mxu1 %v12718_v45  ;;  %v6116_v60 = vand.u32 4294901760, %v6115_v52 }
 0x8d8   :  { %9547 = vmatpush3.msra.mxu1 %v10331_v47 }
 0x8d9   :  { %9548 = vmatprep.subr.mxu1 %v12718_v45  ;;  %9468 = vmatmul.mubr.f32.vlgmr.msra.gmra.mxu0 %v6116_v60 }
 0x8da   :  { %9506 = vmatpush3.msra.mxu0 %v10305_v24  ;;  %9549 = vmatpush3.msra.mxu1 %v10340_v1  ;;  %v12900_v24 = vld [vmem:[#allocation24_spill] sm:$0xff] }
 0x8db   :  { %9507 = vmatprep.subr.mxu0 %v12718_v45  ;;  %9550 = vmatprep.subr.mxu1 %v12718_v45 }
 0x8dc   :  { %9508 = vmatpush3.msra.mxu0 %v10319_v39  ;;  %9551 = vmatpush3.msra.mxu1 %v10362_v30  ;;  %v12902_v39 = vld [vmem:[#allocation32_spill] sm:$0xff] }
 0x8dd   :  { %9509 = vmatprep.subr.mxu0 %v12718_v45  ;;  %9552 = vmatprep.subr.mxu1 %v12718_v45 }
 0x8de   :  { %9510 = vmatpush3.msra.mxu0 %v10336_v58  ;;  %9553 = vmatpush3.msra.mxu1 %v10381_v51  ;;  %v12904_v58 = vld [vmem:[#allocation40_spill] sm:$0xff] }
 0x8df   :  { %9511 = vmatprep.subr.mxu0 %v12718_v45  ;;  %9554 = vmatprep.subr.mxu1 %v12718_v45 }
 0x8e0   :  { %9512 = vmatpush3.msra.mxu0 %v10358_v25  ;;  %9555 = vmatpush3.msra.mxu1 %v10395_v12  ;;  %v12906_v25 = vld [vmem:[#allocation46_spill] sm:$0xff] }
 0x8e1   :  { %9513 = vmatprep.subr.mxu0 %v12718_v45  ;;  %9556 = vmatprep.subr.mxu1 %v12718_v45 }
 0x8e2   :  { %9514 = vmatpush3.msra.mxu0 %v10375_v31  ;;  %9557 = vmatpush3.msra.mxu1 %v10412_v48 }
 0x8e3   :  { %9515 = vmatprep.subr.mxu0 %v12718_v45  ;;  %9558 = vmatprep.subr.mxu1 %v12718_v45 }
 0x8e4   :  { %9516 = vmatpush3.msra.mxu0 %v10398_v61  ;;  %9559 = vmatpush3.msra.mxu1 %v12719_v17 }
 0x8e5   :  { %9517 = vmatprep.subr.mxu0 %v12718_v45  ;;  %9560 = vmatprep.subr.mxu1 %v12718_v45 }
 0x8e6   :  { %9518 = vmatpush3.msra.mxu0 %v12720_v22  ;;  %9561 = vmatpush3.msra.mxu1 %v12721_v35 }
 0x8e7   :  { %9519 = vmatprep.subr.mxu0 %v12718_v45  ;;  %9562 = vmatprep.subr.mxu1 %v12718_v45 }
 0x8e8   :  { %9520 = vmatpush3.msra.mxu0 %v12722_v0  ;;  %9563 = vmatpush3.msra.mxu1 %v12723_v62 }
 0x8e9   :  { %9521 = vmatprep.subr.mxu0 %v12718_v45  ;;  %9564 = vmatprep.subr.mxu1 %v12718_v45 }
 0x8ea   :  { %9522 = vmatpush3.msra.mxu0 %v12724_v33  ;;  %9565 = vmatpush3.msra.mxu1 %v12725_v36 }
 0x8eb   :  { %9523 = vmatprep.subr.mxu0 %v12718_v45  ;;  %9566 = vmatprep.subr.mxu1 %v12718_v45 }
 0x8ec   :  { %9524 = vmatpush3.msra.mxu0 %v12726_v46  ;;  %9567 = vmatpush3.msra.mxu1 %v12727_v23 }
 0x8ed   :  { %9525 = vmatprep.subr.mxu0 %v12718_v45  ;;  %9568 = vmatprep.subr.mxu1 %v12718_v45 }
 0x8ee   :  { %9526 = vmatpush3.msra.mxu0 %v12728_v55  ;;  %9569 = vmatpush3.msra.mxu1 %v12729_v49 }
 0x8ef   :  { %9527 = vmatprep.subr.mxu0 %v12718_v45  ;;  %9570 = vmatprep.subr.mxu1 %v12718_v45 }
 0x8f0   :  { %9528 = vmatpush3.msra.mxu0 %v12730_v3  ;;  %9571 = vmatpush3.msra.mxu1 %v12731_v41  ;;  %v6001_v3 = vld [vmem:[#allocation3 + $0xf] sm:$0x1] }
 0x8f1   :  { %9529 = vmatprep.subr.mxu0 %v12718_v45  ;;  %9573 = vmatmul.mubr.f32.vlgmr.msra.gmra.mxu1 %v6114_v26 }
 0x8f2   :  { %9610 = vmatprep.subr.mxu1 %v12718_v45  ;;  %9530 = vmatpush3.msra.mxu0 %v12732_v34 }
 0x8f3   :  { %9611 = vmatpush3.msra.mxu1 %v10286_v9  ;;  %9531 = vmatprep.subr.mxu0 %v12718_v45  ;;  %v12898_v9 = vld [vmem:[#allocation17_spill] sm:$0xff] }
 0x8f4   :  { %9612 = vmatprep.subr.mxu1 %v12718_v45  ;;  %9532 = vmatpush3.msra.mxu0 %v12733_v15 }
 0x8f5   :  { %9613 = vmatpush3.msra.mxu1 %v10297_v11  ;;  %9533 = vmatprep.subr.mxu0 %v12718_v45  ;;  %v12899_v11 = vld [vmem:[#allocation21_spill] sm:$0xff] }
 0x8f6   :  { %9614 = vmatprep.subr.mxu1 %v12718_v45  ;;  %9534 = vmatpush3.msra.mxu0 %v12734_v2 }
 0x8f7   :  { %9615 = vmatpush3.msra.mxu1 %v10311_v27  ;;  %9535 = vmatprep.subr.mxu0 %v12718_v45  ;;  %v12901_v27 = vld [vmem:[#allocation28_spill] sm:$0xff] }
 0x8f8   :  { %9616 = vmatprep.subr.mxu1 %v12718_v45  ;;  %9536 = vmatpush3.msra.mxu0 %v12735_v42 }
 0x8f9   :  { %9537 = vmatprep.mubr.msk.f32.mxu0 %vm9776_vm0, %v12718_v45  ;;  %9617 = vmatpush3.msra.mxu1 %v10331_v47  ;;  %v12903_v47 = vld [vmem:[#allocation36_spill] sm:$0xff] }
 0x8fa   :  { %9538 = vmatmul.mubr.f32.vlgmr.msra.gmra.mxu0 %v12373_v56  ;;  %9575 = vmatprep.subr.mxu0 %v12718_v45 }
 0x8fb   :  { %9618 = vmatprep.subr.mxu1 %v12718_v45  ;;  %9576 = vmatpush3.msra.mxu0 %v12736_v14  ;;  %v6003_v14 = vld [vmem:[#allocation3 + $0x1f] sm:$0x1] }
 0x8fc   :  { %9619 = vmatpush3.msra.mxu1 %v10340_v1  ;;  %9577 = vmatprep.subr.mxu0 %v12718_v45  ;;  %v12905_v1 = vld [vmem:[#allocation43_spill] sm:$0xff] }
 0x8fd   :  { %9620 = vmatprep.subr.mxu1 %v12718_v45  ;;  %9578 = vmatpush3.msra.mxu0 %v12737_v13  ;;  %v6002_v13 = vld [vmem:[#allocation3 + $0x17] sm:$0x1] }
 0x8fe   :  { %9621 = vmatpush3.msra.mxu1 %v10362_v30  ;;  %9579 = vmatprep.subr.mxu0 %v12718_v45  ;;  %v12907_v30 = vld [vmem:[#allocation48_spill] sm:$0xff] }
 0x8ff   :  { %9622 = vmatprep.subr.mxu1 %v12718_v45  ;;  %9580 = vmatpush3.msra.mxu0 %v12738_v10 }
 0x900   :  { %9623 = vmatpush3.msra.mxu1 %v10381_v51  ;;  %9581 = vmatprep.subr.mxu0 %v12718_v45 }
 0x901   :  { %9624 = vmatprep.subr.mxu1 %v12718_v45  ;;  %9582 = vmatpush3.msra.mxu0 %v12739_v16 }
 0x902   :  { %9625 = vmatpush3.msra.mxu1 %v10395_v12  ;;  %9583 = vmatprep.subr.mxu0 %v12718_v45 }
 0x903   :  { %9626 = vmatprep.subr.mxu1 %v12718_v45  ;;  %9584 = vmatpush3.msra.mxu0 %v12740_v54 }
 0x904   :  { %9627 = vmatpush3.msra.mxu1 %v10412_v48  ;;  %9585 = vmatprep.subr.mxu0 %v12718_v45 }
 0x905   :  { %9628 = vmatprep.subr.mxu1 %v12718_v45  ;;  %9586 = vmatpush3.msra.mxu0 %v12741_v6  ;;  %v6004_v6 = vld [vmem:[#allocation3 + $0x27] sm:$0x1] }
 0x906   :  { %9629 = vmatpush3.msra.mxu1 %v12719_v17  ;;  %9587 = vmatprep.subr.mxu0 %v12718_v45 }
 0x907   :  { %9630 = vmatprep.subr.mxu1 %v12718_v45  ;;  %9588 = vmatpush3.msra.mxu0 %v12898_v9 }
 0x908   :  { %9631 = vmatpush3.msra.mxu1 %v12721_v35  ;;  %9589 = vmatprep.subr.mxu0 %v12718_v45 }
 0x909   :  { %9632 = vmatprep.subr.mxu1 %v12718_v45  ;;  %9590 = vmatpush3.msra.mxu0 %v12899_v11 }
 0x90a   :  { %9633 = vmatpush3.msra.mxu1 %v12723_v62  ;;  %9591 = vmatprep.subr.mxu0 %v12718_v45 }
 0x90b   :  { %9634 = vmatprep.subr.mxu1 %v12718_v45  ;;  %9592 = vmatpush3.msra.mxu0 %v12900_v24 }
 0x90c   :  { %9635 = vmatpush3.msra.mxu1 %v12725_v36  ;;  %9593 = vmatprep.subr.mxu0 %v12718_v45 }
 0x90d   :  { %9636 = vmatprep.subr.mxu1 %v12718_v45  ;;  %9594 = vmatpush3.msra.mxu0 %v12901_v27 }
 0x90e   :  { %9637 = vmatpush3.msra.mxu1 %v12727_v23  ;;  %9595 = vmatprep.subr.mxu0 %v12718_v45 }
 0x90f   :  { %9638 = vmatprep.subr.mxu1 %v12718_v45  ;;  %9596 = vmatpush3.msra.mxu0 %v12902_v39 }
 0x910   :  { %9639 = vmatpush3.msra.mxu1 %v12729_v49  ;;  %9597 = vmatprep.subr.mxu0 %v12718_v45 }
 0x911   :  { %9640 = vmatprep.subr.mxu1 %v12718_v45  ;;  %9598 = vmatpush3.msra.mxu0 %v12903_v47 }
 0x912   :  { %9641 = vmatpush3.msra.mxu1 %v12731_v41  ;;  %9642 = vmatprep.mubr.msk.f32.mxu1 %vm9776_vm0, %v12718_v45  ;;  %v6000_v41 = vld [vmem:[#allocation3 + $0x7] sm:$0x1] }
 0x913   :  { %9599 = vmatprep.subr.mxu0 %v12718_v45  ;;  %9643 = vmatmul.mubr.f32.vlgmr.msra.gmra.mxu1 %v12370_v21 }
 0x914   :  { %9600 = vmatpush3.msra.mxu0 %v12904_v58  ;;  %9607 = vmatprep.mubr.msk.f32.mxu0 %vm9776_vm0, %v12718_v45 }
 0x915   :  { %9601 = vmatprep.subr.mxu0 %v12718_v45 }
 0x916   :  { %9602 = vmatpush3.msra.mxu0 %v12905_v1 }
 0x917   :  { %9603 = vmatprep.subr.mxu0 %v12718_v45 }
 0x918   :  { %9604 = vmatpush3.msra.mxu0 %v12906_v25 }
 0x919   :  { %9605 = vmatprep.subr.mxu0 %v12718_v45 }
 0x91a   :  { %9606 = vmatpush3.msra.mxu0 %v12907_v30 }
 0x91b   :  { %9608 = vmatmul.mubr.f32.vlgmr.msra.gmra.mxu0 %v12370_v21 }
 0x991   :  { %v6269_v31 = vpop.f32.mrf.mxu1 }
 0x993   :  { %v9504_v51 = vpop.f32.mrf.mxu1 }
 0x999   :  { %v6118_v12 = vpop.f32.mrf.mxu0 }
 0x99a   :  { %v6270_v62 = vadd.f32 %v6269_v31, %v6118_v12 }
 0x99b   :  { %v9469_v61 = vpop.f32.mrf.mxu0 }
 0x9b1   :  { %v6462_v48 = vpop.f32.mrf.mxu1 }
 0x9b3   :  { %v9574_v17 = vpop.f32.mrf.mxu1 }
 0x9ba   :  { %v6373_v22 = vpop.f32.mrf.mxu0 }
 0x9bb   :  { %v6374_v36 = vadd.f32 %v6373_v22, %v6270_v62 }
 0x9bc   :  { %v9539_v35 = vpop.f32.mrf.mxu0 }
 0x9bd   :  { %v6463_v46 = vadd.f32 %v6462_v48, %v6374_v36 }
 0x9d3   :  { %v6668_v0 = vpop.f32.mrf.mxu1 }
 0x9d5   :  { %v9644_v33 = vpop.f32.mrf.mxu1 }
 0x9db   :  { %v6581_v23 = vpop.f32.mrf.mxu0 }
 0x9dc   :  { %v6582_v55 = vadd.f32 %v6581_v23, %v6463_v46 }
 0x9dd   :  { %v9609_v45 = vpop.f32.mrf.mxu0 }
 0x9de   :  { %v6669_v49 = vadd.f32 %v6668_v0, %v6582_v55 }
 0x9e0   :  { %v6673_v34 = vrot.slane %v6669_v49, 1  ;;  %v6674_v15 = vrot.slane %v6669_v49, 2  ;;  %v6675_v2 = vrot.slane %v6669_v49, 3  ;;  %v6676_v42 = vrot.slane %v6669_v49, 4 }
 0x9e1   :  { %v6677_v10 = vrot.slane %v6669_v49, 5  ;;  %v6678_v16 = vrot.slane %v6669_v49, 6  ;;  %v6688_v54 = vadd.f32 %v6669_v49, %v6000_v41  ;;  %v6679_v20 = vrot.slane %v6669_v49, 7 }
 0x9e2   :  { %v6689_v18 = vadd.f32 %v6673_v34, %v6001_v3  ;;  %v6690_v4 = vadd.f32 %v6674_v15, %v6002_v13  ;;  %v6691_v19 = vadd.f32 %v6675_v2, %v6003_v14  ;;  %v6692_v53 = vadd.f32 %v6676_v42, %v6004_v6 }
 0x9e3   :  { %9759 = vtanh.f32 %v6688_v54  ;;  %v6693_v28 = vadd.f32 %v6677_v10, %v6005_v43  ;;  %v6694_v5 = vadd.f32 %v6678_v16, %v6006_v37  ;;  %v6695_v38 = vadd.f32 %v6679_v20, %v6007_v32 }
 0x9e4   :  { %9761 = vtanh.f32 %v6689_v18 }
 0x9e5   :  { %9763 = vtanh.f32 %v6690_v4 }
 0x9e6   :  { %9765 = vtanh.f32 %v6691_v19 }
 0x9e7   :  { %9767 = vtanh.f32 %v6692_v53 }
 0x9e8   :  { %9769 = vtanh.f32 %v6693_v28 }
 0x9e9   :  { %9771 = vtanh.f32 %v6694_v5 }
 0x9ea   :  { %9773 = vtanh.f32 %v6695_v38 }
 0x9f0   :  { %v9760_v50 = vpop.eup %9759 }
 0x9f1   :  { %v9762_v57 = vpop.eup %9761  ;;  %6704 = vst [vmem:[%s12544_s5 + $0x7] sm:$0x1] %v9760_v50 }
 0x9f2   :  { %v9764_v8 = vpop.eup %9763  ;;  %6705 = vst [vmem:[%s12544_s5 + $0xf] sm:$0x1] %v9762_v57 }
 0x9f3   :  { %v9766_v63 = vpop.eup %9765  ;;  %6706 = vst [vmem:[%s12544_s5 + $0x17] sm:$0x1] %v9764_v8 }
 0x9f4   :  { %v9768_v44 = vpop.eup %9767  ;;  %6707 = vst [vmem:[%s12544_s5 + $0x1f] sm:$0x1] %v9766_v63 }
 0x9f5   :  { %v9770_v59 = vpop.eup %9769  ;;  %6708 = vst [vmem:[%s12544_s5 + $0x27] sm:$0x1] %v9768_v44 }
 0x9f6   :  { %v9772_v40 = vpop.eup %9771  ;;  %6709 = vst [vmem:[%s12544_s5 + $0x2f] sm:$0x1] %v9770_v59 }
 0x9f7   :  { %v9774_v7 = vpop.eup %9773  ;;  %6710 = vst [vmem:[%s12544_s5 + $0x37] sm:$0x1] %v9772_v40 }
 0x9f8   :  { %6711 = vst [vmem:[%s12544_s5 + $0x3f] sm:$0x1] %v9774_v7 }

</bundles_post_ra>
